<compile_context>
chip_gen: v6e
topology: v6e:2x2x1
jax: 0.10.0
libtpu: 0.0.40
codegen_flags: <defaults>
</compile_context>

<pallas_src>
import jax
import jax.numpy as jnp
from jax import lax
from jax.experimental import pallas as pl
from jax.experimental.pallas import tpu as pltpu

K_SAMPLES = 8     # samples per ray
HIDDEN = 32       # MLP hidden width
CHUNK = 256       # lanes per inner chunk: (K, CHUNK) f32 plane = 2 vregs
TM_MAX = 8192     # rays per grid tile (lane axis), sweepable
LANE = 128


def _render_kernel(params_ref, rays_ref, out_ref):
    """params_ref: SMEM f32[8*H+4] packed [w1(3,H); b1(H); w2(H,4); b2(4)].
    rays_ref: VMEM f32[8, TM]  rows = [ox,oy,oz,dx,dy,dz,near,far].
    out_ref : VMEM f32[4, TM]  rows = [r, g, b, depth]."""
    H = HIDDEN
    K = K_SAMPLES
    tm = rays_ref.shape[1]
    n_chunks = tm // CHUNK
    inv_km1 = 1.0 / (K - 1)

    # Loop-invariant constants (hoisted: JAX does not CSE broadcasts in loops).
    t = lax.broadcasted_iota(jnp.int32, (K, 1), 0).astype(jnp.float32) * inv_km1
    one_minus_t = 1.0 - t
    row = lax.broadcasted_iota(jnp.int32, (K, CHUNK), 0)         # sample index
    not_last = (row < (K - 1)).astype(jnp.float32)               # last sample -> zero weight

    # Packed-parameter scalar accessors (cheap SMEM scalar loads; dual-issue
    # with vector work).
    # TODO(synk): if a bundle dump shows per-scalar splat vregs, pre-broadcast
    #             weights into VMEM and read them with stride-0 pl.ds slices.
    def w1(r, j): return params_ref[r * H + j]
    def b1(j):    return params_ref[3 * H + j]
    def w2(j, c): return params_ref[4 * H + 4 * j + c]
    def b2(c):    return params_ref[8 * H + c]

    def sigmoid_eup(x):
        # exp + approx reciprocal both live on the EUP slot (VALU is binding);
        # one Newton step restores full f32 precision.
        e = jnp.exp(-x)
        den = 1.0 + e
        r = pl.reciprocal(den, approx=True)
        return r * (2.0 - den * r)

    @pl.loop(0, n_chunks)
    def _chunk(c):
        off = pl.multiple_of(c * CHUNK, CHUNK)
        rays = rays_ref[:, pl.ds(off, CHUNK)]                    # (8, CHUNK)
        ox, oy, oz = rays[0:1, :], rays[1:2, :], rays[2:3, :]    # (1, CHUNK)
        dx, dy, dz = rays[3:4, :], rays[4:5, :], rays[5:6, :]
        near, far = rays[6:7, :], rays[7:8, :]

        # Stratified (linspace) depths: z = near*(1-t) + far*t, t = k/(K-1).
        z = near * one_minus_t + far * t                         # (K, CHUNK)
        step = (far - near) * inv_km1                            # (1, CHUNK) per-ray delta
        px = ox + dx * z                                         # (K, CHUNK)
        py = oy + dy * z
        pz = oz + dz * z

        # Fused MLP: layer1 (3->H) + relu + layer2 (H->4), streamed over hidden
        # units as scalar-broadcast VPU multiply-adds on (K, CHUNK) planes.
        acc0 = jnp.zeros_like(z) + b2(0)
        acc1 = jnp.zeros_like(z) + b2(1)
        acc2 = jnp.zeros_like(z) + b2(2)
        acc3 = jnp.zeros_like(z) + b2(3)
        for j in range(H):
            h = jnp.maximum(px * w1(0, j) + py * w1(1, j) + pz * w1(2, j) + b1(j), 0.0)
            acc0 = acc0 + h * w2(j, 0)
            acc1 = acc1 + h * w2(j, 1)
            acc2 = acc2 + h * w2(j, 2)
            acc3 = acc3 + h * w2(j, 3)

        sigma = jnp.maximum(acc0, 0.0)                           # (K, CHUNK) density
        red = sigmoid_eup(acc1)
        grn = sigmoid_eup(acc2)
        blu = sigmoid_eup(acc3)

        # delta == step for samples 0..K-2; the reference delta for the last
        # sample is far - z[K-1] == 0, so mask its alpha to exactly zero.
        alphas = (1.0 - jnp.exp(-step * sigma)) * not_last       # (K, CHUNK)

        # Exclusive cumprod of transmittance along the sample (sublane) axis:
        # Hillis-Steele inclusive scan with masked XLU rolls, then shift by 1.
        keep = 1.0 - alphas
        p = keep
        for d in (1, 2, 4):
            p = p * jnp.where(row >= d, pltpu.roll(p, shift=d, axis=0), 1.0)
        trans = jnp.where(row >= 1, pltpu.roll(p, shift=1, axis=0), 1.0)
        w = alphas * trans                                       # (K, CHUNK) weights

        # Composite via XLU sublane reductions -> (1, CHUNK) output rows.
        out_ref[0:1, pl.ds(off, CHUNK)] = jnp.sum(w * red, axis=0, keepdims=True)
        out_ref[1:2, pl.ds(off, CHUNK)] = jnp.sum(w * grn, axis=0, keepdims=True)
        out_ref[2:3, pl.ds(off, CHUNK)] = jnp.sum(w * blu, axis=0, keepdims=True)
        out_ref[3:4, pl.ds(off, CHUNK)] = jnp.sum(w * z, axis=0, keepdims=True)


def _round_up(x, m):
    return ((x + m - 1) // m) * m


def _pack_params(params):
    w1, b1, w2, b2 = params
    return jnp.concatenate(
        [w1.reshape(-1), b1.reshape(-1), w2.reshape(-1), b2.reshape(-1)]
    ).astype(jnp.float32)                                        # (8*H + 4,)


def render_rays(rays, params, tm_max=TM_MAX):
    """Equivalent of _RenderWrapper.forward with simple_output=True (coarse)."""
    if rays.shape[0] == 0:
        return jnp.zeros((0, 3), rays.dtype), jnp.zeros((0,), rays.dtype)

    n = rays.shape[0]
    tm_max = max(_round_up(tm_max, CHUNK), CHUNK)
    m = _round_up(n, CHUNK)

    # As few grid tiles as tm_max allows, but keep >=2 when there is enough
    # work so a v7x chip can use both TensorCores.
    n_tiles = max(1, -(-m // tm_max))
    if n_tiles < 2 and m >= 2 * CHUNK:
        n_tiles = 2
    tm = _round_up(-(-m // n_tiles), CHUNK)
    n_pad = n_tiles * tm

    rays_t = rays.astype(jnp.float32).T                          # (8, N): rays on lanes
    if n_pad != n:
        rays_t = jnp.pad(rays_t, ((0, 0), (0, n_pad - n)))       # zero rays -> zero weight

    packed = _pack_params(params)

    out = pl.pallas_call(
        _render_kernel,
        out_shape=jax.ShapeDtypeStruct((4, n_pad), jnp.float32),
        grid_spec=pltpu.PrefetchScalarGridSpec(
            num_scalar_prefetch=1,                               # params -> SMEM, one DMA
            grid=(n_tiles,),
            in_specs=[pl.BlockSpec((8, tm), lambda i, p: (0, i))],
            out_specs=pl.BlockSpec((4, tm), lambda i, p: (0, i)),
        ),
        compiler_params=pltpu.CompilerParams(dimension_semantics=("parallel",)),
    )(packed, rays_t)

    rgb = out[:3, :n].T.astype(rays.dtype)                       # (N, 3)
    depth = out[3, :n].astype(rays.dtype)                        # (N,)
    return rgb, depth


def render_rays_ref(rays, params):
    """Pure-JAX reference for correctness checking."""
    w1, b1, w2, b2 = params
    origin, direction = rays[:, 0:3], rays[:, 3:6]
    near, far = rays[:, 6:7], rays[:, 7:8]
    t = jnp.linspace(0.0, 1.0, K_SAMPLES)[None, :]
    z = near * (1.0 - t) + far * t                                      # (N, K)
    pts = origin[:, None, :] + direction[:, None, :] * z[:, :, None]
    h = jnp.maximum(pts @ w1 + b1[0], 0.0)
    out = h @ w2 + b2[0]
    sigma = jnp.maximum(out[..., 0], 0.0)
    rgb = jax.nn.sigmoid(out[..., 1:4])
    deltas = jnp.concatenate([z[:, 1:] - z[:, :-1], far - z[:, -1:]], axis=1)
    alphas = 1.0 - jnp.exp(-deltas * sigma)
    trans = jnp.cumprod(
        jnp.concatenate([jnp.ones_like(alphas[:, :1]), 1.0 - alphas[:, :-1]], axis=1),
        axis=1)
    w = alphas * trans
    return jnp.sum(w[..., None] * rgb, axis=1), jnp.sum(w * z, axis=1)


if __name__ == "__main__":
    key = jax.random.PRNGKey(0)
    k1, k2, k3, k4, k5, k6 = jax.random.split(key, 6)

    # Deterministic synthetic "net" parameters (2-layer MLP: 3 -> H -> 4).
    w1 = jax.random.normal(k1, (3, HIDDEN), jnp.float32) * 0.5
    b1 = jax.random.normal(k2, (1, HIDDEN), jnp.float32) * 0.1
    w2 = jax.random.normal(k3, (HIDDEN, 4), jnp.float32) * 0.3
    b2 = jax.random.normal(k4, (1, 4), jnp.float32) * 0.1
    params = (w1, b1, w2, b2)

    # Deterministic rays: [origin(3), dir(3), near, far]; 700 exercises padding,
    # the 2-tile split and the multi-chunk inner loop.
    n_rays = 700
    origins = jax.random.uniform(k5, (n_rays, 3), jnp.float32, -0.5, 0.5)
    dirs = jax.random.normal(k6, (n_rays, 3), jnp.float32)
    dirs = dirs / jnp.linalg.norm(dirs, axis=-1, keepdims=True)
    near = jnp.full((n_rays, 1), 0.5, jnp.float32)
    far = jnp.full((n_rays, 1), 2.0, jnp.float32)
    rays = jnp.concatenate([origins, dirs, near, far], axis=1)          # (700, 8)

    rgb, depth = render_rays(rays, params)
    rgb = jax.block_until_ready(rgb)
    depth = jax.block_until_ready(depth)

    rgb_ref, depth_ref = render_rays_ref(rays, params)
    assert rgb.shape == (n_rays, 3) and depth.shape == (n_rays,)
    assert jnp.allclose(rgb, rgb_ref, atol=2e-4, rtol=2e-4)
    assert jnp.allclose(depth, depth_ref, atol=2e-4, rtol=2e-4)

    # Empty-ray early-exit path (matches torch.zeros(0,3)/torch.zeros(0)).
    rgb0, depth0 = render_rays(jnp.zeros((0, 8), jnp.float32), params)
    assert rgb0.shape == (0, 3) and depth0.shape == (0,)

    print("KERNEL_OK")
</pallas_src>

<mosaic_0001>
module attributes {stable_mosaic.version = 11 : i64} {
  func.func @_render_kernel(%arg0: i32, %arg1: memref<260xf32, #tpu.memory_space<smem>>, %arg2: memref<8x512xf32, #tpu.memory_space<vmem>>, %arg3: memref<4x512xf32, #tpu.memory_space<vmem>>) attributes {dimension_semantics = [#tpu.dimension_semantics<parallel>], iteration_bounds = array<i64: 2>, scalar_prefetch = 1 : i64, scratch_operands = 0 : i64, tpu.core_type = #tpu.core_type<tc>, window_params = [{transform_indices = @transform_0, window_bounds = array<i64: 8, 512>}, {transform_indices = @transform_1, window_bounds = array<i64: 4, 512>}]} {
    %0 = tpu.iota {dimensions = array<i32: 0>} : vector<8x1xi32>
    %1 = arith.sitofp %0 : vector<8x1xi32> to vector<8x1xf32>
    %cst = arith.constant 0.142857149 : f32
    %2 = vector.broadcast %cst : f32 to vector<8x1xf32>
    %3 = arith.mulf %1, %2 : vector<8x1xf32>
    %cst_0 = arith.constant 1.000000e+00 : f32
    %4 = vector.broadcast %cst_0 : f32 to vector<8x1xf32>
    %5 = arith.subf %4, %3 : vector<8x1xf32>
    %6 = tpu.iota {dimensions = array<i32: 0>} : vector<8x256xi32>
    %c7_i32 = arith.constant 7 : i32
    %7 = vector.broadcast %c7_i32 : i32 to vector<8x256xi32>
    %8 = arith.cmpi slt, %6, %7 : vector<8x256xi32>
    %9 = arith.extui %8 : vector<8x256xi1> to vector<8x256xi32>
    %10 = arith.sitofp %9 : vector<8x256xi32> to vector<8x256xf32>
    %c0_i32 = arith.constant 0 : i32
    %c2_i32 = arith.constant 2 : i32
    %11 = arith.addi %c0_i32, %c2_i32 : i32
    %c1_i32 = arith.constant 1 : i32
    scf.for %arg4 = %c0_i32 to %11 step %c1_i32  : i32 {
      %c1_i32_2 = arith.constant 1 : i32
      %12 = arith.muli %arg4, %c1_i32_2 : i32
      %c0_i32_3 = arith.constant 0 : i32
      %13 = arith.addi %c0_i32_3, %12 : i32
      %c256_i32 = arith.constant 256 : i32
      %14 = arith.muli %13, %c256_i32 : i32
      %15 = tpu.assume_multiple %14, 256 : i32
      %c0 = arith.constant 0 : index
      %16 = arith.index_cast %15 : i32 to index
      %17 = vector.load %arg2[%c0, %16] : memref<8x512xf32, #tpu.memory_space<vmem>>, vector<8x256xf32>
      %18 = vector.extract_strided_slice %17 {offsets = [0, 0], sizes = [1, 256], strides = [1, 1]} : vector<8x256xf32> to vector<1x256xf32>
      %19 = vector.extract_strided_slice %17 {offsets = [1, 0], sizes = [1, 256], strides = [1, 1]} : vector<8x256xf32> to vector<1x256xf32>
      %20 = vector.extract_strided_slice %17 {offsets = [2, 0], sizes = [1, 256], strides = [1, 1]} : vector<8x256xf32> to vector<1x256xf32>
      %21 = vector.extract_strided_slice %17 {offsets = [3, 0], sizes = [1, 256], strides = [1, 1]} : vector<8x256xf32> to vector<1x256xf32>
      %22 = vector.extract_strided_slice %17 {offsets = [4, 0], sizes = [1, 256], strides = [1, 1]} : vector<8x256xf32> to vector<1x256xf32>
      %23 = vector.extract_strided_slice %17 {offsets = [5, 0], sizes = [1, 256], strides = [1, 1]} : vector<8x256xf32> to vector<1x256xf32>
      %24 = vector.extract_strided_slice %17 {offsets = [6, 0], sizes = [1, 256], strides = [1, 1]} : vector<8x256xf32> to vector<1x256xf32>
      %25 = vector.extract_strided_slice %17 {offsets = [7, 0], sizes = [1, 256], strides = [1, 1]} : vector<8x256xf32> to vector<1x256xf32>
      %26 = vector.broadcast %24 : vector<1x256xf32> to vector<8x256xf32>
      %27 = vector.broadcast %5 : vector<8x1xf32> to vector<8x256xf32>
      %28 = arith.mulf %26, %27 : vector<8x256xf32>
      %29 = vector.broadcast %25 : vector<1x256xf32> to vector<8x256xf32>
      %30 = vector.broadcast %3 : vector<8x1xf32> to vector<8x256xf32>
      %31 = arith.mulf %29, %30 : vector<8x256xf32>
      %32 = arith.addf %28, %31 : vector<8x256xf32>
      %33 = arith.subf %25, %24 : vector<1x256xf32>
      %cst_4 = arith.constant 0.142857149 : f32
      %34 = vector.broadcast %cst_4 : f32 to vector<1x256xf32>
      %35 = arith.mulf %33, %34 : vector<1x256xf32>
      %36 = vector.broadcast %21 : vector<1x256xf32> to vector<8x256xf32>
      %37 = arith.mulf %36, %32 : vector<8x256xf32>
      %38 = vector.broadcast %18 : vector<1x256xf32> to vector<8x256xf32>
      %39 = arith.addf %38, %37 : vector<8x256xf32>
      %40 = vector.broadcast %22 : vector<1x256xf32> to vector<8x256xf32>
      %41 = arith.mulf %40, %32 : vector<8x256xf32>
      %42 = vector.broadcast %19 : vector<1x256xf32> to vector<8x256xf32>
      %43 = arith.addf %42, %41 : vector<8x256xf32>
      %44 = vector.broadcast %23 : vector<1x256xf32> to vector<8x256xf32>
      %45 = arith.mulf %44, %32 : vector<8x256xf32>
      %46 = vector.broadcast %20 : vector<1x256xf32> to vector<8x256xf32>
      %47 = arith.addf %46, %45 : vector<8x256xf32>
      %cst_5 = arith.constant 0.000000e+00 : f32
      %48 = vector.broadcast %cst_5 : f32 to vector<8x256xf32>
      %c256 = arith.constant 256 : index
      %49 = memref.load %arg1[%c256] : memref<260xf32, #tpu.memory_space<smem>>
      %50 = vector.broadcast %49 : f32 to vector<8x256xf32>
      %51 = arith.addf %48, %50 : vector<8x256xf32>
      %cst_6 = arith.constant 0.000000e+00 : f32
      %52 = vector.broadcast %cst_6 : f32 to vector<8x256xf32>
      %c257 = arith.constant 257 : index
      %53 = memref.load %arg1[%c257] : memref<260xf32, #tpu.memory_space<smem>>
      %54 = vector.broadcast %53 : f32 to vector<8x256xf32>
      %55 = arith.addf %52, %54 : vector<8x256xf32>
      %cst_7 = arith.constant 0.000000e+00 : f32
      %56 = vector.broadcast %cst_7 : f32 to vector<8x256xf32>
      %c258 = arith.constant 258 : index
      %57 = memref.load %arg1[%c258] : memref<260xf32, #tpu.memory_space<smem>>
      %58 = vector.broadcast %57 : f32 to vector<8x256xf32>
      %59 = arith.addf %56, %58 : vector<8x256xf32>
      %cst_8 = arith.constant 0.000000e+00 : f32
      %60 = vector.broadcast %cst_8 : f32 to vector<8x256xf32>
      %c259 = arith.constant 259 : index
      %61 = memref.load %arg1[%c259] : memref<260xf32, #tpu.memory_space<smem>>
      %62 = vector.broadcast %61 : f32 to vector<8x256xf32>
      %63 = arith.addf %60, %62 : vector<8x256xf32>
      %c0_9 = arith.constant 0 : index
      %64 = memref.load %arg1[%c0_9] : memref<260xf32, #tpu.memory_space<smem>>
      %65 = vector.broadcast %64 : f32 to vector<8x256xf32>
      %66 = arith.mulf %39, %65 : vector<8x256xf32>
      %c32 = arith.constant 32 : index
      %67 = memref.load %arg1[%c32] : memref<260xf32, #tpu.memory_space<smem>>
      %68 = vector.broadcast %67 : f32 to vector<8x256xf32>
      %69 = arith.mulf %43, %68 : vector<8x256xf32>
      %70 = arith.addf %66, %69 : vector<8x256xf32>
      %c64 = arith.constant 64 : index
      %71 = memref.load %arg1[%c64] : memref<260xf32, #tpu.memory_space<smem>>
      %72 = vector.broadcast %71 : f32 to vector<8x256xf32>
      %73 = arith.mulf %47, %72 : vector<8x256xf32>
      %74 = arith.addf %70, %73 : vector<8x256xf32>
      %c96 = arith.constant 96 : index
      %75 = memref.load %arg1[%c96] : memref<260xf32, #tpu.memory_space<smem>>
      %76 = vector.broadcast %75 : f32 to vector<8x256xf32>
      %77 = arith.addf %74, %76 : vector<8x256xf32>
      %cst_10 = arith.constant 0.000000e+00 : f32
      %78 = vector.broadcast %cst_10 : f32 to vector<8x256xf32>
      %79 = arith.maximumf %77, %78 : vector<8x256xf32>
      %c128 = arith.constant 128 : index
      %80 = memref.load %arg1[%c128] : memref<260xf32, #tpu.memory_space<smem>>
      %81 = vector.broadcast %80 : f32 to vector<8x256xf32>
      %82 = arith.mulf %79, %81 : vector<8x256xf32>
      %83 = arith.addf %51, %82 : vector<8x256xf32>
      %c129 = arith.constant 129 : index
      %84 = memref.load %arg1[%c129] : memref<260xf32, #tpu.memory_space<smem>>
      %85 = vector.broadcast %84 : f32 to vector<8x256xf32>
      %86 = arith.mulf %79, %85 : vector<8x256xf32>
      %87 = arith.addf %55, %86 : vector<8x256xf32>
      %c130 = arith.constant 130 : index
      %88 = memref.load %arg1[%c130] : memref<260xf32, #tpu.memory_space<smem>>
      %89 = vector.broadcast %88 : f32 to vector<8x256xf32>
      %90 = arith.mulf %79, %89 : vector<8x256xf32>
      %91 = arith.addf %59, %90 : vector<8x256xf32>
      %c131 = arith.constant 131 : index
      %92 = memref.load %arg1[%c131] : memref<260xf32, #tpu.memory_space<smem>>
      %93 = vector.broadcast %92 : f32 to vector<8x256xf32>
      %94 = arith.mulf %79, %93 : vector<8x256xf32>
      %95 = arith.addf %63, %94 : vector<8x256xf32>
      %c1 = arith.constant 1 : index
      %96 = memref.load %arg1[%c1] : memref<260xf32, #tpu.memory_space<smem>>
      %97 = vector.broadcast %96 : f32 to vector<8x256xf32>
      %98 = arith.mulf %39, %97 : vector<8x256xf32>
      %c33 = arith.constant 33 : index
      %99 = memref.load %arg1[%c33] : memref<260xf32, #tpu.memory_space<smem>>
      %100 = vector.broadcast %99 : f32 to vector<8x256xf32>
      %101 = arith.mulf %43, %100 : vector<8x256xf32>
      %102 = arith.addf %98, %101 : vector<8x256xf32>
      %c65 = arith.constant 65 : index
      %103 = memref.load %arg1[%c65] : memref<260xf32, #tpu.memory_space<smem>>
      %104 = vector.broadcast %103 : f32 to vector<8x256xf32>
      %105 = arith.mulf %47, %104 : vector<8x256xf32>
      %106 = arith.addf %102, %105 : vector<8x256xf32>
      %c97 = arith.constant 97 : index
      %107 = memref.load %arg1[%c97] : memref<260xf32, #tpu.memory_space<smem>>
      %108 = vector.broadcast %107 : f32 to vector<8x256xf32>
      %109 = arith.addf %106, %108 : vector<8x256xf32>
      %cst_11 = arith.constant 0.000000e+00 : f32
      %110 = vector.broadcast %cst_11 : f32 to vector<8x256xf32>
      %111 = arith.maximumf %109, %110 : vector<8x256xf32>
      %c132 = arith.constant 132 : index
      %112 = memref.load %arg1[%c132] : memref<260xf32, #tpu.memory_space<smem>>
      %113 = vector.broadcast %112 : f32 to vector<8x256xf32>
      %114 = arith.mulf %111, %113 : vector<8x256xf32>
      %115 = arith.addf %83, %114 : vector<8x256xf32>
      %c133 = arith.constant 133 : index
      %116 = memref.load %arg1[%c133] : memref<260xf32, #tpu.memory_space<smem>>
      %117 = vector.broadcast %116 : f32 to vector<8x256xf32>
      %118 = arith.mulf %111, %117 : vector<8x256xf32>
      %119 = arith.addf %87, %118 : vector<8x256xf32>
      %c134 = arith.constant 134 : index
      %120 = memref.load %arg1[%c134] : memref<260xf32, #tpu.memory_space<smem>>
      %121 = vector.broadcast %120 : f32 to vector<8x256xf32>
      %122 = arith.mulf %111, %121 : vector<8x256xf32>
      %123 = arith.addf %91, %122 : vector<8x256xf32>
      %c135 = arith.constant 135 : index
      %124 = memref.load %arg1[%c135] : memref<260xf32, #tpu.memory_space<smem>>
      %125 = vector.broadcast %124 : f32 to vector<8x256xf32>
      %126 = arith.mulf %111, %125 : vector<8x256xf32>
      %127 = arith.addf %95, %126 : vector<8x256xf32>
      %c2 = arith.constant 2 : index
      %128 = memref.load %arg1[%c2] : memref<260xf32, #tpu.memory_space<smem>>
      %129 = vector.broadcast %128 : f32 to vector<8x256xf32>
      %130 = arith.mulf %39, %129 : vector<8x256xf32>
      %c34 = arith.constant 34 : index
      %131 = memref.load %arg1[%c34] : memref<260xf32, #tpu.memory_space<smem>>
      %132 = vector.broadcast %131 : f32 to vector<8x256xf32>
      %133 = arith.mulf %43, %132 : vector<8x256xf32>
      %134 = arith.addf %130, %133 : vector<8x256xf32>
      %c66 = arith.constant 66 : index
      %135 = memref.load %arg1[%c66] : memref<260xf32, #tpu.memory_space<smem>>
      %136 = vector.broadcast %135 : f32 to vector<8x256xf32>
      %137 = arith.mulf %47, %136 : vector<8x256xf32>
      %138 = arith.addf %134, %137 : vector<8x256xf32>
      %c98 = arith.constant 98 : index
      %139 = memref.load %arg1[%c98] : memref<260xf32, #tpu.memory_space<smem>>
      %140 = vector.broadcast %139 : f32 to vector<8x256xf32>
      %141 = arith.addf %138, %140 : vector<8x256xf32>
      %cst_12 = arith.constant 0.000000e+00 : f32
      %142 = vector.broadcast %cst_12 : f32 to vector<8x256xf32>
      %143 = arith.maximumf %141, %142 : vector<8x256xf32>
      %c136 = arith.constant 136 : index
      %144 = memref.load %arg1[%c136] : memref<260xf32, #tpu.memory_space<smem>>
      %145 = vector.broadcast %144 : f32 to vector<8x256xf32>
      %146 = arith.mulf %143, %145 : vector<8x256xf32>
      %147 = arith.addf %115, %146 : vector<8x256xf32>
      %c137 = arith.constant 137 : index
      %148 = memref.load %arg1[%c137] : memref<260xf32, #tpu.memory_space<smem>>
      %149 = vector.broadcast %148 : f32 to vector<8x256xf32>
      %150 = arith.mulf %143, %149 : vector<8x256xf32>
      %151 = arith.addf %119, %150 : vector<8x256xf32>
      %c138 = arith.constant 138 : index
      %152 = memref.load %arg1[%c138] : memref<260xf32, #tpu.memory_space<smem>>
      %153 = vector.broadcast %152 : f32 to vector<8x256xf32>
      %154 = arith.mulf %143, %153 : vector<8x256xf32>
      %155 = arith.addf %123, %154 : vector<8x256xf32>
      %c139 = arith.constant 139 : index
      %156 = memref.load %arg1[%c139] : memref<260xf32, #tpu.memory_space<smem>>
      %157 = vector.broadcast %156 : f32 to vector<8x256xf32>
      %158 = arith.mulf %143, %157 : vector<8x256xf32>
      %159 = arith.addf %127, %158 : vector<8x256xf32>
      %c3 = arith.constant 3 : index
      %160 = memref.load %arg1[%c3] : memref<260xf32, #tpu.memory_space<smem>>
      %161 = vector.broadcast %160 : f32 to vector<8x256xf32>
      %162 = arith.mulf %39, %161 : vector<8x256xf32>
      %c35 = arith.constant 35 : index
      %163 = memref.load %arg1[%c35] : memref<260xf32, #tpu.memory_space<smem>>
      %164 = vector.broadcast %163 : f32 to vector<8x256xf32>
      %165 = arith.mulf %43, %164 : vector<8x256xf32>
      %166 = arith.addf %162, %165 : vector<8x256xf32>
      %c67 = arith.constant 67 : index
      %167 = memref.load %arg1[%c67] : memref<260xf32, #tpu.memory_space<smem>>
      %168 = vector.broadcast %167 : f32 to vector<8x256xf32>
      %169 = arith.mulf %47, %168 : vector<8x256xf32>
      %170 = arith.addf %166, %169 : vector<8x256xf32>
      %c99 = arith.constant 99 : index
      %171 = memref.load %arg1[%c99] : memref<260xf32, #tpu.memory_space<smem>>
      %172 = vector.broadcast %171 : f32 to vector<8x256xf32>
      %173 = arith.addf %170, %172 : vector<8x256xf32>
      %cst_13 = arith.constant 0.000000e+00 : f32
      %174 = vector.broadcast %cst_13 : f32 to vector<8x256xf32>
      %175 = arith.maximumf %173, %174 : vector<8x256xf32>
      %c140 = arith.constant 140 : index
      %176 = memref.load %arg1[%c140] : memref<260xf32, #tpu.memory_space<smem>>
      %177 = vector.broadcast %176 : f32 to vector<8x256xf32>
      %178 = arith.mulf %175, %177 : vector<8x256xf32>
      %179 = arith.addf %147, %178 : vector<8x256xf32>
      %c141 = arith.constant 141 : index
      %180 = memref.load %arg1[%c141] : memref<260xf32, #tpu.memory_space<smem>>
      %181 = vector.broadcast %180 : f32 to vector<8x256xf32>
      %182 = arith.mulf %175, %181 : vector<8x256xf32>
      %183 = arith.addf %151, %182 : vector<8x256xf32>
      %c142 = arith.constant 142 : index
      %184 = memref.load %arg1[%c142] : memref<260xf32, #tpu.memory_space<smem>>
      %185 = vector.broadcast %184 : f32 to vector<8x256xf32>
      %186 = arith.mulf %175, %185 : vector<8x256xf32>
      %187 = arith.addf %155, %186 : vector<8x256xf32>
      %c143 = arith.constant 143 : index
      %188 = memref.load %arg1[%c143] : memref<260xf32, #tpu.memory_space<smem>>
      %189 = vector.broadcast %188 : f32 to vector<8x256xf32>
      %190 = arith.mulf %175, %189 : vector<8x256xf32>
      %191 = arith.addf %159, %190 : vector<8x256xf32>
      %c4 = arith.constant 4 : index
      %192 = memref.load %arg1[%c4] : memref<260xf32, #tpu.memory_space<smem>>
      %193 = vector.broadcast %192 : f32 to vector<8x256xf32>
      %194 = arith.mulf %39, %193 : vector<8x256xf32>
      %c36 = arith.constant 36 : index
      %195 = memref.load %arg1[%c36] : memref<260xf32, #tpu.memory_space<smem>>
      %196 = vector.broadcast %195 : f32 to vector<8x256xf32>
      %197 = arith.mulf %43, %196 : vector<8x256xf32>
      %198 = arith.addf %194, %197 : vector<8x256xf32>
      %c68 = arith.constant 68 : index
      %199 = memref.load %arg1[%c68] : memref<260xf32, #tpu.memory_space<smem>>
      %200 = vector.broadcast %199 : f32 to vector<8x256xf32>
      %201 = arith.mulf %47, %200 : vector<8x256xf32>
      %202 = arith.addf %198, %201 : vector<8x256xf32>
      %c100 = arith.constant 100 : index
      %203 = memref.load %arg1[%c100] : memref<260xf32, #tpu.memory_space<smem>>
      %204 = vector.broadcast %203 : f32 to vector<8x256xf32>
      %205 = arith.addf %202, %204 : vector<8x256xf32>
      %cst_14 = arith.constant 0.000000e+00 : f32
      %206 = vector.broadcast %cst_14 : f32 to vector<8x256xf32>
      %207 = arith.maximumf %205, %206 : vector<8x256xf32>
      %c144 = arith.constant 144 : index
      %208 = memref.load %arg1[%c144] : memref<260xf32, #tpu.memory_space<smem>>
      %209 = vector.broadcast %208 : f32 to vector<8x256xf32>
      %210 = arith.mulf %207, %209 : vector<8x256xf32>
      %211 = arith.addf %179, %210 : vector<8x256xf32>
      %c145 = arith.constant 145 : index
      %212 = memref.load %arg1[%c145] : memref<260xf32, #tpu.memory_space<smem>>
      %213 = vector.broadcast %212 : f32 to vector<8x256xf32>
      %214 = arith.mulf %207, %213 : vector<8x256xf32>
      %215 = arith.addf %183, %214 : vector<8x256xf32>
      %c146 = arith.constant 146 : index
      %216 = memref.load %arg1[%c146] : memref<260xf32, #tpu.memory_space<smem>>
      %217 = vector.broadcast %216 : f32 to vector<8x256xf32>
      %218 = arith.mulf %207, %217 : vector<8x256xf32>
      %219 = arith.addf %187, %218 : vector<8x256xf32>
      %c147 = arith.constant 147 : index
      %220 = memref.load %arg1[%c147] : memref<260xf32, #tpu.memory_space<smem>>
      %221 = vector.broadcast %220 : f32 to vector<8x256xf32>
      %222 = arith.mulf %207, %221 : vector<8x256xf32>
      %223 = arith.addf %191, %222 : vector<8x256xf32>
      %c5 = arith.constant 5 : index
      %224 = memref.load %arg1[%c5] : memref<260xf32, #tpu.memory_space<smem>>
      %225 = vector.broadcast %224 : f32 to vector<8x256xf32>
      %226 = arith.mulf %39, %225 : vector<8x256xf32>
      %c37 = arith.constant 37 : index
      %227 = memref.load %arg1[%c37] : memref<260xf32, #tpu.memory_space<smem>>
      %228 = vector.broadcast %227 : f32 to vector<8x256xf32>
      %229 = arith.mulf %43, %228 : vector<8x256xf32>
      %230 = arith.addf %226, %229 : vector<8x256xf32>
      %c69 = arith.constant 69 : index
      %231 = memref.load %arg1[%c69] : memref<260xf32, #tpu.memory_space<smem>>
      %232 = vector.broadcast %231 : f32 to vector<8x256xf32>
      %233 = arith.mulf %47, %232 : vector<8x256xf32>
      %234 = arith.addf %230, %233 : vector<8x256xf32>
      %c101 = arith.constant 101 : index
      %235 = memref.load %arg1[%c101] : memref<260xf32, #tpu.memory_space<smem>>
      %236 = vector.broadcast %235 : f32 to vector<8x256xf32>
      %237 = arith.addf %234, %236 : vector<8x256xf32>
      %cst_15 = arith.constant 0.000000e+00 : f32
      %238 = vector.broadcast %cst_15 : f32 to vector<8x256xf32>
      %239 = arith.maximumf %237, %238 : vector<8x256xf32>
      %c148 = arith.constant 148 : index
      %240 = memref.load %arg1[%c148] : memref<260xf32, #tpu.memory_space<smem>>
      %241 = vector.broadcast %240 : f32 to vector<8x256xf32>
      %242 = arith.mulf %239, %241 : vector<8x256xf32>
      %243 = arith.addf %211, %242 : vector<8x256xf32>
      %c149 = arith.constant 149 : index
      %244 = memref.load %arg1[%c149] : memref<260xf32, #tpu.memory_space<smem>>
      %245 = vector.broadcast %244 : f32 to vector<8x256xf32>
      %246 = arith.mulf %239, %245 : vector<8x256xf32>
      %247 = arith.addf %215, %246 : vector<8x256xf32>
      %c150 = arith.constant 150 : index
      %248 = memref.load %arg1[%c150] : memref<260xf32, #tpu.memory_space<smem>>
      %249 = vector.broadcast %248 : f32 to vector<8x256xf32>
      %250 = arith.mulf %239, %249 : vector<8x256xf32>
      %251 = arith.addf %219, %250 : vector<8x256xf32>
      %c151 = arith.constant 151 : index
      %252 = memref.load %arg1[%c151] : memref<260xf32, #tpu.memory_space<smem>>
      %253 = vector.broadcast %252 : f32 to vector<8x256xf32>
      %254 = arith.mulf %239, %253 : vector<8x256xf32>
      %255 = arith.addf %223, %254 : vector<8x256xf32>
      %c6 = arith.constant 6 : index
      %256 = memref.load %arg1[%c6] : memref<260xf32, #tpu.memory_space<smem>>
      %257 = vector.broadcast %256 : f32 to vector<8x256xf32>
      %258 = arith.mulf %39, %257 : vector<8x256xf32>
      %c38 = arith.constant 38 : index
      %259 = memref.load %arg1[%c38] : memref<260xf32, #tpu.memory_space<smem>>
      %260 = vector.broadcast %259 : f32 to vector<8x256xf32>
      %261 = arith.mulf %43, %260 : vector<8x256xf32>
      %262 = arith.addf %258, %261 : vector<8x256xf32>
      %c70 = arith.constant 70 : index
      %263 = memref.load %arg1[%c70] : memref<260xf32, #tpu.memory_space<smem>>
      %264 = vector.broadcast %263 : f32 to vector<8x256xf32>
      %265 = arith.mulf %47, %264 : vector<8x256xf32>
      %266 = arith.addf %262, %265 : vector<8x256xf32>
      %c102 = arith.constant 102 : index
      %267 = memref.load %arg1[%c102] : memref<260xf32, #tpu.memory_space<smem>>
      %268 = vector.broadcast %267 : f32 to vector<8x256xf32>
      %269 = arith.addf %266, %268 : vector<8x256xf32>
      %cst_16 = arith.constant 0.000000e+00 : f32
      %270 = vector.broadcast %cst_16 : f32 to vector<8x256xf32>
      %271 = arith.maximumf %269, %270 : vector<8x256xf32>
      %c152 = arith.constant 152 : index
      %272 = memref.load %arg1[%c152] : memref<260xf32, #tpu.memory_space<smem>>
      %273 = vector.broadcast %272 : f32 to vector<8x256xf32>
      %274 = arith.mulf %271, %273 : vector<8x256xf32>
      %275 = arith.addf %243, %274 : vector<8x256xf32>
      %c153 = arith.constant 153 : index
      %276 = memref.load %arg1[%c153] : memref<260xf32, #tpu.memory_space<smem>>
      %277 = vector.broadcast %276 : f32 to vector<8x256xf32>
      %278 = arith.mulf %271, %277 : vector<8x256xf32>
      %279 = arith.addf %247, %278 : vector<8x256xf32>
      %c154 = arith.constant 154 : index
      %280 = memref.load %arg1[%c154] : memref<260xf32, #tpu.memory_space<smem>>
      %281 = vector.broadcast %280 : f32 to vector<8x256xf32>
      %282 = arith.mulf %271, %281 : vector<8x256xf32>
      %283 = arith.addf %251, %282 : vector<8x256xf32>
      %c155 = arith.constant 155 : index
      %284 = memref.load %arg1[%c155] : memref<260xf32, #tpu.memory_space<smem>>
      %285 = vector.broadcast %284 : f32 to vector<8x256xf32>
      %286 = arith.mulf %271, %285 : vector<8x256xf32>
      %287 = arith.addf %255, %286 : vector<8x256xf32>
      %c7 = arith.constant 7 : index
      %288 = memref.load %arg1[%c7] : memref<260xf32, #tpu.memory_space<smem>>
      %289 = vector.broadcast %288 : f32 to vector<8x256xf32>
      %290 = arith.mulf %39, %289 : vector<8x256xf32>
      %c39 = arith.constant 39 : index
      %291 = memref.load %arg1[%c39] : memref<260xf32, #tpu.memory_space<smem>>
      %292 = vector.broadcast %291 : f32 to vector<8x256xf32>
      %293 = arith.mulf %43, %292 : vector<8x256xf32>
      %294 = arith.addf %290, %293 : vector<8x256xf32>
      %c71 = arith.constant 71 : index
      %295 = memref.load %arg1[%c71] : memref<260xf32, #tpu.memory_space<smem>>
      %296 = vector.broadcast %295 : f32 to vector<8x256xf32>
      %297 = arith.mulf %47, %296 : vector<8x256xf32>
      %298 = arith.addf %294, %297 : vector<8x256xf32>
      %c103 = arith.constant 103 : index
      %299 = memref.load %arg1[%c103] : memref<260xf32, #tpu.memory_space<smem>>
      %300 = vector.broadcast %299 : f32 to vector<8x256xf32>
      %301 = arith.addf %298, %300 : vector<8x256xf32>
      %cst_17 = arith.constant 0.000000e+00 : f32
      %302 = vector.broadcast %cst_17 : f32 to vector<8x256xf32>
      %303 = arith.maximumf %301, %302 : vector<8x256xf32>
      %c156 = arith.constant 156 : index
      %304 = memref.load %arg1[%c156] : memref<260xf32, #tpu.memory_space<smem>>
      %305 = vector.broadcast %304 : f32 to vector<8x256xf32>
      %306 = arith.mulf %303, %305 : vector<8x256xf32>
      %307 = arith.addf %275, %306 : vector<8x256xf32>
      %c157 = arith.constant 157 : index
      %308 = memref.load %arg1[%c157] : memref<260xf32, #tpu.memory_space<smem>>
      %309 = vector.broadcast %308 : f32 to vector<8x256xf32>
      %310 = arith.mulf %303, %309 : vector<8x256xf32>
      %311 = arith.addf %279, %310 : vector<8x256xf32>
      %c158 = arith.constant 158 : index
      %312 = memref.load %arg1[%c158] : memref<260xf32, #tpu.memory_space<smem>>
      %313 = vector.broadcast %312 : f32 to vector<8x256xf32>
      %314 = arith.mulf %303, %313 : vector<8x256xf32>
      %315 = arith.addf %283, %314 : vector<8x256xf32>
      %c159 = arith.constant 159 : index
      %316 = memref.load %arg1[%c159] : memref<260xf32, #tpu.memory_space<smem>>
      %317 = vector.broadcast %316 : f32 to vector<8x256xf32>
      %318 = arith.mulf %303, %317 : vector<8x256xf32>
      %319 = arith.addf %287, %318 : vector<8x256xf32>
      %c8 = arith.constant 8 : index
      %320 = memref.load %arg1[%c8] : memref<260xf32, #tpu.memory_space<smem>>
      %321 = vector.broadcast %320 : f32 to vector<8x256xf32>
      %322 = arith.mulf %39, %321 : vector<8x256xf32>
      %c40 = arith.constant 40 : index
      %323 = memref.load %arg1[%c40] : memref<260xf32, #tpu.memory_space<smem>>
      %324 = vector.broadcast %323 : f32 to vector<8x256xf32>
      %325 = arith.mulf %43, %324 : vector<8x256xf32>
      %326 = arith.addf %322, %325 : vector<8x256xf32>
      %c72 = arith.constant 72 : index
      %327 = memref.load %arg1[%c72] : memref<260xf32, #tpu.memory_space<smem>>
      %328 = vector.broadcast %327 : f32 to vector<8x256xf32>
      %329 = arith.mulf %47, %328 : vector<8x256xf32>
      %330 = arith.addf %326, %329 : vector<8x256xf32>
      %c104 = arith.constant 104 : index
      %331 = memref.load %arg1[%c104] : memref<260xf32, #tpu.memory_space<smem>>
      %332 = vector.broadcast %331 : f32 to vector<8x256xf32>
      %333 = arith.addf %330, %332 : vector<8x256xf32>
      %cst_18 = arith.constant 0.000000e+00 : f32
      %334 = vector.broadcast %cst_18 : f32 to vector<8x256xf32>
      %335 = arith.maximumf %333, %334 : vector<8x256xf32>
      %c160 = arith.constant 160 : index
      %336 = memref.load %arg1[%c160] : memref<260xf32, #tpu.memory_space<smem>>
      %337 = vector.broadcast %336 : f32 to vector<8x256xf32>
      %338 = arith.mulf %335, %337 : vector<8x256xf32>
      %339 = arith.addf %307, %338 : vector<8x256xf32>
      %c161 = arith.constant 161 : index
      %340 = memref.load %arg1[%c161] : memref<260xf32, #tpu.memory_space<smem>>
      %341 = vector.broadcast %340 : f32 to vector<8x256xf32>
      %342 = arith.mulf %335, %341 : vector<8x256xf32>
      %343 = arith.addf %311, %342 : vector<8x256xf32>
      %c162 = arith.constant 162 : index
      %344 = memref.load %arg1[%c162] : memref<260xf32, #tpu.memory_space<smem>>
      %345 = vector.broadcast %344 : f32 to vector<8x256xf32>
      %346 = arith.mulf %335, %345 : vector<8x256xf32>
      %347 = arith.addf %315, %346 : vector<8x256xf32>
      %c163 = arith.constant 163 : index
      %348 = memref.load %arg1[%c163] : memref<260xf32, #tpu.memory_space<smem>>
      %349 = vector.broadcast %348 : f32 to vector<8x256xf32>
      %350 = arith.mulf %335, %349 : vector<8x256xf32>
      %351 = arith.addf %319, %350 : vector<8x256xf32>
      %c9 = arith.constant 9 : index
      %352 = memref.load %arg1[%c9] : memref<260xf32, #tpu.memory_space<smem>>
      %353 = vector.broadcast %352 : f32 to vector<8x256xf32>
      %354 = arith.mulf %39, %353 : vector<8x256xf32>
      %c41 = arith.constant 41 : index
      %355 = memref.load %arg1[%c41] : memref<260xf32, #tpu.memory_space<smem>>
      %356 = vector.broadcast %355 : f32 to vector<8x256xf32>
      %357 = arith.mulf %43, %356 : vector<8x256xf32>
      %358 = arith.addf %354, %357 : vector<8x256xf32>
      %c73 = arith.constant 73 : index
      %359 = memref.load %arg1[%c73] : memref<260xf32, #tpu.memory_space<smem>>
      %360 = vector.broadcast %359 : f32 to vector<8x256xf32>
      %361 = arith.mulf %47, %360 : vector<8x256xf32>
      %362 = arith.addf %358, %361 : vector<8x256xf32>
      %c105 = arith.constant 105 : index
      %363 = memref.load %arg1[%c105] : memref<260xf32, #tpu.memory_space<smem>>
      %364 = vector.broadcast %363 : f32 to vector<8x256xf32>
      %365 = arith.addf %362, %364 : vector<8x256xf32>
      %cst_19 = arith.constant 0.000000e+00 : f32
      %366 = vector.broadcast %cst_19 : f32 to vector<8x256xf32>
      %367 = arith.maximumf %365, %366 : vector<8x256xf32>
      %c164 = arith.constant 164 : index
      %368 = memref.load %arg1[%c164] : memref<260xf32, #tpu.memory_space<smem>>
      %369 = vector.broadcast %368 : f32 to vector<8x256xf32>
      %370 = arith.mulf %367, %369 : vector<8x256xf32>
      %371 = arith.addf %339, %370 : vector<8x256xf32>
      %c165 = arith.constant 165 : index
      %372 = memref.load %arg1[%c165] : memref<260xf32, #tpu.memory_space<smem>>
      %373 = vector.broadcast %372 : f32 to vector<8x256xf32>
      %374 = arith.mulf %367, %373 : vector<8x256xf32>
      %375 = arith.addf %343, %374 : vector<8x256xf32>
      %c166 = arith.constant 166 : index
      %376 = memref.load %arg1[%c166] : memref<260xf32, #tpu.memory_space<smem>>
      %377 = vector.broadcast %376 : f32 to vector<8x256xf32>
      %378 = arith.mulf %367, %377 : vector<8x256xf32>
      %379 = arith.addf %347, %378 : vector<8x256xf32>
      %c167 = arith.constant 167 : index
      %380 = memref.load %arg1[%c167] : memref<260xf32, #tpu.memory_space<smem>>
      %381 = vector.broadcast %380 : f32 to vector<8x256xf32>
      %382 = arith.mulf %367, %381 : vector<8x256xf32>
      %383 = arith.addf %351, %382 : vector<8x256xf32>
      %c10 = arith.constant 10 : index
      %384 = memref.load %arg1[%c10] : memref<260xf32, #tpu.memory_space<smem>>
      %385 = vector.broadcast %384 : f32 to vector<8x256xf32>
      %386 = arith.mulf %39, %385 : vector<8x256xf32>
      %c42 = arith.constant 42 : index
      %387 = memref.load %arg1[%c42] : memref<260xf32, #tpu.memory_space<smem>>
      %388 = vector.broadcast %387 : f32 to vector<8x256xf32>
      %389 = arith.mulf %43, %388 : vector<8x256xf32>
      %390 = arith.addf %386, %389 : vector<8x256xf32>
      %c74 = arith.constant 74 : index
      %391 = memref.load %arg1[%c74] : memref<260xf32, #tpu.memory_space<smem>>
      %392 = vector.broadcast %391 : f32 to vector<8x256xf32>
      %393 = arith.mulf %47, %392 : vector<8x256xf32>
      %394 = arith.addf %390, %393 : vector<8x256xf32>
      %c106 = arith.constant 106 : index
      %395 = memref.load %arg1[%c106] : memref<260xf32, #tpu.memory_space<smem>>
      %396 = vector.broadcast %395 : f32 to vector<8x256xf32>
      %397 = arith.addf %394, %396 : vector<8x256xf32>
      %cst_20 = arith.constant 0.000000e+00 : f32
      %398 = vector.broadcast %cst_20 : f32 to vector<8x256xf32>
      %399 = arith.maximumf %397, %398 : vector<8x256xf32>
      %c168 = arith.constant 168 : index
      %400 = memref.load %arg1[%c168] : memref<260xf32, #tpu.memory_space<smem>>
      %401 = vector.broadcast %400 : f32 to vector<8x256xf32>
      %402 = arith.mulf %399, %401 : vector<8x256xf32>
      %403 = arith.addf %371, %402 : vector<8x256xf32>
      %c169 = arith.constant 169 : index
      %404 = memref.load %arg1[%c169] : memref<260xf32, #tpu.memory_space<smem>>
      %405 = vector.broadcast %404 : f32 to vector<8x256xf32>
      %406 = arith.mulf %399, %405 : vector<8x256xf32>
      %407 = arith.addf %375, %406 : vector<8x256xf32>
      %c170 = arith.constant 170 : index
      %408 = memref.load %arg1[%c170] : memref<260xf32, #tpu.memory_space<smem>>
      %409 = vector.broadcast %408 : f32 to vector<8x256xf32>
      %410 = arith.mulf %399, %409 : vector<8x256xf32>
      %411 = arith.addf %379, %410 : vector<8x256xf32>
      %c171 = arith.constant 171 : index
      %412 = memref.load %arg1[%c171] : memref<260xf32, #tpu.memory_space<smem>>
      %413 = vector.broadcast %412 : f32 to vector<8x256xf32>
      %414 = arith.mulf %399, %413 : vector<8x256xf32>
      %415 = arith.addf %383, %414 : vector<8x256xf32>
      %c11 = arith.constant 11 : index
      %416 = memref.load %arg1[%c11] : memref<260xf32, #tpu.memory_space<smem>>
      %417 = vector.broadcast %416 : f32 to vector<8x256xf32>
      %418 = arith.mulf %39, %417 : vector<8x256xf32>
      %c43 = arith.constant 43 : index
      %419 = memref.load %arg1[%c43] : memref<260xf32, #tpu.memory_space<smem>>
      %420 = vector.broadcast %419 : f32 to vector<8x256xf32>
      %421 = arith.mulf %43, %420 : vector<8x256xf32>
      %422 = arith.addf %418, %421 : vector<8x256xf32>
      %c75 = arith.constant 75 : index
      %423 = memref.load %arg1[%c75] : memref<260xf32, #tpu.memory_space<smem>>
      %424 = vector.broadcast %423 : f32 to vector<8x256xf32>
      %425 = arith.mulf %47, %424 : vector<8x256xf32>
      %426 = arith.addf %422, %425 : vector<8x256xf32>
      %c107 = arith.constant 107 : index
      %427 = memref.load %arg1[%c107] : memref<260xf32, #tpu.memory_space<smem>>
      %428 = vector.broadcast %427 : f32 to vector<8x256xf32>
      %429 = arith.addf %426, %428 : vector<8x256xf32>
      %cst_21 = arith.constant 0.000000e+00 : f32
      %430 = vector.broadcast %cst_21 : f32 to vector<8x256xf32>
      %431 = arith.maximumf %429, %430 : vector<8x256xf32>
      %c172 = arith.constant 172 : index
      %432 = memref.load %arg1[%c172] : memref<260xf32, #tpu.memory_space<smem>>
      %433 = vector.broadcast %432 : f32 to vector<8x256xf32>
      %434 = arith.mulf %431, %433 : vector<8x256xf32>
      %435 = arith.addf %403, %434 : vector<8x256xf32>
      %c173 = arith.constant 173 : index
      %436 = memref.load %arg1[%c173] : memref<260xf32, #tpu.memory_space<smem>>
      %437 = vector.broadcast %436 : f32 to vector<8x256xf32>
      %438 = arith.mulf %431, %437 : vector<8x256xf32>
      %439 = arith.addf %407, %438 : vector<8x256xf32>
      %c174 = arith.constant 174 : index
      %440 = memref.load %arg1[%c174] : memref<260xf32, #tpu.memory_space<smem>>
      %441 = vector.broadcast %440 : f32 to vector<8x256xf32>
      %442 = arith.mulf %431, %441 : vector<8x256xf32>
      %443 = arith.addf %411, %442 : vector<8x256xf32>
      %c175 = arith.constant 175 : index
      %444 = memref.load %arg1[%c175] : memref<260xf32, #tpu.memory_space<smem>>
      %445 = vector.broadcast %444 : f32 to vector<8x256xf32>
      %446 = arith.mulf %431, %445 : vector<8x256xf32>
      %447 = arith.addf %415, %446 : vector<8x256xf32>
      %c12 = arith.constant 12 : index
      %448 = memref.load %arg1[%c12] : memref<260xf32, #tpu.memory_space<smem>>
      %449 = vector.broadcast %448 : f32 to vector<8x256xf32>
      %450 = arith.mulf %39, %449 : vector<8x256xf32>
      %c44 = arith.constant 44 : index
      %451 = memref.load %arg1[%c44] : memref<260xf32, #tpu.memory_space<smem>>
      %452 = vector.broadcast %451 : f32 to vector<8x256xf32>
      %453 = arith.mulf %43, %452 : vector<8x256xf32>
      %454 = arith.addf %450, %453 : vector<8x256xf32>
      %c76 = arith.constant 76 : index
      %455 = memref.load %arg1[%c76] : memref<260xf32, #tpu.memory_space<smem>>
      %456 = vector.broadcast %455 : f32 to vector<8x256xf32>
      %457 = arith.mulf %47, %456 : vector<8x256xf32>
      %458 = arith.addf %454, %457 : vector<8x256xf32>
      %c108 = arith.constant 108 : index
      %459 = memref.load %arg1[%c108] : memref<260xf32, #tpu.memory_space<smem>>
      %460 = vector.broadcast %459 : f32 to vector<8x256xf32>
      %461 = arith.addf %458, %460 : vector<8x256xf32>
      %cst_22 = arith.constant 0.000000e+00 : f32
      %462 = vector.broadcast %cst_22 : f32 to vector<8x256xf32>
      %463 = arith.maximumf %461, %462 : vector<8x256xf32>
      %c176 = arith.constant 176 : index
      %464 = memref.load %arg1[%c176] : memref<260xf32, #tpu.memory_space<smem>>
      %465 = vector.broadcast %464 : f32 to vector<8x256xf32>
      %466 = arith.mulf %463, %465 : vector<8x256xf32>
      %467 = arith.addf %435, %466 : vector<8x256xf32>
      %c177 = arith.constant 177 : index
      %468 = memref.load %arg1[%c177] : memref<260xf32, #tpu.memory_space<smem>>
      %469 = vector.broadcast %468 : f32 to vector<8x256xf32>
      %470 = arith.mulf %463, %469 : vector<8x256xf32>
      %471 = arith.addf %439, %470 : vector<8x256xf32>
      %c178 = arith.constant 178 : index
      %472 = memref.load %arg1[%c178] : memref<260xf32, #tpu.memory_space<smem>>
      %473 = vector.broadcast %472 : f32 to vector<8x256xf32>
      %474 = arith.mulf %463, %473 : vector<8x256xf32>
      %475 = arith.addf %443, %474 : vector<8x256xf32>
      %c179 = arith.constant 179 : index
      %476 = memref.load %arg1[%c179] : memref<260xf32, #tpu.memory_space<smem>>
      %477 = vector.broadcast %476 : f32 to vector<8x256xf32>
      %478 = arith.mulf %463, %477 : vector<8x256xf32>
      %479 = arith.addf %447, %478 : vector<8x256xf32>
      %c13 = arith.constant 13 : index
      %480 = memref.load %arg1[%c13] : memref<260xf32, #tpu.memory_space<smem>>
      %481 = vector.broadcast %480 : f32 to vector<8x256xf32>
      %482 = arith.mulf %39, %481 : vector<8x256xf32>
      %c45 = arith.constant 45 : index
      %483 = memref.load %arg1[%c45] : memref<260xf32, #tpu.memory_space<smem>>
      %484 = vector.broadcast %483 : f32 to vector<8x256xf32>
      %485 = arith.mulf %43, %484 : vector<8x256xf32>
      %486 = arith.addf %482, %485 : vector<8x256xf32>
      %c77 = arith.constant 77 : index
      %487 = memref.load %arg1[%c77] : memref<260xf32, #tpu.memory_space<smem>>
      %488 = vector.broadcast %487 : f32 to vector<8x256xf32>
      %489 = arith.mulf %47, %488 : vector<8x256xf32>
      %490 = arith.addf %486, %489 : vector<8x256xf32>
      %c109 = arith.constant 109 : index
      %491 = memref.load %arg1[%c109] : memref<260xf32, #tpu.memory_space<smem>>
      %492 = vector.broadcast %491 : f32 to vector<8x256xf32>
      %493 = arith.addf %490, %492 : vector<8x256xf32>
      %cst_23 = arith.constant 0.000000e+00 : f32
      %494 = vector.broadcast %cst_23 : f32 to vector<8x256xf32>
      %495 = arith.maximumf %493, %494 : vector<8x256xf32>
      %c180 = arith.constant 180 : index
      %496 = memref.load %arg1[%c180] : memref<260xf32, #tpu.memory_space<smem>>
      %497 = vector.broadcast %496 : f32 to vector<8x256xf32>
      %498 = arith.mulf %495, %497 : vector<8x256xf32>
      %499 = arith.addf %467, %498 : vector<8x256xf32>
      %c181 = arith.constant 181 : index
      %500 = memref.load %arg1[%c181] : memref<260xf32, #tpu.memory_space<smem>>
      %501 = vector.broadcast %500 : f32 to vector<8x256xf32>
      %502 = arith.mulf %495, %501 : vector<8x256xf32>
      %503 = arith.addf %471, %502 : vector<8x256xf32>
      %c182 = arith.constant 182 : index
      %504 = memref.load %arg1[%c182] : memref<260xf32, #tpu.memory_space<smem>>
      %505 = vector.broadcast %504 : f32 to vector<8x256xf32>
      %506 = arith.mulf %495, %505 : vector<8x256xf32>
      %507 = arith.addf %475, %506 : vector<8x256xf32>
      %c183 = arith.constant 183 : index
      %508 = memref.load %arg1[%c183] : memref<260xf32, #tpu.memory_space<smem>>
      %509 = vector.broadcast %508 : f32 to vector<8x256xf32>
      %510 = arith.mulf %495, %509 : vector<8x256xf32>
      %511 = arith.addf %479, %510 : vector<8x256xf32>
      %c14 = arith.constant 14 : index
      %512 = memref.load %arg1[%c14] : memref<260xf32, #tpu.memory_space<smem>>
      %513 = vector.broadcast %512 : f32 to vector<8x256xf32>
      %514 = arith.mulf %39, %513 : vector<8x256xf32>
      %c46 = arith.constant 46 : index
      %515 = memref.load %arg1[%c46] : memref<260xf32, #tpu.memory_space<smem>>
      %516 = vector.broadcast %515 : f32 to vector<8x256xf32>
      %517 = arith.mulf %43, %516 : vector<8x256xf32>
      %518 = arith.addf %514, %517 : vector<8x256xf32>
      %c78 = arith.constant 78 : index
      %519 = memref.load %arg1[%c78] : memref<260xf32, #tpu.memory_space<smem>>
      %520 = vector.broadcast %519 : f32 to vector<8x256xf32>
      %521 = arith.mulf %47, %520 : vector<8x256xf32>
      %522 = arith.addf %518, %521 : vector<8x256xf32>
      %c110 = arith.constant 110 : index
      %523 = memref.load %arg1[%c110] : memref<260xf32, #tpu.memory_space<smem>>
      %524 = vector.broadcast %523 : f32 to vector<8x256xf32>
      %525 = arith.addf %522, %524 : vector<8x256xf32>
      %cst_24 = arith.constant 0.000000e+00 : f32
      %526 = vector.broadcast %cst_24 : f32 to vector<8x256xf32>
      %527 = arith.maximumf %525, %526 : vector<8x256xf32>
      %c184 = arith.constant 184 : index
      %528 = memref.load %arg1[%c184] : memref<260xf32, #tpu.memory_space<smem>>
      %529 = vector.broadcast %528 : f32 to vector<8x256xf32>
      %530 = arith.mulf %527, %529 : vector<8x256xf32>
      %531 = arith.addf %499, %530 : vector<8x256xf32>
      %c185 = arith.constant 185 : index
      %532 = memref.load %arg1[%c185] : memref<260xf32, #tpu.memory_space<smem>>
      %533 = vector.broadcast %532 : f32 to vector<8x256xf32>
      %534 = arith.mulf %527, %533 : vector<8x256xf32>
      %535 = arith.addf %503, %534 : vector<8x256xf32>
      %c186 = arith.constant 186 : index
      %536 = memref.load %arg1[%c186] : memref<260xf32, #tpu.memory_space<smem>>
      %537 = vector.broadcast %536 : f32 to vector<8x256xf32>
      %538 = arith.mulf %527, %537 : vector<8x256xf32>
      %539 = arith.addf %507, %538 : vector<8x256xf32>
      %c187 = arith.constant 187 : index
      %540 = memref.load %arg1[%c187] : memref<260xf32, #tpu.memory_space<smem>>
      %541 = vector.broadcast %540 : f32 to vector<8x256xf32>
      %542 = arith.mulf %527, %541 : vector<8x256xf32>
      %543 = arith.addf %511, %542 : vector<8x256xf32>
      %c15 = arith.constant 15 : index
      %544 = memref.load %arg1[%c15] : memref<260xf32, #tpu.memory_space<smem>>
      %545 = vector.broadcast %544 : f32 to vector<8x256xf32>
      %546 = arith.mulf %39, %545 : vector<8x256xf32>
      %c47 = arith.constant 47 : index
      %547 = memref.load %arg1[%c47] : memref<260xf32, #tpu.memory_space<smem>>
      %548 = vector.broadcast %547 : f32 to vector<8x256xf32>
      %549 = arith.mulf %43, %548 : vector<8x256xf32>
      %550 = arith.addf %546, %549 : vector<8x256xf32>
      %c79 = arith.constant 79 : index
      %551 = memref.load %arg1[%c79] : memref<260xf32, #tpu.memory_space<smem>>
      %552 = vector.broadcast %551 : f32 to vector<8x256xf32>
      %553 = arith.mulf %47, %552 : vector<8x256xf32>
      %554 = arith.addf %550, %553 : vector<8x256xf32>
      %c111 = arith.constant 111 : index
      %555 = memref.load %arg1[%c111] : memref<260xf32, #tpu.memory_space<smem>>
      %556 = vector.broadcast %555 : f32 to vector<8x256xf32>
      %557 = arith.addf %554, %556 : vector<8x256xf32>
      %cst_25 = arith.constant 0.000000e+00 : f32
      %558 = vector.broadcast %cst_25 : f32 to vector<8x256xf32>
      %559 = arith.maximumf %557, %558 : vector<8x256xf32>
      %c188 = arith.constant 188 : index
      %560 = memref.load %arg1[%c188] : memref<260xf32, #tpu.memory_space<smem>>
      %561 = vector.broadcast %560 : f32 to vector<8x256xf32>
      %562 = arith.mulf %559, %561 : vector<8x256xf32>
      %563 = arith.addf %531, %562 : vector<8x256xf32>
      %c189 = arith.constant 189 : index
      %564 = memref.load %arg1[%c189] : memref<260xf32, #tpu.memory_space<smem>>
      %565 = vector.broadcast %564 : f32 to vector<8x256xf32>
      %566 = arith.mulf %559, %565 : vector<8x256xf32>
      %567 = arith.addf %535, %566 : vector<8x256xf32>
      %c190 = arith.constant 190 : index
      %568 = memref.load %arg1[%c190] : memref<260xf32, #tpu.memory_space<smem>>
      %569 = vector.broadcast %568 : f32 to vector<8x256xf32>
      %570 = arith.mulf %559, %569 : vector<8x256xf32>
      %571 = arith.addf %539, %570 : vector<8x256xf32>
      %c191 = arith.constant 191 : index
      %572 = memref.load %arg1[%c191] : memref<260xf32, #tpu.memory_space<smem>>
      %573 = vector.broadcast %572 : f32 to vector<8x256xf32>
      %574 = arith.mulf %559, %573 : vector<8x256xf32>
      %575 = arith.addf %543, %574 : vector<8x256xf32>
      %c16 = arith.constant 16 : index
      %576 = memref.load %arg1[%c16] : memref<260xf32, #tpu.memory_space<smem>>
      %577 = vector.broadcast %576 : f32 to vector<8x256xf32>
      %578 = arith.mulf %39, %577 : vector<8x256xf32>
      %c48 = arith.constant 48 : index
      %579 = memref.load %arg1[%c48] : memref<260xf32, #tpu.memory_space<smem>>
      %580 = vector.broadcast %579 : f32 to vector<8x256xf32>
      %581 = arith.mulf %43, %580 : vector<8x256xf32>
      %582 = arith.addf %578, %581 : vector<8x256xf32>
      %c80 = arith.constant 80 : index
      %583 = memref.load %arg1[%c80] : memref<260xf32, #tpu.memory_space<smem>>
      %584 = vector.broadcast %583 : f32 to vector<8x256xf32>
      %585 = arith.mulf %47, %584 : vector<8x256xf32>
      %586 = arith.addf %582, %585 : vector<8x256xf32>
      %c112 = arith.constant 112 : index
      %587 = memref.load %arg1[%c112] : memref<260xf32, #tpu.memory_space<smem>>
      %588 = vector.broadcast %587 : f32 to vector<8x256xf32>
      %589 = arith.addf %586, %588 : vector<8x256xf32>
      %cst_26 = arith.constant 0.000000e+00 : f32
      %590 = vector.broadcast %cst_26 : f32 to vector<8x256xf32>
      %591 = arith.maximumf %589, %590 : vector<8x256xf32>
      %c192 = arith.constant 192 : index
      %592 = memref.load %arg1[%c192] : memref<260xf32, #tpu.memory_space<smem>>
      %593 = vector.broadcast %592 : f32 to vector<8x256xf32>
      %594 = arith.mulf %591, %593 : vector<8x256xf32>
      %595 = arith.addf %563, %594 : vector<8x256xf32>
      %c193 = arith.constant 193 : index
      %596 = memref.load %arg1[%c193] : memref<260xf32, #tpu.memory_space<smem>>
      %597 = vector.broadcast %596 : f32 to vector<8x256xf32>
      %598 = arith.mulf %591, %597 : vector<8x256xf32>
      %599 = arith.addf %567, %598 : vector<8x256xf32>
      %c194 = arith.constant 194 : index
      %600 = memref.load %arg1[%c194] : memref<260xf32, #tpu.memory_space<smem>>
      %601 = vector.broadcast %600 : f32 to vector<8x256xf32>
      %602 = arith.mulf %591, %601 : vector<8x256xf32>
      %603 = arith.addf %571, %602 : vector<8x256xf32>
      %c195 = arith.constant 195 : index
      %604 = memref.load %arg1[%c195] : memref<260xf32, #tpu.memory_space<smem>>
      %605 = vector.broadcast %604 : f32 to vector<8x256xf32>
      %606 = arith.mulf %591, %605 : vector<8x256xf32>
      %607 = arith.addf %575, %606 : vector<8x256xf32>
      %c17 = arith.constant 17 : index
      %608 = memref.load %arg1[%c17] : memref<260xf32, #tpu.memory_space<smem>>
      %609 = vector.broadcast %608 : f32 to vector<8x256xf32>
      %610 = arith.mulf %39, %609 : vector<8x256xf32>
      %c49 = arith.constant 49 : index
      %611 = memref.load %arg1[%c49] : memref<260xf32, #tpu.memory_space<smem>>
      %612 = vector.broadcast %611 : f32 to vector<8x256xf32>
      %613 = arith.mulf %43, %612 : vector<8x256xf32>
      %614 = arith.addf %610, %613 : vector<8x256xf32>
      %c81 = arith.constant 81 : index
      %615 = memref.load %arg1[%c81] : memref<260xf32, #tpu.memory_space<smem>>
      %616 = vector.broadcast %615 : f32 to vector<8x256xf32>
      %617 = arith.mulf %47, %616 : vector<8x256xf32>
      %618 = arith.addf %614, %617 : vector<8x256xf32>
      %c113 = arith.constant 113 : index
      %619 = memref.load %arg1[%c113] : memref<260xf32, #tpu.memory_space<smem>>
      %620 = vector.broadcast %619 : f32 to vector<8x256xf32>
      %621 = arith.addf %618, %620 : vector<8x256xf32>
      %cst_27 = arith.constant 0.000000e+00 : f32
      %622 = vector.broadcast %cst_27 : f32 to vector<8x256xf32>
      %623 = arith.maximumf %621, %622 : vector<8x256xf32>
      %c196 = arith.constant 196 : index
      %624 = memref.load %arg1[%c196] : memref<260xf32, #tpu.memory_space<smem>>
      %625 = vector.broadcast %624 : f32 to vector<8x256xf32>
      %626 = arith.mulf %623, %625 : vector<8x256xf32>
      %627 = arith.addf %595, %626 : vector<8x256xf32>
      %c197 = arith.constant 197 : index
      %628 = memref.load %arg1[%c197] : memref<260xf32, #tpu.memory_space<smem>>
      %629 = vector.broadcast %628 : f32 to vector<8x256xf32>
      %630 = arith.mulf %623, %629 : vector<8x256xf32>
      %631 = arith.addf %599, %630 : vector<8x256xf32>
      %c198 = arith.constant 198 : index
      %632 = memref.load %arg1[%c198] : memref<260xf32, #tpu.memory_space<smem>>
      %633 = vector.broadcast %632 : f32 to vector<8x256xf32>
      %634 = arith.mulf %623, %633 : vector<8x256xf32>
      %635 = arith.addf %603, %634 : vector<8x256xf32>
      %c199 = arith.constant 199 : index
      %636 = memref.load %arg1[%c199] : memref<260xf32, #tpu.memory_space<smem>>
      %637 = vector.broadcast %636 : f32 to vector<8x256xf32>
      %638 = arith.mulf %623, %637 : vector<8x256xf32>
      %639 = arith.addf %607, %638 : vector<8x256xf32>
      %c18 = arith.constant 18 : index
      %640 = memref.load %arg1[%c18] : memref<260xf32, #tpu.memory_space<smem>>
      %641 = vector.broadcast %640 : f32 to vector<8x256xf32>
      %642 = arith.mulf %39, %641 : vector<8x256xf32>
      %c50 = arith.constant 50 : index
      %643 = memref.load %arg1[%c50] : memref<260xf32, #tpu.memory_space<smem>>
      %644 = vector.broadcast %643 : f32 to vector<8x256xf32>
      %645 = arith.mulf %43, %644 : vector<8x256xf32>
      %646 = arith.addf %642, %645 : vector<8x256xf32>
      %c82 = arith.constant 82 : index
      %647 = memref.load %arg1[%c82] : memref<260xf32, #tpu.memory_space<smem>>
      %648 = vector.broadcast %647 : f32 to vector<8x256xf32>
      %649 = arith.mulf %47, %648 : vector<8x256xf32>
      %650 = arith.addf %646, %649 : vector<8x256xf32>
      %c114 = arith.constant 114 : index
      %651 = memref.load %arg1[%c114] : memref<260xf32, #tpu.memory_space<smem>>
      %652 = vector.broadcast %651 : f32 to vector<8x256xf32>
      %653 = arith.addf %650, %652 : vector<8x256xf32>
      %cst_28 = arith.constant 0.000000e+00 : f32
      %654 = vector.broadcast %cst_28 : f32 to vector<8x256xf32>
      %655 = arith.maximumf %653, %654 : vector<8x256xf32>
      %c200 = arith.constant 200 : index
      %656 = memref.load %arg1[%c200] : memref<260xf32, #tpu.memory_space<smem>>
      %657 = vector.broadcast %656 : f32 to vector<8x256xf32>
      %658 = arith.mulf %655, %657 : vector<8x256xf32>
      %659 = arith.addf %627, %658 : vector<8x256xf32>
      %c201 = arith.constant 201 : index
      %660 = memref.load %arg1[%c201] : memref<260xf32, #tpu.memory_space<smem>>
      %661 = vector.broadcast %660 : f32 to vector<8x256xf32>
      %662 = arith.mulf %655, %661 : vector<8x256xf32>
      %663 = arith.addf %631, %662 : vector<8x256xf32>
      %c202 = arith.constant 202 : index
      %664 = memref.load %arg1[%c202] : memref<260xf32, #tpu.memory_space<smem>>
      %665 = vector.broadcast %664 : f32 to vector<8x256xf32>
      %666 = arith.mulf %655, %665 : vector<8x256xf32>
      %667 = arith.addf %635, %666 : vector<8x256xf32>
      %c203 = arith.constant 203 : index
      %668 = memref.load %arg1[%c203] : memref<260xf32, #tpu.memory_space<smem>>
      %669 = vector.broadcast %668 : f32 to vector<8x256xf32>
      %670 = arith.mulf %655, %669 : vector<8x256xf32>
      %671 = arith.addf %639, %670 : vector<8x256xf32>
      %c19 = arith.constant 19 : index
      %672 = memref.load %arg1[%c19] : memref<260xf32, #tpu.memory_space<smem>>
      %673 = vector.broadcast %672 : f32 to vector<8x256xf32>
      %674 = arith.mulf %39, %673 : vector<8x256xf32>
      %c51 = arith.constant 51 : index
      %675 = memref.load %arg1[%c51] : memref<260xf32, #tpu.memory_space<smem>>
      %676 = vector.broadcast %675 : f32 to vector<8x256xf32>
      %677 = arith.mulf %43, %676 : vector<8x256xf32>
      %678 = arith.addf %674, %677 : vector<8x256xf32>
      %c83 = arith.constant 83 : index
      %679 = memref.load %arg1[%c83] : memref<260xf32, #tpu.memory_space<smem>>
      %680 = vector.broadcast %679 : f32 to vector<8x256xf32>
      %681 = arith.mulf %47, %680 : vector<8x256xf32>
      %682 = arith.addf %678, %681 : vector<8x256xf32>
      %c115 = arith.constant 115 : index
      %683 = memref.load %arg1[%c115] : memref<260xf32, #tpu.memory_space<smem>>
      %684 = vector.broadcast %683 : f32 to vector<8x256xf32>
      %685 = arith.addf %682, %684 : vector<8x256xf32>
      %cst_29 = arith.constant 0.000000e+00 : f32
      %686 = vector.broadcast %cst_29 : f32 to vector<8x256xf32>
      %687 = arith.maximumf %685, %686 : vector<8x256xf32>
      %c204 = arith.constant 204 : index
      %688 = memref.load %arg1[%c204] : memref<260xf32, #tpu.memory_space<smem>>
      %689 = vector.broadcast %688 : f32 to vector<8x256xf32>
      %690 = arith.mulf %687, %689 : vector<8x256xf32>
      %691 = arith.addf %659, %690 : vector<8x256xf32>
      %c205 = arith.constant 205 : index
      %692 = memref.load %arg1[%c205] : memref<260xf32, #tpu.memory_space<smem>>
      %693 = vector.broadcast %692 : f32 to vector<8x256xf32>
      %694 = arith.mulf %687, %693 : vector<8x256xf32>
      %695 = arith.addf %663, %694 : vector<8x256xf32>
      %c206 = arith.constant 206 : index
      %696 = memref.load %arg1[%c206] : memref<260xf32, #tpu.memory_space<smem>>
      %697 = vector.broadcast %696 : f32 to vector<8x256xf32>
      %698 = arith.mulf %687, %697 : vector<8x256xf32>
      %699 = arith.addf %667, %698 : vector<8x256xf32>
      %c207 = arith.constant 207 : index
      %700 = memref.load %arg1[%c207] : memref<260xf32, #tpu.memory_space<smem>>
      %701 = vector.broadcast %700 : f32 to vector<8x256xf32>
      %702 = arith.mulf %687, %701 : vector<8x256xf32>
      %703 = arith.addf %671, %702 : vector<8x256xf32>
      %c20 = arith.constant 20 : index
      %704 = memref.load %arg1[%c20] : memref<260xf32, #tpu.memory_space<smem>>
      %705 = vector.broadcast %704 : f32 to vector<8x256xf32>
      %706 = arith.mulf %39, %705 : vector<8x256xf32>
      %c52 = arith.constant 52 : index
      %707 = memref.load %arg1[%c52] : memref<260xf32, #tpu.memory_space<smem>>
      %708 = vector.broadcast %707 : f32 to vector<8x256xf32>
      %709 = arith.mulf %43, %708 : vector<8x256xf32>
      %710 = arith.addf %706, %709 : vector<8x256xf32>
      %c84 = arith.constant 84 : index
      %711 = memref.load %arg1[%c84] : memref<260xf32, #tpu.memory_space<smem>>
      %712 = vector.broadcast %711 : f32 to vector<8x256xf32>
      %713 = arith.mulf %47, %712 : vector<8x256xf32>
      %714 = arith.addf %710, %713 : vector<8x256xf32>
      %c116 = arith.constant 116 : index
      %715 = memref.load %arg1[%c116] : memref<260xf32, #tpu.memory_space<smem>>
      %716 = vector.broadcast %715 : f32 to vector<8x256xf32>
      %717 = arith.addf %714, %716 : vector<8x256xf32>
      %cst_30 = arith.constant 0.000000e+00 : f32
      %718 = vector.broadcast %cst_30 : f32 to vector<8x256xf32>
      %719 = arith.maximumf %717, %718 : vector<8x256xf32>
      %c208 = arith.constant 208 : index
      %720 = memref.load %arg1[%c208] : memref<260xf32, #tpu.memory_space<smem>>
      %721 = vector.broadcast %720 : f32 to vector<8x256xf32>
      %722 = arith.mulf %719, %721 : vector<8x256xf32>
      %723 = arith.addf %691, %722 : vector<8x256xf32>
      %c209 = arith.constant 209 : index
      %724 = memref.load %arg1[%c209] : memref<260xf32, #tpu.memory_space<smem>>
      %725 = vector.broadcast %724 : f32 to vector<8x256xf32>
      %726 = arith.mulf %719, %725 : vector<8x256xf32>
      %727 = arith.addf %695, %726 : vector<8x256xf32>
      %c210 = arith.constant 210 : index
      %728 = memref.load %arg1[%c210] : memref<260xf32, #tpu.memory_space<smem>>
      %729 = vector.broadcast %728 : f32 to vector<8x256xf32>
      %730 = arith.mulf %719, %729 : vector<8x256xf32>
      %731 = arith.addf %699, %730 : vector<8x256xf32>
      %c211 = arith.constant 211 : index
      %732 = memref.load %arg1[%c211] : memref<260xf32, #tpu.memory_space<smem>>
      %733 = vector.broadcast %732 : f32 to vector<8x256xf32>
      %734 = arith.mulf %719, %733 : vector<8x256xf32>
      %735 = arith.addf %703, %734 : vector<8x256xf32>
      %c21 = arith.constant 21 : index
      %736 = memref.load %arg1[%c21] : memref<260xf32, #tpu.memory_space<smem>>
      %737 = vector.broadcast %736 : f32 to vector<8x256xf32>
      %738 = arith.mulf %39, %737 : vector<8x256xf32>
      %c53 = arith.constant 53 : index
      %739 = memref.load %arg1[%c53] : memref<260xf32, #tpu.memory_space<smem>>
      %740 = vector.broadcast %739 : f32 to vector<8x256xf32>
      %741 = arith.mulf %43, %740 : vector<8x256xf32>
      %742 = arith.addf %738, %741 : vector<8x256xf32>
      %c85 = arith.constant 85 : index
      %743 = memref.load %arg1[%c85] : memref<260xf32, #tpu.memory_space<smem>>
      %744 = vector.broadcast %743 : f32 to vector<8x256xf32>
      %745 = arith.mulf %47, %744 : vector<8x256xf32>
      %746 = arith.addf %742, %745 : vector<8x256xf32>
      %c117 = arith.constant 117 : index
      %747 = memref.load %arg1[%c117] : memref<260xf32, #tpu.memory_space<smem>>
      %748 = vector.broadcast %747 : f32 to vector<8x256xf32>
      %749 = arith.addf %746, %748 : vector<8x256xf32>
      %cst_31 = arith.constant 0.000000e+00 : f32
      %750 = vector.broadcast %cst_31 : f32 to vector<8x256xf32>
      %751 = arith.maximumf %749, %750 : vector<8x256xf32>
      %c212 = arith.constant 212 : index
      %752 = memref.load %arg1[%c212] : memref<260xf32, #tpu.memory_space<smem>>
      %753 = vector.broadcast %752 : f32 to vector<8x256xf32>
      %754 = arith.mulf %751, %753 : vector<8x256xf32>
      %755 = arith.addf %723, %754 : vector<8x256xf32>
      %c213 = arith.constant 213 : index
      %756 = memref.load %arg1[%c213] : memref<260xf32, #tpu.memory_space<smem>>
      %757 = vector.broadcast %756 : f32 to vector<8x256xf32>
      %758 = arith.mulf %751, %757 : vector<8x256xf32>
      %759 = arith.addf %727, %758 : vector<8x256xf32>
      %c214 = arith.constant 214 : index
      %760 = memref.load %arg1[%c214] : memref<260xf32, #tpu.memory_space<smem>>
      %761 = vector.broadcast %760 : f32 to vector<8x256xf32>
      %762 = arith.mulf %751, %761 : vector<8x256xf32>
      %763 = arith.addf %731, %762 : vector<8x256xf32>
      %c215 = arith.constant 215 : index
      %764 = memref.load %arg1[%c215] : memref<260xf32, #tpu.memory_space<smem>>
      %765 = vector.broadcast %764 : f32 to vector<8x256xf32>
      %766 = arith.mulf %751, %765 : vector<8x256xf32>
      %767 = arith.addf %735, %766 : vector<8x256xf32>
      %c22 = arith.constant 22 : index
      %768 = memref.load %arg1[%c22] : memref<260xf32, #tpu.memory_space<smem>>
      %769 = vector.broadcast %768 : f32 to vector<8x256xf32>
      %770 = arith.mulf %39, %769 : vector<8x256xf32>
      %c54 = arith.constant 54 : index
      %771 = memref.load %arg1[%c54] : memref<260xf32, #tpu.memory_space<smem>>
      %772 = vector.broadcast %771 : f32 to vector<8x256xf32>
      %773 = arith.mulf %43, %772 : vector<8x256xf32>
      %774 = arith.addf %770, %773 : vector<8x256xf32>
      %c86 = arith.constant 86 : index
      %775 = memref.load %arg1[%c86] : memref<260xf32, #tpu.memory_space<smem>>
      %776 = vector.broadcast %775 : f32 to vector<8x256xf32>
      %777 = arith.mulf %47, %776 : vector<8x256xf32>
      %778 = arith.addf %774, %777 : vector<8x256xf32>
      %c118 = arith.constant 118 : index
      %779 = memref.load %arg1[%c118] : memref<260xf32, #tpu.memory_space<smem>>
      %780 = vector.broadcast %779 : f32 to vector<8x256xf32>
      %781 = arith.addf %778, %780 : vector<8x256xf32>
      %cst_32 = arith.constant 0.000000e+00 : f32
      %782 = vector.broadcast %cst_32 : f32 to vector<8x256xf32>
      %783 = arith.maximumf %781, %782 : vector<8x256xf32>
      %c216 = arith.constant 216 : index
      %784 = memref.load %arg1[%c216] : memref<260xf32, #tpu.memory_space<smem>>
      %785 = vector.broadcast %784 : f32 to vector<8x256xf32>
      %786 = arith.mulf %783, %785 : vector<8x256xf32>
      %787 = arith.addf %755, %786 : vector<8x256xf32>
      %c217 = arith.constant 217 : index
      %788 = memref.load %arg1[%c217] : memref<260xf32, #tpu.memory_space<smem>>
      %789 = vector.broadcast %788 : f32 to vector<8x256xf32>
      %790 = arith.mulf %783, %789 : vector<8x256xf32>
      %791 = arith.addf %759, %790 : vector<8x256xf32>
      %c218 = arith.constant 218 : index
      %792 = memref.load %arg1[%c218] : memref<260xf32, #tpu.memory_space<smem>>
      %793 = vector.broadcast %792 : f32 to vector<8x256xf32>
      %794 = arith.mulf %783, %793 : vector<8x256xf32>
      %795 = arith.addf %763, %794 : vector<8x256xf32>
      %c219 = arith.constant 219 : index
      %796 = memref.load %arg1[%c219] : memref<260xf32, #tpu.memory_space<smem>>
      %797 = vector.broadcast %796 : f32 to vector<8x256xf32>
      %798 = arith.mulf %783, %797 : vector<8x256xf32>
      %799 = arith.addf %767, %798 : vector<8x256xf32>
      %c23 = arith.constant 23 : index
      %800 = memref.load %arg1[%c23] : memref<260xf32, #tpu.memory_space<smem>>
      %801 = vector.broadcast %800 : f32 to vector<8x256xf32>
      %802 = arith.mulf %39, %801 : vector<8x256xf32>
      %c55 = arith.constant 55 : index
      %803 = memref.load %arg1[%c55] : memref<260xf32, #tpu.memory_space<smem>>
      %804 = vector.broadcast %803 : f32 to vector<8x256xf32>
      %805 = arith.mulf %43, %804 : vector<8x256xf32>
      %806 = arith.addf %802, %805 : vector<8x256xf32>
      %c87 = arith.constant 87 : index
      %807 = memref.load %arg1[%c87] : memref<260xf32, #tpu.memory_space<smem>>
      %808 = vector.broadcast %807 : f32 to vector<8x256xf32>
      %809 = arith.mulf %47, %808 : vector<8x256xf32>
      %810 = arith.addf %806, %809 : vector<8x256xf32>
      %c119 = arith.constant 119 : index
      %811 = memref.load %arg1[%c119] : memref<260xf32, #tpu.memory_space<smem>>
      %812 = vector.broadcast %811 : f32 to vector<8x256xf32>
      %813 = arith.addf %810, %812 : vector<8x256xf32>
      %cst_33 = arith.constant 0.000000e+00 : f32
      %814 = vector.broadcast %cst_33 : f32 to vector<8x256xf32>
      %815 = arith.maximumf %813, %814 : vector<8x256xf32>
      %c220 = arith.constant 220 : index
      %816 = memref.load %arg1[%c220] : memref<260xf32, #tpu.memory_space<smem>>
      %817 = vector.broadcast %816 : f32 to vector<8x256xf32>
      %818 = arith.mulf %815, %817 : vector<8x256xf32>
      %819 = arith.addf %787, %818 : vector<8x256xf32>
      %c221 = arith.constant 221 : index
      %820 = memref.load %arg1[%c221] : memref<260xf32, #tpu.memory_space<smem>>
      %821 = vector.broadcast %820 : f32 to vector<8x256xf32>
      %822 = arith.mulf %815, %821 : vector<8x256xf32>
      %823 = arith.addf %791, %822 : vector<8x256xf32>
      %c222 = arith.constant 222 : index
      %824 = memref.load %arg1[%c222] : memref<260xf32, #tpu.memory_space<smem>>
      %825 = vector.broadcast %824 : f32 to vector<8x256xf32>
      %826 = arith.mulf %815, %825 : vector<8x256xf32>
      %827 = arith.addf %795, %826 : vector<8x256xf32>
      %c223 = arith.constant 223 : index
      %828 = memref.load %arg1[%c223] : memref<260xf32, #tpu.memory_space<smem>>
      %829 = vector.broadcast %828 : f32 to vector<8x256xf32>
      %830 = arith.mulf %815, %829 : vector<8x256xf32>
      %831 = arith.addf %799, %830 : vector<8x256xf32>
      %c24 = arith.constant 24 : index
      %832 = memref.load %arg1[%c24] : memref<260xf32, #tpu.memory_space<smem>>
      %833 = vector.broadcast %832 : f32 to vector<8x256xf32>
      %834 = arith.mulf %39, %833 : vector<8x256xf32>
      %c56 = arith.constant 56 : index
      %835 = memref.load %arg1[%c56] : memref<260xf32, #tpu.memory_space<smem>>
      %836 = vector.broadcast %835 : f32 to vector<8x256xf32>
      %837 = arith.mulf %43, %836 : vector<8x256xf32>
      %838 = arith.addf %834, %837 : vector<8x256xf32>
      %c88 = arith.constant 88 : index
      %839 = memref.load %arg1[%c88] : memref<260xf32, #tpu.memory_space<smem>>
      %840 = vector.broadcast %839 : f32 to vector<8x256xf32>
      %841 = arith.mulf %47, %840 : vector<8x256xf32>
      %842 = arith.addf %838, %841 : vector<8x256xf32>
      %c120 = arith.constant 120 : index
      %843 = memref.load %arg1[%c120] : memref<260xf32, #tpu.memory_space<smem>>
      %844 = vector.broadcast %843 : f32 to vector<8x256xf32>
      %845 = arith.addf %842, %844 : vector<8x256xf32>
      %cst_34 = arith.constant 0.000000e+00 : f32
      %846 = vector.broadcast %cst_34 : f32 to vector<8x256xf32>
      %847 = arith.maximumf %845, %846 : vector<8x256xf32>
      %c224 = arith.constant 224 : index
      %848 = memref.load %arg1[%c224] : memref<260xf32, #tpu.memory_space<smem>>
      %849 = vector.broadcast %848 : f32 to vector<8x256xf32>
      %850 = arith.mulf %847, %849 : vector<8x256xf32>
      %851 = arith.addf %819, %850 : vector<8x256xf32>
      %c225 = arith.constant 225 : index
      %852 = memref.load %arg1[%c225] : memref<260xf32, #tpu.memory_space<smem>>
      %853 = vector.broadcast %852 : f32 to vector<8x256xf32>
      %854 = arith.mulf %847, %853 : vector<8x256xf32>
      %855 = arith.addf %823, %854 : vector<8x256xf32>
      %c226 = arith.constant 226 : index
      %856 = memref.load %arg1[%c226] : memref<260xf32, #tpu.memory_space<smem>>
      %857 = vector.broadcast %856 : f32 to vector<8x256xf32>
      %858 = arith.mulf %847, %857 : vector<8x256xf32>
      %859 = arith.addf %827, %858 : vector<8x256xf32>
      %c227 = arith.constant 227 : index
      %860 = memref.load %arg1[%c227] : memref<260xf32, #tpu.memory_space<smem>>
      %861 = vector.broadcast %860 : f32 to vector<8x256xf32>
      %862 = arith.mulf %847, %861 : vector<8x256xf32>
      %863 = arith.addf %831, %862 : vector<8x256xf32>
      %c25 = arith.constant 25 : index
      %864 = memref.load %arg1[%c25] : memref<260xf32, #tpu.memory_space<smem>>
      %865 = vector.broadcast %864 : f32 to vector<8x256xf32>
      %866 = arith.mulf %39, %865 : vector<8x256xf32>
      %c57 = arith.constant 57 : index
      %867 = memref.load %arg1[%c57] : memref<260xf32, #tpu.memory_space<smem>>
      %868 = vector.broadcast %867 : f32 to vector<8x256xf32>
      %869 = arith.mulf %43, %868 : vector<8x256xf32>
      %870 = arith.addf %866, %869 : vector<8x256xf32>
      %c89 = arith.constant 89 : index
      %871 = memref.load %arg1[%c89] : memref<260xf32, #tpu.memory_space<smem>>
      %872 = vector.broadcast %871 : f32 to vector<8x256xf32>
      %873 = arith.mulf %47, %872 : vector<8x256xf32>
      %874 = arith.addf %870, %873 : vector<8x256xf32>
      %c121 = arith.constant 121 : index
      %875 = memref.load %arg1[%c121] : memref<260xf32, #tpu.memory_space<smem>>
      %876 = vector.broadcast %875 : f32 to vector<8x256xf32>
      %877 = arith.addf %874, %876 : vector<8x256xf32>
      %cst_35 = arith.constant 0.000000e+00 : f32
      %878 = vector.broadcast %cst_35 : f32 to vector<8x256xf32>
      %879 = arith.maximumf %877, %878 : vector<8x256xf32>
      %c228 = arith.constant 228 : index
      %880 = memref.load %arg1[%c228] : memref<260xf32, #tpu.memory_space<smem>>
      %881 = vector.broadcast %880 : f32 to vector<8x256xf32>
      %882 = arith.mulf %879, %881 : vector<8x256xf32>
      %883 = arith.addf %851, %882 : vector<8x256xf32>
      %c229 = arith.constant 229 : index
      %884 = memref.load %arg1[%c229] : memref<260xf32, #tpu.memory_space<smem>>
      %885 = vector.broadcast %884 : f32 to vector<8x256xf32>
      %886 = arith.mulf %879, %885 : vector<8x256xf32>
      %887 = arith.addf %855, %886 : vector<8x256xf32>
      %c230 = arith.constant 230 : index
      %888 = memref.load %arg1[%c230] : memref<260xf32, #tpu.memory_space<smem>>
      %889 = vector.broadcast %888 : f32 to vector<8x256xf32>
      %890 = arith.mulf %879, %889 : vector<8x256xf32>
      %891 = arith.addf %859, %890 : vector<8x256xf32>
      %c231 = arith.constant 231 : index
      %892 = memref.load %arg1[%c231] : memref<260xf32, #tpu.memory_space<smem>>
      %893 = vector.broadcast %892 : f32 to vector<8x256xf32>
      %894 = arith.mulf %879, %893 : vector<8x256xf32>
      %895 = arith.addf %863, %894 : vector<8x256xf32>
      %c26 = arith.constant 26 : index
      %896 = memref.load %arg1[%c26] : memref<260xf32, #tpu.memory_space<smem>>
      %897 = vector.broadcast %896 : f32 to vector<8x256xf32>
      %898 = arith.mulf %39, %897 : vector<8x256xf32>
      %c58 = arith.constant 58 : index
      %899 = memref.load %arg1[%c58] : memref<260xf32, #tpu.memory_space<smem>>
      %900 = vector.broadcast %899 : f32 to vector<8x256xf32>
      %901 = arith.mulf %43, %900 : vector<8x256xf32>
      %902 = arith.addf %898, %901 : vector<8x256xf32>
      %c90 = arith.constant 90 : index
      %903 = memref.load %arg1[%c90] : memref<260xf32, #tpu.memory_space<smem>>
      %904 = vector.broadcast %903 : f32 to vector<8x256xf32>
      %905 = arith.mulf %47, %904 : vector<8x256xf32>
      %906 = arith.addf %902, %905 : vector<8x256xf32>
      %c122 = arith.constant 122 : index
      %907 = memref.load %arg1[%c122] : memref<260xf32, #tpu.memory_space<smem>>
      %908 = vector.broadcast %907 : f32 to vector<8x256xf32>
      %909 = arith.addf %906, %908 : vector<8x256xf32>
      %cst_36 = arith.constant 0.000000e+00 : f32
      %910 = vector.broadcast %cst_36 : f32 to vector<8x256xf32>
      %911 = arith.maximumf %909, %910 : vector<8x256xf32>
      %c232 = arith.constant 232 : index
      %912 = memref.load %arg1[%c232] : memref<260xf32, #tpu.memory_space<smem>>
      %913 = vector.broadcast %912 : f32 to vector<8x256xf32>
      %914 = arith.mulf %911, %913 : vector<8x256xf32>
      %915 = arith.addf %883, %914 : vector<8x256xf32>
      %c233 = arith.constant 233 : index
      %916 = memref.load %arg1[%c233] : memref<260xf32, #tpu.memory_space<smem>>
      %917 = vector.broadcast %916 : f32 to vector<8x256xf32>
      %918 = arith.mulf %911, %917 : vector<8x256xf32>
      %919 = arith.addf %887, %918 : vector<8x256xf32>
      %c234 = arith.constant 234 : index
      %920 = memref.load %arg1[%c234] : memref<260xf32, #tpu.memory_space<smem>>
      %921 = vector.broadcast %920 : f32 to vector<8x256xf32>
      %922 = arith.mulf %911, %921 : vector<8x256xf32>
      %923 = arith.addf %891, %922 : vector<8x256xf32>
      %c235 = arith.constant 235 : index
      %924 = memref.load %arg1[%c235] : memref<260xf32, #tpu.memory_space<smem>>
      %925 = vector.broadcast %924 : f32 to vector<8x256xf32>
      %926 = arith.mulf %911, %925 : vector<8x256xf32>
      %927 = arith.addf %895, %926 : vector<8x256xf32>
      %c27 = arith.constant 27 : index
      %928 = memref.load %arg1[%c27] : memref<260xf32, #tpu.memory_space<smem>>
      %929 = vector.broadcast %928 : f32 to vector<8x256xf32>
      %930 = arith.mulf %39, %929 : vector<8x256xf32>
      %c59 = arith.constant 59 : index
      %931 = memref.load %arg1[%c59] : memref<260xf32, #tpu.memory_space<smem>>
      %932 = vector.broadcast %931 : f32 to vector<8x256xf32>
      %933 = arith.mulf %43, %932 : vector<8x256xf32>
      %934 = arith.addf %930, %933 : vector<8x256xf32>
      %c91 = arith.constant 91 : index
      %935 = memref.load %arg1[%c91] : memref<260xf32, #tpu.memory_space<smem>>
      %936 = vector.broadcast %935 : f32 to vector<8x256xf32>
      %937 = arith.mulf %47, %936 : vector<8x256xf32>
      %938 = arith.addf %934, %937 : vector<8x256xf32>
      %c123 = arith.constant 123 : index
      %939 = memref.load %arg1[%c123] : memref<260xf32, #tpu.memory_space<smem>>
      %940 = vector.broadcast %939 : f32 to vector<8x256xf32>
      %941 = arith.addf %938, %940 : vector<8x256xf32>
      %cst_37 = arith.constant 0.000000e+00 : f32
      %942 = vector.broadcast %cst_37 : f32 to vector<8x256xf32>
      %943 = arith.maximumf %941, %942 : vector<8x256xf32>
      %c236 = arith.constant 236 : index
      %944 = memref.load %arg1[%c236] : memref<260xf32, #tpu.memory_space<smem>>
      %945 = vector.broadcast %944 : f32 to vector<8x256xf32>
      %946 = arith.mulf %943, %945 : vector<8x256xf32>
      %947 = arith.addf %915, %946 : vector<8x256xf32>
      %c237 = arith.constant 237 : index
      %948 = memref.load %arg1[%c237] : memref<260xf32, #tpu.memory_space<smem>>
      %949 = vector.broadcast %948 : f32 to vector<8x256xf32>
      %950 = arith.mulf %943, %949 : vector<8x256xf32>
      %951 = arith.addf %919, %950 : vector<8x256xf32>
      %c238 = arith.constant 238 : index
      %952 = memref.load %arg1[%c238] : memref<260xf32, #tpu.memory_space<smem>>
      %953 = vector.broadcast %952 : f32 to vector<8x256xf32>
      %954 = arith.mulf %943, %953 : vector<8x256xf32>
      %955 = arith.addf %923, %954 : vector<8x256xf32>
      %c239 = arith.constant 239 : index
      %956 = memref.load %arg1[%c239] : memref<260xf32, #tpu.memory_space<smem>>
      %957 = vector.broadcast %956 : f32 to vector<8x256xf32>
      %958 = arith.mulf %943, %957 : vector<8x256xf32>
      %959 = arith.addf %927, %958 : vector<8x256xf32>
      %c28 = arith.constant 28 : index
      %960 = memref.load %arg1[%c28] : memref<260xf32, #tpu.memory_space<smem>>
      %961 = vector.broadcast %960 : f32 to vector<8x256xf32>
      %962 = arith.mulf %39, %961 : vector<8x256xf32>
      %c60 = arith.constant 60 : index
      %963 = memref.load %arg1[%c60] : memref<260xf32, #tpu.memory_space<smem>>
      %964 = vector.broadcast %963 : f32 to vector<8x256xf32>
      %965 = arith.mulf %43, %964 : vector<8x256xf32>
      %966 = arith.addf %962, %965 : vector<8x256xf32>
      %c92 = arith.constant 92 : index
      %967 = memref.load %arg1[%c92] : memref<260xf32, #tpu.memory_space<smem>>
      %968 = vector.broadcast %967 : f32 to vector<8x256xf32>
      %969 = arith.mulf %47, %968 : vector<8x256xf32>
      %970 = arith.addf %966, %969 : vector<8x256xf32>
      %c124 = arith.constant 124 : index
      %971 = memref.load %arg1[%c124] : memref<260xf32, #tpu.memory_space<smem>>
      %972 = vector.broadcast %971 : f32 to vector<8x256xf32>
      %973 = arith.addf %970, %972 : vector<8x256xf32>
      %cst_38 = arith.constant 0.000000e+00 : f32
      %974 = vector.broadcast %cst_38 : f32 to vector<8x256xf32>
      %975 = arith.maximumf %973, %974 : vector<8x256xf32>
      %c240 = arith.constant 240 : index
      %976 = memref.load %arg1[%c240] : memref<260xf32, #tpu.memory_space<smem>>
      %977 = vector.broadcast %976 : f32 to vector<8x256xf32>
      %978 = arith.mulf %975, %977 : vector<8x256xf32>
      %979 = arith.addf %947, %978 : vector<8x256xf32>
      %c241 = arith.constant 241 : index
      %980 = memref.load %arg1[%c241] : memref<260xf32, #tpu.memory_space<smem>>
      %981 = vector.broadcast %980 : f32 to vector<8x256xf32>
      %982 = arith.mulf %975, %981 : vector<8x256xf32>
      %983 = arith.addf %951, %982 : vector<8x256xf32>
      %c242 = arith.constant 242 : index
      %984 = memref.load %arg1[%c242] : memref<260xf32, #tpu.memory_space<smem>>
      %985 = vector.broadcast %984 : f32 to vector<8x256xf32>
      %986 = arith.mulf %975, %985 : vector<8x256xf32>
      %987 = arith.addf %955, %986 : vector<8x256xf32>
      %c243 = arith.constant 243 : index
      %988 = memref.load %arg1[%c243] : memref<260xf32, #tpu.memory_space<smem>>
      %989 = vector.broadcast %988 : f32 to vector<8x256xf32>
      %990 = arith.mulf %975, %989 : vector<8x256xf32>
      %991 = arith.addf %959, %990 : vector<8x256xf32>
      %c29 = arith.constant 29 : index
      %992 = memref.load %arg1[%c29] : memref<260xf32, #tpu.memory_space<smem>>
      %993 = vector.broadcast %992 : f32 to vector<8x256xf32>
      %994 = arith.mulf %39, %993 : vector<8x256xf32>
      %c61 = arith.constant 61 : index
      %995 = memref.load %arg1[%c61] : memref<260xf32, #tpu.memory_space<smem>>
      %996 = vector.broadcast %995 : f32 to vector<8x256xf32>
      %997 = arith.mulf %43, %996 : vector<8x256xf32>
      %998 = arith.addf %994, %997 : vector<8x256xf32>
      %c93 = arith.constant 93 : index
      %999 = memref.load %arg1[%c93] : memref<260xf32, #tpu.memory_space<smem>>
      %1000 = vector.broadcast %999 : f32 to vector<8x256xf32>
      %1001 = arith.mulf %47, %1000 : vector<8x256xf32>
      %1002 = arith.addf %998, %1001 : vector<8x256xf32>
      %c125 = arith.constant 125 : index
      %1003 = memref.load %arg1[%c125] : memref<260xf32, #tpu.memory_space<smem>>
      %1004 = vector.broadcast %1003 : f32 to vector<8x256xf32>
      %1005 = arith.addf %1002, %1004 : vector<8x256xf32>
      %cst_39 = arith.constant 0.000000e+00 : f32
      %1006 = vector.broadcast %cst_39 : f32 to vector<8x256xf32>
      %1007 = arith.maximumf %1005, %1006 : vector<8x256xf32>
      %c244 = arith.constant 244 : index
      %1008 = memref.load %arg1[%c244] : memref<260xf32, #tpu.memory_space<smem>>
      %1009 = vector.broadcast %1008 : f32 to vector<8x256xf32>
      %1010 = arith.mulf %1007, %1009 : vector<8x256xf32>
      %1011 = arith.addf %979, %1010 : vector<8x256xf32>
      %c245 = arith.constant 245 : index
      %1012 = memref.load %arg1[%c245] : memref<260xf32, #tpu.memory_space<smem>>
      %1013 = vector.broadcast %1012 : f32 to vector<8x256xf32>
      %1014 = arith.mulf %1007, %1013 : vector<8x256xf32>
      %1015 = arith.addf %983, %1014 : vector<8x256xf32>
      %c246 = arith.constant 246 : index
      %1016 = memref.load %arg1[%c246] : memref<260xf32, #tpu.memory_space<smem>>
      %1017 = vector.broadcast %1016 : f32 to vector<8x256xf32>
      %1018 = arith.mulf %1007, %1017 : vector<8x256xf32>
      %1019 = arith.addf %987, %1018 : vector<8x256xf32>
      %c247 = arith.constant 247 : index
      %1020 = memref.load %arg1[%c247] : memref<260xf32, #tpu.memory_space<smem>>
      %1021 = vector.broadcast %1020 : f32 to vector<8x256xf32>
      %1022 = arith.mulf %1007, %1021 : vector<8x256xf32>
      %1023 = arith.addf %991, %1022 : vector<8x256xf32>
      %c30 = arith.constant 30 : index
      %1024 = memref.load %arg1[%c30] : memref<260xf32, #tpu.memory_space<smem>>
      %1025 = vector.broadcast %1024 : f32 to vector<8x256xf32>
      %1026 = arith.mulf %39, %1025 : vector<8x256xf32>
      %c62 = arith.constant 62 : index
      %1027 = memref.load %arg1[%c62] : memref<260xf32, #tpu.memory_space<smem>>
      %1028 = vector.broadcast %1027 : f32 to vector<8x256xf32>
      %1029 = arith.mulf %43, %1028 : vector<8x256xf32>
      %1030 = arith.addf %1026, %1029 : vector<8x256xf32>
      %c94 = arith.constant 94 : index
      %1031 = memref.load %arg1[%c94] : memref<260xf32, #tpu.memory_space<smem>>
      %1032 = vector.broadcast %1031 : f32 to vector<8x256xf32>
      %1033 = arith.mulf %47, %1032 : vector<8x256xf32>
      %1034 = arith.addf %1030, %1033 : vector<8x256xf32>
      %c126 = arith.constant 126 : index
      %1035 = memref.load %arg1[%c126] : memref<260xf32, #tpu.memory_space<smem>>
      %1036 = vector.broadcast %1035 : f32 to vector<8x256xf32>
      %1037 = arith.addf %1034, %1036 : vector<8x256xf32>
      %cst_40 = arith.constant 0.000000e+00 : f32
      %1038 = vector.broadcast %cst_40 : f32 to vector<8x256xf32>
      %1039 = arith.maximumf %1037, %1038 : vector<8x256xf32>
      %c248 = arith.constant 248 : index
      %1040 = memref.load %arg1[%c248] : memref<260xf32, #tpu.memory_space<smem>>
      %1041 = vector.broadcast %1040 : f32 to vector<8x256xf32>
      %1042 = arith.mulf %1039, %1041 : vector<8x256xf32>
      %1043 = arith.addf %1011, %1042 : vector<8x256xf32>
      %c249 = arith.constant 249 : index
      %1044 = memref.load %arg1[%c249] : memref<260xf32, #tpu.memory_space<smem>>
      %1045 = vector.broadcast %1044 : f32 to vector<8x256xf32>
      %1046 = arith.mulf %1039, %1045 : vector<8x256xf32>
      %1047 = arith.addf %1015, %1046 : vector<8x256xf32>
      %c250 = arith.constant 250 : index
      %1048 = memref.load %arg1[%c250] : memref<260xf32, #tpu.memory_space<smem>>
      %1049 = vector.broadcast %1048 : f32 to vector<8x256xf32>
      %1050 = arith.mulf %1039, %1049 : vector<8x256xf32>
      %1051 = arith.addf %1019, %1050 : vector<8x256xf32>
      %c251 = arith.constant 251 : index
      %1052 = memref.load %arg1[%c251] : memref<260xf32, #tpu.memory_space<smem>>
      %1053 = vector.broadcast %1052 : f32 to vector<8x256xf32>
      %1054 = arith.mulf %1039, %1053 : vector<8x256xf32>
      %1055 = arith.addf %1023, %1054 : vector<8x256xf32>
      %c31 = arith.constant 31 : index
      %1056 = memref.load %arg1[%c31] : memref<260xf32, #tpu.memory_space<smem>>
      %1057 = vector.broadcast %1056 : f32 to vector<8x256xf32>
      %1058 = arith.mulf %39, %1057 : vector<8x256xf32>
      %c63 = arith.constant 63 : index
      %1059 = memref.load %arg1[%c63] : memref<260xf32, #tpu.memory_space<smem>>
      %1060 = vector.broadcast %1059 : f32 to vector<8x256xf32>
      %1061 = arith.mulf %43, %1060 : vector<8x256xf32>
      %1062 = arith.addf %1058, %1061 : vector<8x256xf32>
      %c95 = arith.constant 95 : index
      %1063 = memref.load %arg1[%c95] : memref<260xf32, #tpu.memory_space<smem>>
      %1064 = vector.broadcast %1063 : f32 to vector<8x256xf32>
      %1065 = arith.mulf %47, %1064 : vector<8x256xf32>
      %1066 = arith.addf %1062, %1065 : vector<8x256xf32>
      %c127 = arith.constant 127 : index
      %1067 = memref.load %arg1[%c127] : memref<260xf32, #tpu.memory_space<smem>>
      %1068 = vector.broadcast %1067 : f32 to vector<8x256xf32>
      %1069 = arith.addf %1066, %1068 : vector<8x256xf32>
      %cst_41 = arith.constant 0.000000e+00 : f32
      %1070 = vector.broadcast %cst_41 : f32 to vector<8x256xf32>
      %1071 = arith.maximumf %1069, %1070 : vector<8x256xf32>
      %c252 = arith.constant 252 : index
      %1072 = memref.load %arg1[%c252] : memref<260xf32, #tpu.memory_space<smem>>
      %1073 = vector.broadcast %1072 : f32 to vector<8x256xf32>
      %1074 = arith.mulf %1071, %1073 : vector<8x256xf32>
      %1075 = arith.addf %1043, %1074 : vector<8x256xf32>
      %c253 = arith.constant 253 : index
      %1076 = memref.load %arg1[%c253] : memref<260xf32, #tpu.memory_space<smem>>
      %1077 = vector.broadcast %1076 : f32 to vector<8x256xf32>
      %1078 = arith.mulf %1071, %1077 : vector<8x256xf32>
      %1079 = arith.addf %1047, %1078 : vector<8x256xf32>
      %c254 = arith.constant 254 : index
      %1080 = memref.load %arg1[%c254] : memref<260xf32, #tpu.memory_space<smem>>
      %1081 = vector.broadcast %1080 : f32 to vector<8x256xf32>
      %1082 = arith.mulf %1071, %1081 : vector<8x256xf32>
      %1083 = arith.addf %1051, %1082 : vector<8x256xf32>
      %c255 = arith.constant 255 : index
      %1084 = memref.load %arg1[%c255] : memref<260xf32, #tpu.memory_space<smem>>
      %1085 = vector.broadcast %1084 : f32 to vector<8x256xf32>
      %1086 = arith.mulf %1071, %1085 : vector<8x256xf32>
      %1087 = arith.addf %1055, %1086 : vector<8x256xf32>
      %cst_42 = arith.constant 0.000000e+00 : f32
      %1088 = vector.broadcast %cst_42 : f32 to vector<8x256xf32>
      %1089 = arith.maximumf %1075, %1088 : vector<8x256xf32>
      %cst_43 = arith.constant 0.000000e+00 : f32
      %1090 = vector.broadcast %cst_43 : f32 to vector<8x256xf32>
      %1091 = arith.subf %1090, %1079 : vector<8x256xf32>
      %1092 = math.exp %1091 : vector<8x256xf32>
      %cst_44 = arith.constant 1.000000e+00 : f32
      %1093 = vector.broadcast %cst_44 : f32 to vector<8x256xf32>
      %1094 = arith.addf %1093, %1092 : vector<8x256xf32>
      %1095 = tpu.reciprocal %1094 {approx = true} : vector<8x256xf32> -> vector<8x256xf32>
      %1096 = arith.mulf %1094, %1095 : vector<8x256xf32>
      %cst_45 = arith.constant 2.000000e+00 : f32
      %1097 = vector.broadcast %cst_45 : f32 to vector<8x256xf32>
      %1098 = arith.subf %1097, %1096 : vector<8x256xf32>
      %1099 = arith.mulf %1095, %1098 : vector<8x256xf32>
      %cst_46 = arith.constant 0.000000e+00 : f32
      %1100 = vector.broadcast %cst_46 : f32 to vector<8x256xf32>
      %1101 = arith.subf %1100, %1083 : vector<8x256xf32>
      %1102 = math.exp %1101 : vector<8x256xf32>
      %cst_47 = arith.constant 1.000000e+00 : f32
      %1103 = vector.broadcast %cst_47 : f32 to vector<8x256xf32>
      %1104 = arith.addf %1103, %1102 : vector<8x256xf32>
      %1105 = tpu.reciprocal %1104 {approx = true} : vector<8x256xf32> -> vector<8x256xf32>
      %1106 = arith.mulf %1104, %1105 : vector<8x256xf32>
      %cst_48 = arith.constant 2.000000e+00 : f32
      %1107 = vector.broadcast %cst_48 : f32 to vector<8x256xf32>
      %1108 = arith.subf %1107, %1106 : vector<8x256xf32>
      %1109 = arith.mulf %1105, %1108 : vector<8x256xf32>
      %cst_49 = arith.constant 0.000000e+00 : f32
      %1110 = vector.broadcast %cst_49 : f32 to vector<8x256xf32>
      %1111 = arith.subf %1110, %1087 : vector<8x256xf32>
      %1112 = math.exp %1111 : vector<8x256xf32>
      %cst_50 = arith.constant 1.000000e+00 : f32
      %1113 = vector.broadcast %cst_50 : f32 to vector<8x256xf32>
      %1114 = arith.addf %1113, %1112 : vector<8x256xf32>
      %1115 = tpu.reciprocal %1114 {approx = true} : vector<8x256xf32> -> vector<8x256xf32>
      %1116 = arith.mulf %1114, %1115 : vector<8x256xf32>
      %cst_51 = arith.constant 2.000000e+00 : f32
      %1117 = vector.broadcast %cst_51 : f32 to vector<8x256xf32>
      %1118 = arith.subf %1117, %1116 : vector<8x256xf32>
      %1119 = arith.mulf %1115, %1118 : vector<8x256xf32>
      %cst_52 = arith.constant 0.000000e+00 : f32
      %1120 = vector.broadcast %cst_52 : f32 to vector<1x256xf32>
      %1121 = arith.subf %1120, %35 : vector<1x256xf32>
      %1122 = vector.broadcast %1121 : vector<1x256xf32> to vector<8x256xf32>
      %1123 = arith.mulf %1122, %1089 : vector<8x256xf32>
      %1124 = math.exp %1123 : vector<8x256xf32>
      %cst_53 = arith.constant 1.000000e+00 : f32
      %1125 = vector.broadcast %cst_53 : f32 to vector<8x256xf32>
      %1126 = arith.subf %1125, %1124 : vector<8x256xf32>
      %1127 = arith.mulf %1126, %10 : vector<8x256xf32>
      %cst_54 = arith.constant 1.000000e+00 : f32
      %1128 = vector.broadcast %cst_54 : f32 to vector<8x256xf32>
      %1129 = arith.subf %1128, %1127 : vector<8x256xf32>
      %c1_i32_55 = arith.constant 1 : i32
      %1130 = vector.broadcast %c1_i32_55 : i32 to vector<8x256xi32>
      %1131 = arith.cmpi sge, %6, %1130 : vector<8x256xi32>
      %c1_i32_56 = arith.constant 1 : i32
      %1132 = tpu.dynamic_rotate %1129 by %c1_i32_56 dim 0 : vector<8x256xf32>, i32 -> vector<8x256xf32>
      %cst_57 = arith.constant 1.000000e+00 : f32
      %1133 = vector.broadcast %cst_57 : f32 to vector<8x256xf32>
      %1134 = arith.select %1131, %1132, %1133 : vector<8x256xi1>, vector<8x256xf32>
      %1135 = arith.mulf %1129, %1134 : vector<8x256xf32>
      %c2_i32_58 = arith.constant 2 : i32
      %1136 = vector.broadcast %c2_i32_58 : i32 to vector<8x256xi32>
      %1137 = arith.cmpi sge, %6, %1136 : vector<8x256xi32>
      %c2_i32_59 = arith.constant 2 : i32
      %1138 = tpu.dynamic_rotate %1135 by %c2_i32_59 dim 0 : vector<8x256xf32>, i32 -> vector<8x256xf32>
      %cst_60 = arith.constant 1.000000e+00 : f32
      %1139 = vector.broadcast %cst_60 : f32 to vector<8x256xf32>
      %1140 = arith.select %1137, %1138, %1139 : vector<8x256xi1>, vector<8x256xf32>
      %1141 = arith.mulf %1135, %1140 : vector<8x256xf32>
      %c4_i32 = arith.constant 4 : i32
      %1142 = vector.broadcast %c4_i32 : i32 to vector<8x256xi32>
      %1143 = arith.cmpi sge, %6, %1142 : vector<8x256xi32>
      %c4_i32_61 = arith.constant 4 : i32
      %1144 = tpu.dynamic_rotate %1141 by %c4_i32_61 dim 0 : vector<8x256xf32>, i32 -> vector<8x256xf32>
      %cst_62 = arith.constant 1.000000e+00 : f32
      %1145 = vector.broadcast %cst_62 : f32 to vector<8x256xf32>
      %1146 = arith.select %1143, %1144, %1145 : vector<8x256xi1>, vector<8x256xf32>
      %1147 = arith.mulf %1141, %1146 : vector<8x256xf32>
      %c1_i32_63 = arith.constant 1 : i32
      %1148 = vector.broadcast %c1_i32_63 : i32 to vector<8x256xi32>
      %1149 = arith.cmpi sge, %6, %1148 : vector<8x256xi32>
      %c1_i32_64 = arith.constant 1 : i32
      %1150 = tpu.dynamic_rotate %1147 by %c1_i32_64 dim 0 : vector<8x256xf32>, i32 -> vector<8x256xf32>
      %cst_65 = arith.constant 1.000000e+00 : f32
      %1151 = vector.broadcast %cst_65 : f32 to vector<8x256xf32>
      %1152 = arith.select %1149, %1150, %1151 : vector<8x256xi1>, vector<8x256xf32>
      %1153 = arith.mulf %1127, %1152 : vector<8x256xf32>
      %1154 = arith.mulf %1153, %1099 : vector<8x256xf32>
      %cst_66 = arith.constant dense<0.000000e+00> : vector<256xf32>
      %1155 = vector.multi_reduction <add>, %1154, %cst_66 [0] : vector<8x256xf32> to vector<256xf32>
      %1156 = vector.shape_cast %1155 : vector<256xf32> to vector<1x256xf32>
      %c0_67 = arith.constant 0 : index
      %1157 = arith.index_cast %15 : i32 to index
      %1158 = vector.load %arg3[%c0_67, %1157] : memref<4x512xf32, #tpu.memory_space<vmem>>, vector<1x256xf32>
      tpu.vector_store %arg3[%c0_67, %1157], %1156 {strides = array<i32>} : memref<4x512xf32, #tpu.memory_space<vmem>>, vector<1x256xf32>,
      %1159 = arith.mulf %1153, %1109 : vector<8x256xf32>
      %cst_68 = arith.constant dense<0.000000e+00> : vector<256xf32>
      %1160 = vector.multi_reduction <add>, %1159, %cst_68 [0] : vector<8x256xf32> to vector<256xf32>
      %1161 = vector.shape_cast %1160 : vector<256xf32> to vector<1x256xf32>
      %c1_69 = arith.constant 1 : index
      %1162 = arith.index_cast %15 : i32 to index
      %1163 = vector.load %arg3[%c1_69, %1162] : memref<4x512xf32, #tpu.memory_space<vmem>>, vector<1x256xf32>
      tpu.vector_store %arg3[%c1_69, %1162], %1161 {strides = array<i32>} : memref<4x512xf32, #tpu.memory_space<vmem>>, vector<1x256xf32>,
      %1164 = arith.mulf %1153, %1119 : vector<8x256xf32>
      %cst_70 = arith.constant dense<0.000000e+00> : vector<256xf32>
      %1165 = vector.multi_reduction <add>, %1164, %cst_70 [0] : vector<8x256xf32> to vector<256xf32>
      %1166 = vector.shape_cast %1165 : vector<256xf32> to vector<1x256xf32>
      %c2_71 = arith.constant 2 : index
      %1167 = arith.index_cast %15 : i32 to index
      %1168 = vector.load %arg3[%c2_71, %1167] : memref<4x512xf32, #tpu.memory_space<vmem>>, vector<1x256xf32>
      tpu.vector_store %arg3[%c2_71, %1167], %1166 {strides = array<i32>} : memref<4x512xf32, #tpu.memory_space<vmem>>, vector<1x256xf32>,
      %1169 = arith.mulf %1153, %32 : vector<8x256xf32>
      %cst_72 = arith.constant dense<0.000000e+00> : vector<256xf32>
      %1170 = vector.multi_reduction <add>, %1169, %cst_72 [0] : vector<8x256xf32> to vector<256xf32>
      %1171 = vector.shape_cast %1170 : vector<256xf32> to vector<1x256xf32>
      %c3_73 = arith.constant 3 : index
      %1172 = arith.index_cast %15 : i32 to index
      %1173 = vector.load %arg3[%c3_73, %1172] : memref<4x512xf32, #tpu.memory_space<vmem>>, vector<1x256xf32>
      tpu.vector_store %arg3[%c3_73, %1172], %1171 {strides = array<i32>} : memref<4x512xf32, #tpu.memory_space<vmem>>, vector<1x256xf32>,
    }
    %c2_i32_1 = arith.constant 2 : i32
    return
  }
  func.func @transform_0(%arg0: i32, %arg1: memref<260xf32, #tpu.memory_space<smem>>) -> (i32, i32) {
    %c0_i32 = arith.constant 0 : i32
    %c0_i32_0 = arith.constant 0 : i32
    return %c0_i32, %arg0 : i32, i32
  }
  func.func @transform_1(%arg0: i32, %arg1: memref<260xf32, #tpu.memory_space<smem>>) -> (i32, i32) {
    %c0_i32 = arith.constant 0 : i32
    %c0_i32_0 = arith.constant 0 : i32
    return %c0_i32, %arg0 : i32, i32
  }
}

</mosaic_0001>

<bundles_post_ra>
// kernel: tpu_custom_call.1
= control target key start
LH: loop header
LB: loop body
LE: loop exit
PB: predicated region body
PF: predicated region fallthrough
CT: control target
= control target key end

     0   :  { %s2550_s9 = smov [#allocation3]   ;;  %s3844_s0 = inlined_call_operand.hbm [shape: f32[260], index: 0, kind: input, shape index: {}]   ;;  %s3845_s1 = inlined_call_operand.hbm [shape: f32[8,1024], index: 1, kind: input, shape index: {}]   ;;  %s3846_s2 = inlined_call_operand.hbm [shape: f32[4,1024], index: 2, kind: output, shape index: {}]  }
   0x1   :  { %3849 = sst [smem:[#allocation13_spill]] %s3845_s1 }
   0x2   :  { %8 = dma.hbm_to_smem %s3844_s0, 48, %s2550_s9, [#allocation2] }
   0x3   :  { %2520 = dma.done.wait [#allocation2], 48 }
   0x4   :  { %2521 = vsyncadd [#allocation2], 4294967248 }
   0x5   :  { %10 = sfence }
   0x6   :  { %11 = vsyncpa [#allocation5], 0 }
   0x7   :  { %13 = vsyncpa [#allocation5 + $0x1], 0 }
   0x8   :  { %14 = vsyncpa [#allocation6], 0 }
   0x9   :  { %16 = vsyncpa [#allocation6 + $0x1], 0  ;;  %s2573_s12 = smov 0   ;;  %s2575_s13 = smov 0  }
   0xa   :  { %s2577_s14 = smov 0   ;;  %s2579_s15 = smov 0  }
   0xb LB: > { %s2594_s0 = sadd.s32 4294967295, %s2544_s15   ;;  %s2071_s16 = sadd.s32 4294967294, %s2544_s15   ;;  %s2544_s15 = sphi %s2579_s15, %s3869_s15   ;;  %s2540_s14 = sphi %s2577_s14, %s3868_s14   ;;  %s2536_s13 = sphi %s2575_s13, %s3867_s13   ;;  %s2532_s12 = sphi %s2573_s12, %s3866_s12  }
   0xc   : > { %s2598_s17 = sadd.s32 1, %s2544_s15   ;;  %s29_s18 = sadd.s32 1, %s2540_s14 }
   0xd   : > { %s26_s19 = ssub.s32 %s2544_s15, %s2598_s17  ;;  %p36_p0 = scmp.ne.s32.totalorder %s2540_s14, %s2536_s13 }
   0xe   : > { %p27_p1 = scmp.eq.s32.totalorder %s26_s19, 0  ;;  %p37_p2 = scmp.eq.s32.totalorder %s2544_s15, 0 }
   0xf   : > { %p42_p3 = scmp.ne.s32.totalorder %s2536_s13, %s2532_s12  ;;  %p43_p4 = scmp.eq.s32.totalorder %s2594_s0, 0 }
  0x10   : > { %s2610_s20 = scalar_select %p27_p1, %s2540_s14, %s29_s18  }
  0x11   : > { %p2612_p5 = por %p37_p2, %p36_p0  ;;  %p2616_p6 = por %p43_p4, %p42_p3 }
  0x12   : > { %3850 = sst [smem:[#allocation11_spill]] %s2610_s20  ;;  %p66_p7 = scmp.eq.s32.totalorder %s2594_s0, 1 }
  0x13   : > { %s3852_s22 = scalar_select %p2616_p6, 1, 0 }
  0x14   : > { %p72_p8 = scmp.eq.s32.totalorder %s2071_s16, 1  ;;  %p2365_p10 = scmp.lt.s32.totalorder %s2544_s15, 2 }
  0x15   : > { %p2623_p11 = por %p66_p7, %p36_p0  ;;  %s92_s25 = sand.u32 1, %s2540_s14  }
  0x16   : > { %p2627_p12 = por %p72_p8, %p42_p3  ;;  %s2351_s26 = sshll.u32 %s2544_s15, 9 }
  0x17   : > { %s3853_s23 = scalar_select %p2623_p11, 1, 0 }
  0x18   : > { %s3854_s24 = scalar_select %p2627_p12, 1, 0 }
  0x19   : > { %s2074_s27 = sshll.u32 %s92_s25, 5  ;;  %s3855_s1 = sld [smem:[#allocation13_spill]] }
  0x1a   : > { %s96_s3 = scalar_lea.vmem [#allocation4], %s2074_s27  ;;  %p2640_p13 = pnand %p2365_p10, %p2612_p5 }
  0x1b   : > { %s104_s4 = sshll.u32 %s96_s3, 4  ;;  %s93_s6 = scalar_lea.sflag [#allocation5], %s92_s25  ;;  %s2644_s4 = int_to_ptr.vmem [resolvable:$true] %s104_s4 }
  0x1c   : > { %p2448_p3 = pneg %p2640_p13 }
  0x1f   : > { %s2636_s30 = scalar_lea.hbm %s3855_s1, %s2351_s26  ;;  %s2451_s10 = scalar_lea.hbm %s3855_s1, 1024 }
  0x20   : > { %s2446_s7 = scalar_lea.hbm %s2636_s30, 512  ;;  %p2452_p5 = scmp.lt.s32.totalorder %s2636_s30, %s3855_s1 }
  0x21   : > { %p2447_p2 = scmp.ne.s32.totalorder %s2636_s30, %s2446_s7  ;;  %p2453_p8 = scmp.lt.s32.totalorder %s2451_s10, %s2446_s7 }
  0x23   : > { %p2449_p4 = pnand %p2448_p3, %p2447_p2  ;;  %p2454_p10 = por %p2453_p8, %p2452_p5 }
  0x25   : > { %p2450_p7 = pneg %p2449_p4 }
  0x27   : > { %p2455_p9 = pnand %p2454_p10, %p2450_p7 }
  0x29   : > { %2458 = shalt.err (!%p2455_p9)
}
  0x2a   : > { %s2459_s18 = scalar_lea.vmem %s2644_s4, 512  ;;  %s2551_s19 = smov [#allocation4]  }
  0x2b   : > { %p2460_p0 = scmp.ne.s32.totalorder %s2644_s4, %s2459_s18  ;;  %s2464_s21 = sshll.u32 %s2551_s19, 4  ;;  %s2465_s21 = int_to_ptr.vmem [resolvable:$false] %s2464_s21 }
  0x2c   : > { %s2466_s25 = scalar_lea.vmem %s2465_s21, 1024  ;;  %p2467_p4 = scmp.lt.s32.totalorder %s2644_s4, %s2465_s21 }
  0x2d   : > { %p2462_p1 = pnand %p2460_p0, %p2448_p3  ;;  %p2468_p12 = scmp.lt.s32.totalorder %s2466_s25, %s2459_s18 }
  0x2f   : > { %p2463_p2 = pneg %p2462_p1  ;;  %p2469_p11 = por %p2468_p12, %p2467_p4 }
  0x31   : > { %p2470_p6 = pnand %p2469_p11, %p2463_p2 }
  0x33   : > { %2473 = shalt.err (!%p2470_p6)
}
  0x34   : > { %2360 = dma.hbm_to_vmem [thread:$0]  (!%p2640_p13), %s2636_s30, 512, %s2644_s4, %s93_s6  }
  0x35   : > { %p3857_p9 = scmp.lt.s32.totalorder %s2544_s15, 3  ;;  %p3858_p7 = scmp.ge.s32.totalorder %s2544_s15, 1 }
  0x37   : > { %p110_p0 = pnand %p3858_p7, %p3857_p9 }
  0x39   : > { %113 = sbr.rel (%p110_p0) target bundleno = 485 (0x1e5), region = 24 }
  0x3e   : > { %s2671_s26 = sand.u32 1, %s2536_s13   ;;  %p3860_p6 = scmp.ne.s32.totalorder %s3852_s22, 0 }
  0x3f   : > { %s2078_s27 = sshll.u32 %s2671_s26, 5  ;;  %s116_s28 = scalar_lea.sflag [#allocation5], %s2671_s26 }
  0x40   : > { %s2675_s29 = scalar_lea.vmem [#allocation4], %s2078_s27 }
  0x41   : > { %3859 = sst [smem:[#allocation12_spill]] %s2675_s29 }
  0x42   : > { %2523 = dma.done.wait (%p3860_p6), %s116_s28, 512  }
  0x43   : > { %2525 = vsyncadd (%p3860_p6), %s116_s28, 4294966784  ;;  %s2079_s30 = sshll.u32 %s2671_s26, 4  ;;  %v140_v0 = vlaneseq  ;;  %v2552_v3 = vmov 0.0   ;;  %s2694_s22 = smov 0  }
  0x44   : > { %s2692_s3 = scalar_lea.vmem [#allocation7], %s2079_s30 }
  0x45   : > { %v2683_v1 = vshrl.u32 %v140_v0, 7 }
  0x47   : > { %v142_v2 = vcvt.s32.f32 %v2683_v1  ;;  %vm145_vm0 = vcmp.lt.s32.totalorder %v2683_v1, 7 }
  0x48   : > { %v2687_v4 = vsel %vm145_vm0, 1.0, %v2552_v3 }
  0x49   : > { %v2689_v5 = vmul.f32 0.14285715, %v142_v2 }
  0x4b   : > { %v144_v6 = vsub.f32 1.0, %v2689_v5 }
  0x4c LB: >> { %s3861_s29 = sld [smem:[#allocation12_spill]]  ;;  %s2081_s4 = sshll.u32 %s2548_s22, 8  ;;  %v163_v7 = vsub.s32 6, %v2683_v1  ;;  %v2704_v8 = vsub.s32 7, %v2683_v1  ;;  %v195_v9 = vsub.s32 3, %v2683_v1  ;;  %v205_v12 = vsub.s32 0, %v2683_v1  ;;  %s2548_s22 = sphi %s2694_s22, %s153_s22  }
  0x4d   : >> { %s2700_s5 = sshra.s32 %s2081_s4, 7  ;;  %s2708_s7 = sld [smem:[#allocation3 + $0x100]]  ;;  %v215_v13 = vsub.s32 4, %v2683_v1  ;;  %v225_v20 = vsub.s32 1, %v2683_v1  ;;  %v235_v27 = vsub.s32 5, %v2683_v1  ;;  %v245_v28 = vsub.s32 2, %v2683_v1 }
  0x4e   : >> { %s2082_s6 = sshll.u32 %s2700_s5, 3  ;;  %s2711_s9 = sld [smem:[#allocation3 + $0x101]]  ;;  %vm1809_vm1 = vcmp.ge.s32.totalorder %v2683_v1, 1  ;;  %vm1816_vm2 = vcmp.ge.s32.totalorder %v2683_v1, 2  ;;  %vm1823_vm3 = vcmp.ge.s32.totalorder %v2683_v1, 4  ;;  %vm1872_vm4 = vcmp.lt.s32.totalorder %v140_v0, 256 }
  0x4f   : >> { %s2719_s10 = sld [smem:[#allocation3 + $0x102]]  ;;  %s153_s22 = sadd.s32 1, %s2548_s22  }
  0x50   : >> { %s2727_s11 = sld [smem:[#allocation3]]  ;;  %p150_p11 = scmp.ge.s32.totalorder %s153_s22, 2  }
  0x51   : >> { %s2732_s16 = sld [smem:[#allocation3 + $0x20]]  ;;  %p3862_p13 = scmp.ne.s32.totalorder (%p150_p11), %s3853_s23, 0 }
  0x52   : >> { %s158_s8 = scalar_lea.vmem %s3861_s29, %s2082_s6  ;;  %s2740_s18 = sld [smem:[#allocation3 + $0x40]] }
  0x53   : >> { %v2713_v10 = vld [vmem:[%s158_s8] sm:$0xff]  ;;  %v2715_v11 = vld [vmem:[%s158_s8 + $0x8] sm:$0xff]  ;;  %s2746_s19 = sld [smem:[#allocation3 + $0x103]] }
  0x54   : >> { %v164_v14 = vrot.slane %v2713_v10, %v163_v7  ;;  %v168_v15 = vrot.slane %v2715_v11, %v163_v7  ;;  %v174_v16 = vrot.slane %v2713_v10, %v2704_v8  ;;  %v178_v17 = vrot.slane %v2715_v11, %v2704_v8  ;;  %s2754_s21 = sld [smem:[#allocation3 + $0x60]] }
  0x55   : >> { %v196_v18 = vrot.slane %v2713_v10, %v195_v9  ;;  %v200_v19 = vrot.slane %v2715_v11, %v195_v9  ;;  %v206_v25 = vrot.slane %v2713_v10, %v205_v12  ;;  %v210_v26 = vrot.slane %v2715_v11, %v205_v12  ;;  %s2758_s25 = sld [smem:[#allocation3 + $0x1]] }
  0x56   : >> { %v169_v21 = vmul.f32 %v164_v14, %v144_v6  ;;  %v170_v22 = vmul.f32 %v168_v15, %v144_v6  ;;  %v179_v23 = vmul.f32 %v174_v16, %v2689_v5  ;;  %v180_v24 = vmul.f32 %v178_v17, %v2689_v5  ;;  %s2764_s27 = sld [smem:[#allocation3 + $0x21]] }
  0x57   : >> { %v216_v31 = vrot.slane %v2713_v10, %v215_v13  ;;  %v220_v32 = vrot.slane %v2715_v11, %v215_v13  ;;  %v226_v33 = vrot.slane %v2713_v10, %v225_v20  ;;  %v230_v34 = vrot.slane %v2715_v11, %v225_v20  ;;  %s2770_s28 = sld [smem:[#allocation3 + $0x41]] }
  0x58   : >> { %v2748_v29 = vadd.f32 %v179_v23, %v169_v21  ;;  %v2750_v30 = vadd.f32 %v180_v24, %v170_v22  ;;  %v236_v39 = vrot.slane %v2713_v10, %v235_v27  ;;  %v240_v40 = vrot.slane %v2715_v11, %v235_v27  ;;  %s2780_s30 = sld [smem:[#allocation3 + $0x80]] }
  0x59   : >> { %v246_v41 = vrot.slane %v2713_v10, %v245_v28  ;;  %v250_v42 = vrot.slane %v2715_v11, %v245_v28  ;;  %v185_v47 = vrot.slane %v2713_v10, 7  ;;  %v186_v48 = vrot.slane %v2715_v11, 7  ;;  %s2786_s4 = sld [smem:[#allocation3 + $0x81]] }
  0x5a   : >> { %v201_v35 = vmul.f32 %v196_v18, %v2748_v29  ;;  %v202_v36 = vmul.f32 %v200_v19, %v2750_v30  ;;  %v221_v37 = vmul.f32 %v216_v31, %v2748_v29  ;;  %v222_v38 = vmul.f32 %v220_v32, %v2750_v30  ;;  %s2791_s6 = sld [smem:[#allocation3 + $0x82]] }
  0x5b   : >> { %v241_v49 = vmul.f32 %v236_v39, %v2748_v29  ;;  %v242_v50 = vmul.f32 %v240_v40, %v2750_v30  ;;  %v266_v51 = vstv %s2727_s11  ;;  %v270_v52 = vstv %s2732_s16  ;;  %s2799_s8 = sld [smem:[#allocation3 + $0x83]] }
  0x5c   : >> { %v2772_v43 = vadd.f32 %v206_v25, %v201_v35  ;;  %v2774_v44 = vadd.f32 %v210_v26, %v202_v36  ;;  %v2776_v45 = vadd.f32 %v226_v33, %v221_v37  ;;  %v2778_v46 = vadd.f32 %v230_v34, %v222_v38  ;;  %s2803_s11 = sld [smem:[#allocation3 + $0x61]] }
  0x5d   : >> { %v276_v53 = vstv %s2740_s18  ;;  %v2793_v54 = vadd.f32 %v246_v41, %v241_v49  ;;  %v2795_v55 = vadd.f32 %v250_v42, %v242_v50  ;;  %v189_v60 = vsub.f32 %v2713_v10, %v185_v47  ;;  %s2809_s16 = sld [smem:[#allocation3 + $0x84]] }
  0x5e   : >> { %v267_v56 = vmul.f32 %v266_v51, %v2772_v43  ;;  %v268_v57 = vmul.f32 %v266_v51, %v2774_v44  ;;  %v271_v58 = vmul.f32 %v270_v52, %v2776_v45  ;;  %v272_v59 = vmul.f32 %v270_v52, %v2778_v46  ;;  %s2813_s18 = sld [smem:[#allocation3 + $0x2]] }
  0x5f   : >> { %v190_v61 = vsub.f32 %v2715_v11, %v186_v48  ;;  %v277_v62 = vmul.f32 %v276_v53, %v2793_v54  ;;  %v278_v63 = vmul.f32 %v276_v53, %v2795_v55  ;;  %v282_v7 = vstv %s2754_s21  ;;  %s2819_s1 = sld [smem:[#allocation3 + $0x22]] }
  0x60   : >> { %v273_v2 = vadd.f32 %v271_v58, %v267_v56  ;;  %v274_v3 = vadd.f32 %v272_v59, %v268_v57  ;;  %v312_v9 = vstv %s2758_s25  ;;  %v316_v14 = vstv %s2764_s27  ;;  %s2823_s21 = sld [smem:[#allocation3 + $0x85]] }
  0x61   : >> { %v313_v12 = vmul.f32 %v312_v9, %v2772_v43  ;;  %v314_v13 = vmul.f32 %v312_v9, %v2774_v44  ;;  %v322_v10 = vstv %s2770_s28  ;;  %v317_v16 = vmul.f32 %v316_v14, %v2776_v45  ;;  %s2826_s25 = sld [smem:[#allocation3 + $0x42]] }
  0x62   : >> { %v279_v11 = vadd.f32 %v277_v62, %v273_v2  ;;  %v280_v15 = vadd.f32 %v278_v63, %v274_v3  ;;  %v318_v17 = vmul.f32 %v316_v14, %v2778_v46  ;;  %v323_v18 = vmul.f32 %v322_v10, %v2793_v54  ;;  %s2829_s27 = sld [smem:[#allocation3 + $0x86]] }
  0x63   : >> { %v319_v20 = vadd.f32 %v317_v16, %v313_v12  ;;  %v324_v22 = vmul.f32 %v322_v10, %v2795_v55  ;;  %v2831_v24 = vmul.f32 0.14285715, %v189_v60  ;;  %v2833_v25 = vmul.f32 0.14285715, %v190_v61  ;;  %s2836_s28 = sld [smem:[#allocation3 + $0x87]] }
  0x64   : >> { %v283_v19 = vadd.f32 %v282_v7, %v279_v11  ;;  %v320_v21 = vadd.f32 %v318_v17, %v314_v13  ;;  %v284_v23 = vadd.f32 %v282_v7, %v280_v15  ;;  %v254_v26 = vstv %s2708_s7  ;;  %s2841_s29 = sld [smem:[#allocation3 + $0x62]] }
  0x65   : >> { %v257_v27 = vstv %s2711_s9  ;;  %v260_v28 = vstv %s2719_s10  ;;  %v263_v31 = vstv %s2746_s19  ;;  %v288_v33 = vstv %s2780_s30  ;;  %s2845_s20 = sld [smem:[#allocation3 + $0x88]] }
  0x66   : >> { %v285_v32 = vmax.f32 %v283_v19, 0.0  ;;  %v325_v34 = vadd.f32 %v323_v18, %v319_v20  ;;  %v326_v35 = vadd.f32 %v324_v22, %v320_v21  ;;  %v358_v36 = vstv %s2813_s18  ;;  %s2850_s7 = sld [smem:[#allocation3 + $0x89]] }
  0x67   : >> { %v286_v37 = vmax.f32 %v284_v23, 0.0  ;;  %v294_v38 = vstv %s2786_s4  ;;  %v328_v39 = vstv %s2803_s11  ;;  %v362_v40 = vstv %s2819_s1  ;;  %s2856_s9 = sld [smem:[#allocation3 + $0x3]] }
  0x68   : >> { %v300_v41 = vstv %s2791_s6  ;;  %v306_v42 = vstv %s2799_s8  ;;  %v334_v47 = vstv %s2809_s16  ;;  %v340_v48 = vstv %s2823_s21  ;;  %s2861_s10 = sld [smem:[#allocation3 + $0x8a]] }
  0x69   : >> { %v289_v49 = vmul.f32 %v288_v33, %v285_v32  ;;  %v359_v50 = vmul.f32 %v358_v36, %v2772_v43  ;;  %v360_v51 = vmul.f32 %v358_v36, %v2774_v44  ;;  %v368_v52 = vstv %s2826_s25  ;;  %s2865_s1 = sld [smem:[#allocation3 + $0x23]] }
  0x6a   : >> { %v329_v53 = vadd.f32 %v328_v39, %v325_v34  ;;  %v330_v56 = vadd.f32 %v328_v39, %v326_v35  ;;  %v363_v57 = vmul.f32 %v362_v40, %v2776_v45  ;;  %v364_v58 = vmul.f32 %v362_v40, %v2778_v46  ;;  %s2868_s19 = sld [smem:[#allocation3 + $0x8b]] }
  0x6b   : >> { %v290_v59 = vmul.f32 %v288_v33, %v286_v37  ;;  %v295_v60 = vmul.f32 %v294_v38, %v285_v32  ;;  %v296_v61 = vmul.f32 %v294_v38, %v286_v37  ;;  %v301_v62 = vmul.f32 %v300_v41, %v285_v32  ;;  %s2873_s30 = sld [smem:[#allocation3 + $0x43]] }
  0x6c   : >> { %v302_v63 = vmul.f32 %v300_v41, %v286_v37  ;;  %v307_v2 = vmul.f32 %v306_v42, %v285_v32  ;;  %v308_v3 = vmul.f32 %v306_v42, %v286_v37  ;;  %v346_v7 = vstv %s2829_s27  ;;  %s2875_s4 = sld [smem:[#allocation3 + $0x63]] }
  0x6d   : >> { %v291_v9 = vadd.f32 %v289_v49, %v254_v26  ;;  %v352_v12 = vstv %s2836_s28  ;;  %v369_v13 = vmul.f32 %v368_v52, %v2793_v54  ;;  %v370_v14 = vmul.f32 %v368_v52, %v2795_v55  ;;  %s2877_s6 = sld [smem:[#allocation3 + $0x8c]] }
  0x6e   : >> { %v331_v10 = vmax.f32 %v329_v53, 0.0  ;;  %v332_v11 = vmax.f32 %v330_v56, 0.0  ;;  %v365_v15 = vadd.f32 %v363_v57, %v359_v50  ;;  %v366_v16 = vadd.f32 %v364_v58, %v360_v51  ;;  %s2880_s8 = sld [smem:[#allocation3 + $0x8d]] }
  0x6f   : >> { %v292_v17 = vadd.f32 %v290_v59, %v254_v26  ;;  %v297_v18 = vadd.f32 %v295_v60, %v257_v27  ;;  %v298_v19 = vadd.f32 %v296_v61, %v257_v27  ;;  %v303_v20 = vadd.f32 %v301_v62, %v260_v28  ;;  %s2886_s11 = sld [smem:[#allocation3 + $0x4]] }
  0x70   : >> { %v304_v21 = vadd.f32 %v302_v63, %v260_v28  ;;  %v309_v22 = vadd.f32 %v307_v2, %v263_v31  ;;  %v310_v23 = vadd.f32 %v308_v3, %v263_v31  ;;  %v404_v32 = vstv %s2856_s9  ;;  %s2888_s16 = sld [smem:[#allocation3 + $0x24]] }
  0x71   : >> { %v374_v33 = vstv %s2841_s29  ;;  %v380_v34 = vstv %s2845_s20  ;;  %v386_v35 = vstv %s2850_s7  ;;  %v392_v36 = vstv %s2861_s10  ;;  %s2892_s18 = sld [smem:[#allocation3 + $0x44]] }
  0x72   : >> { %v335_v37 = vmul.f32 %v334_v47, %v331_v10  ;;  %v336_v26 = vmul.f32 %v334_v47, %v332_v11  ;;  %v371_v27 = vadd.f32 %v369_v13, %v365_v15  ;;  %v372_v38 = vadd.f32 %v370_v14, %v366_v16  ;;  %s2899_s20 = sld [smem:[#allocation3 + $0x8e]] }
  0x73   : >> { %v341_v28 = vmul.f32 %v340_v48, %v331_v10  ;;  %v342_v31 = vmul.f32 %v340_v48, %v332_v11  ;;  %v405_v39 = vmul.f32 %v404_v32, %v2772_v43  ;;  %v408_v40 = vstv %s2865_s1  ;;  %s2903_s29 = sld [smem:[#allocation3 + $0x8f]] }
  0x74   : >> { %v375_v41 = vadd.f32 %v374_v33, %v371_v27  ;;  %v406_v42 = vmul.f32 %v404_v32, %v2774_v44  ;;  %v409_v49 = vmul.f32 %v408_v40, %v2776_v45  ;;  %v410_v47 = vmul.f32 %v408_v40, %v2778_v46  ;;  %s2906_s21 = sld [smem:[#allocation3 + $0x64]] }
  0x75   : >> { %v347_v50 = vmul.f32 %v346_v7, %v331_v10  ;;  %v348_v51 = vmul.f32 %v346_v7, %v332_v11  ;;  %v376_v52 = vadd.f32 %v374_v33, %v372_v38  ;;  %v414_v53 = vstv %s2873_s30  ;;  %s2910_s25 = sld [smem:[#allocation3 + $0x5]] }
  0x76   : >> { %v337_v56 = vadd.f32 %v335_v37, %v291_v9  ;;  %v353_v57 = vmul.f32 %v352_v12, %v331_v10  ;;  %v354_v48 = vmul.f32 %v352_v12, %v332_v11  ;;  %v398_v58 = vstv %s2868_s19  ;;  %s2915_s27 = sld [smem:[#allocation3 + $0x90]] }
  0x77   : >> { %v338_v59 = vadd.f32 %v336_v26, %v292_v17  ;;  %v343_v60 = vadd.f32 %v341_v28, %v297_v18  ;;  %v344_v61 = vadd.f32 %v342_v31, %v298_v19  ;;  %v377_v62 = vmax.f32 %v375_v41, 0.0  ;;  %s2919_s28 = sld [smem:[#allocation3 + $0x91]] }
  0x78   : >> { %v411_v63 = vadd.f32 %v409_v49, %v405_v39  ;;  %v412_v2 = vadd.f32 %v410_v47, %v406_v42  ;;  %v415_v3 = vmul.f32 %v414_v53, %v2793_v54  ;;  %v416_v7 = vmul.f32 %v414_v53, %v2795_v55  ;;  %s2923_s7 = sld [smem:[#allocation3 + $0x25]] }
  0x79   : >> { %v349_v9 = vadd.f32 %v347_v50, %v303_v20  ;;  %v350_v12 = vadd.f32 %v348_v51, %v304_v21  ;;  %v378_v13 = vmax.f32 %v376_v52, 0.0  ;;  %v450_v14 = vstv %s2886_s11  ;;  %s2927_s9 = sld [smem:[#allocation3 + $0x45]] }
  0x7a   : >> { %v355_v10 = vadd.f32 %v353_v57, %v309_v22  ;;  %v356_v11 = vadd.f32 %v354_v48, %v310_v23  ;;  %v420_v15 = vstv %s2875_s4  ;;  %v454_v16 = vstv %s2888_s16  ;;  %s2935_s1 = sld [smem:[#allocation3 + $0x92]] }
  0x7b   : >> { %v381_v17 = vmul.f32 %v380_v34, %v377_v62  ;;  %v426_v18 = vstv %s2877_s6  ;;  %v432_v19 = vstv %s2880_s8  ;;  %v460_v32 = vstv %s2892_s18  ;;  %s2937_s19 = sld [smem:[#allocation3 + $0x93]] }
  0x7c   : >> { %v417_v33 = vadd.f32 %v415_v3, %v411_v63  ;;  %v418_v20 = vadd.f32 %v416_v7, %v412_v2  ;;  %v451_v21 = vmul.f32 %v450_v14, %v2772_v43  ;;  %v452_v37 = vmul.f32 %v450_v14, %v2774_v44  ;;  %s2941_s10 = sld [smem:[#allocation3 + $0x65]] }
  0x7d   : >> { %v382_v22 = vmul.f32 %v380_v34, %v378_v13  ;;  %v387_v23 = vmul.f32 %v386_v35, %v377_v62  ;;  %v455_v26 = vmul.f32 %v454_v16, %v2776_v45  ;;  %v456_v27 = vmul.f32 %v454_v16, %v2778_v46  ;;  %s2944_s30 = sld [smem:[#allocation3 + $0x94]] }
  0x7e   : >> { %v388_v38 = vmul.f32 %v386_v35, %v378_v13  ;;  %v421_v28 = vadd.f32 %v420_v15, %v417_v33  ;;  %v461_v31 = vmul.f32 %v460_v32, %v2793_v54  ;;  %v462_v39 = vmul.f32 %v460_v32, %v2795_v55  ;;  %s2949_s4 = sld [smem:[#allocation3 + $0x6]] }
  0x7f   : >> { %v393_v40 = vmul.f32 %v392_v36, %v377_v62  ;;  %v422_v34 = vadd.f32 %v420_v15, %v418_v20  ;;  %v457_v41 = vadd.f32 %v455_v26, %v451_v21  ;;  %v458_v42 = vadd.f32 %v456_v27, %v452_v37  ;;  %s2953_s6 = sld [smem:[#allocation3 + $0x26]] }
  0x80   : >> { %v394_v49 = vmul.f32 %v392_v36, %v378_v13  ;;  %v399_v47 = vmul.f32 %v398_v58, %v377_v62  ;;  %v400_v50 = vmul.f32 %v398_v58, %v378_v13  ;;  %v438_v35 = vstv %s2899_s20  ;;  %s2957_s8 = sld [smem:[#allocation3 + $0x46]] }
  0x81   : >> { %v383_v51 = vadd.f32 %v381_v17, %v337_v56  ;;  %v384_v52 = vadd.f32 %v382_v22, %v338_v59  ;;  %v423_v53 = vmax.f32 %v421_v28, 0.0  ;;  %v444_v57 = vstv %s2903_s29  ;;  %s2959_s11 = sld [smem:[#allocation3 + $0x95]] }
  0x82   : >> { %v389_v48 = vadd.f32 %v387_v23, %v343_v60  ;;  %v463_v63 = vadd.f32 %v461_v31, %v457_v41  ;;  %v464_v2 = vadd.f32 %v462_v39, %v458_v42  ;;  %v496_v3 = vstv %s2910_s25  ;;  %s2963_s16 = sld [smem:[#allocation3 + $0x96]] }
  0x83   : >> { %v390_v7 = vadd.f32 %v388_v38, %v344_v61  ;;  %v395_v36 = vadd.f32 %v393_v40, %v349_v9  ;;  %v424_v62 = vmax.f32 %v422_v34, 0.0  ;;  %v466_v58 = vstv %s2906_s21  ;;  %s2966_s18 = sld [smem:[#allocation3 + $0x97]] }
  0x84   : >> { %v396_v56 = vadd.f32 %v394_v49, %v350_v12  ;;  %v401_v59 = vadd.f32 %v399_v47, %v355_v10  ;;  %v402_v13 = vadd.f32 %v400_v50, %v356_v11  ;;  %v472_v14 = vstv %s2915_s27  ;;  %s2969_s20 = sld [smem:[#allocation3 + $0x66]] }
  0x85   : >> { %v427_v60 = vmul.f32 %v426_v18, %v423_v53  ;;  %v478_v15 = vstv %s2919_s28  ;;  %v497_v16 = vmul.f32 %v496_v3, %v2772_v43  ;;  %v498_v17 = vmul.f32 %v496_v3, %v2774_v44  ;;  %s2971_s29 = sld [smem:[#allocation3 + $0x98]] }
  0x86   : >> { %v467_v61 = vadd.f32 %v466_v58, %v463_v63  ;;  %v468_v9 = vadd.f32 %v466_v58, %v464_v2  ;;  %v500_v32 = vstv %s2923_s7  ;;  %v506_v33 = vstv %s2927_s9  ;;  %s2975_s21 = sld [smem:[#allocation3 + $0x99]] }
  0x87   : >> { %v428_v12 = vmul.f32 %v426_v18, %v424_v62  ;;  %v433_v10 = vmul.f32 %v432_v19, %v423_v53  ;;  %v501_v11 = vmul.f32 %v500_v32, %v2776_v45  ;;  %v502_v20 = vmul.f32 %v500_v32, %v2778_v46  ;;  %s2978_s25 = sld [smem:[#allocation3 + $0x7]] }
  0x88   : >> { %v434_v21 = vmul.f32 %v432_v19, %v424_v62  ;;  %v439_v37 = vmul.f32 %v438_v35, %v423_v53  ;;  %v440_v22 = vmul.f32 %v438_v35, %v424_v62  ;;  %v445_v23 = vmul.f32 %v444_v57, %v423_v53  ;;  %s2984_s27 = sld [smem:[#allocation3 + $0x9a]] }
  0x89   : >> { %v446_v26 = vmul.f32 %v444_v57, %v424_v62  ;;  %v469_v27 = vmax.f32 %v467_v61, 0.0  ;;  %v484_v38 = vstv %s2935_s1  ;;  %v507_v28 = vmul.f32 %v506_v33, %v2793_v54  ;;  %s2988_s28 = sld [smem:[#allocation3 + $0x27]] }
  0x8a   : >> { %v470_v18 = vmax.f32 %v468_v9, 0.0  ;;  %v503_v31 = vadd.f32 %v501_v11, %v497_v16  ;;  %v504_v39 = vadd.f32 %v502_v20, %v498_v17  ;;  %v508_v19 = vmul.f32 %v506_v33, %v2795_v55  ;;  %s2992_s7 = sld [smem:[#allocation3 + $0x9b]] }
  0x8b   : >> { %v429_v40 = vadd.f32 %v427_v60, %v383_v51  ;;  %v430_v34 = vadd.f32 %v428_v12, %v384_v52  ;;  %v435_v41 = vadd.f32 %v433_v10, %v389_v48  ;;  %v490_v42 = vstv %s2937_s19  ;;  %s2996_s9 = sld [smem:[#allocation3 + $0x47]] }
  0x8c   : >> { %v436_v49 = vadd.f32 %v434_v21, %v390_v7  ;;  %v441_v47 = vadd.f32 %v439_v37, %v395_v36  ;;  %v442_v50 = vadd.f32 %v440_v22, %v396_v56  ;;  %v447_v35 = vadd.f32 %v445_v23, %v401_v59  ;;  %s2998_s1 = sld [smem:[#allocation3 + $0x67]] }
  0x8d   : >> { %v448_v53 = vadd.f32 %v446_v26, %v402_v13  ;;  %v473_v57 = vmul.f32 %v472_v14, %v469_v27  ;;  %v512_v63 = vstv %s2941_s10  ;;  %v518_v2 = vstv %s2944_s30  ;;  %s3000_s19 = sld [smem:[#allocation3 + $0x9c]] }
  0x8e   : >> { %v474_v51 = vmul.f32 %v472_v14, %v470_v18  ;;  %v509_v52 = vadd.f32 %v507_v28, %v503_v31  ;;  %v510_v48 = vadd.f32 %v508_v19, %v504_v39  ;;  %v542_v3 = vstv %s2949_s4  ;;  %s3004_s10 = sld [smem:[#allocation3 + $0x9d]] }
  0x8f   : >> { %v543_v7 = vmul.f32 %v542_v3, %v2772_v43  ;;  %v544_v36 = vmul.f32 %v542_v3, %v2774_v44  ;;  %v546_v62 = vstv %s2953_s6  ;;  %v552_v58 = vstv %s2957_s8  ;;  %s3010_s30 = sld [smem:[#allocation3 + $0x8]] }
  0x90   : >> { %v513_v56 = vadd.f32 %v512_v63, %v509_v52  ;;  %v514_v59 = vadd.f32 %v512_v63, %v510_v48  ;;  %v547_v13 = vmul.f32 %v546_v62, %v2776_v45  ;;  %v548_v14 = vmul.f32 %v546_v62, %v2778_v46  ;;  %s3012_s4 = sld [smem:[#allocation3 + $0x28]] }
  0x91   : >> { %v479_v60 = vmul.f32 %v478_v15, %v469_v27  ;;  %v480_v16 = vmul.f32 %v478_v15, %v470_v18  ;;  %v485_v17 = vmul.f32 %v484_v38, %v469_v27  ;;  %v486_v61 = vmul.f32 %v484_v38, %v470_v18  ;;  %s3016_s6 = sld [smem:[#allocation3 + $0x48]] }
  0x92   : >> { %v491_v9 = vmul.f32 %v490_v42, %v469_v27  ;;  %v492_v32 = vmul.f32 %v490_v42, %v470_v18  ;;  %v524_v33 = vstv %s2959_s11  ;;  %v530_v12 = vstv %s2963_s16  ;;  %s3023_s8 = sld [smem:[#allocation3 + $0x9e]] }
  0x93   : >> { %v475_v10 = vadd.f32 %v473_v57, %v429_v40  ;;  %v476_v11 = vadd.f32 %v474_v51, %v430_v34  ;;  %v553_v20 = vmul.f32 %v552_v58, %v2793_v54  ;;  %v554_v21 = vmul.f32 %v552_v58, %v2795_v55  ;;  %s3027_s11 = sld [smem:[#allocation3 + $0x9f]] }
  0x94   : >> { %v515_v15 = vmax.f32 %v513_v56, 0.0  ;;  %v516_v37 = vmax.f32 %v514_v59, 0.0  ;;  %v549_v22 = vadd.f32 %v547_v13, %v543_v7  ;;  %v550_v23 = vadd.f32 %v548_v14, %v544_v36  ;;  %s3030_s16 = sld [smem:[#allocation3 + $0x68]] }
  0x95   : >> { %v481_v26 = vadd.f32 %v479_v60, %v435_v41  ;;  %v482_v27 = vadd.f32 %v480_v16, %v436_v49  ;;  %v487_v38 = vadd.f32 %v485_v17, %v441_v47  ;;  %v488_v28 = vadd.f32 %v486_v61, %v442_v50 }
  0x96   : >> { %v493_v18 = vadd.f32 %v491_v9, %v447_v35  ;;  %v494_v31 = vadd.f32 %v492_v32, %v448_v53  ;;  %v536_v39 = vstv %s2966_s18  ;;  %v588_v19 = vstv %s2978_s25  ;;  %s3034_s18 = sld [smem:[#allocation3 + $0x9]] }
  0x97   : >> { %v558_v40 = vstv %s2969_s20  ;;  %v564_v34 = vstv %s2971_s29  ;;  %v570_v42 = vstv %s2975_s21  ;;  %v576_v57 = vstv %s2984_s27  ;;  %s3039_s20 = sld [smem:[#allocation3 + $0xa0]] }
  0x98   : >> { %v519_v63 = vmul.f32 %v518_v2, %v515_v15  ;;  %v520_v41 = vmul.f32 %v518_v2, %v516_v37  ;;  %v555_v49 = vadd.f32 %v553_v20, %v549_v22  ;;  %v556_v47 = vadd.f32 %v554_v21, %v550_v23  ;;  %s3043_s29 = sld [smem:[#allocation3 + $0xa1]] }
  0x99   : >> { %v525_v50 = vmul.f32 %v524_v33, %v515_v15  ;;  %v526_v35 = vmul.f32 %v524_v33, %v516_v37  ;;  %v589_v53 = vmul.f32 %v588_v19, %v2772_v43  ;;  %v592_v51 = vstv %s2988_s28  ;;  %s3047_s21 = sld [smem:[#allocation3 + $0x29]] }
  0x9a   : >> { %v559_v52 = vadd.f32 %v558_v40, %v555_v49  ;;  %v590_v48 = vmul.f32 %v588_v19, %v2774_v44  ;;  %v593_v3 = vmul.f32 %v592_v51, %v2776_v45  ;;  %v594_v2 = vmul.f32 %v592_v51, %v2778_v46  ;;  %s3051_s25 = sld [smem:[#allocation3 + $0x49]] }
  0x9b   : >> { %v531_v7 = vmul.f32 %v530_v12, %v515_v15  ;;  %v532_v36 = vmul.f32 %v530_v12, %v516_v37  ;;  %v560_v62 = vadd.f32 %v558_v40, %v556_v47  ;;  %v598_v58 = vstv %s2996_s9  ;;  %s3059_s28 = sld [smem:[#allocation3 + $0xa2]] }
  0x9c   : >> { %v521_v56 = vadd.f32 %v519_v63, %v475_v10  ;;  %v537_v59 = vmul.f32 %v536_v39, %v515_v15  ;;  %v538_v13 = vmul.f32 %v536_v39, %v516_v37  ;;  %v582_v14 = vstv %s2992_s7  ;;  %s3061_s7 = sld [smem:[#allocation3 + $0xa3]] }
  0x9d   : >> { %v522_v60 = vadd.f32 %v520_v41, %v476_v11  ;;  %v527_v16 = vadd.f32 %v525_v50, %v481_v26  ;;  %v528_v17 = vadd.f32 %v526_v35, %v482_v27  ;;  %v561_v61 = vmax.f32 %v559_v52, 0.0  ;;  %s3065_s27 = sld [smem:[#allocation3 + $0x69]] }
  0x9e   : >> { %v595_v9 = vadd.f32 %v593_v3, %v589_v53  ;;  %v596_v32 = vadd.f32 %v594_v2, %v590_v48  ;;  %v599_v33 = vmul.f32 %v598_v58, %v2793_v54  ;;  %v600_v12 = vmul.f32 %v598_v58, %v2795_v55  ;;  %s3068_s9 = sld [smem:[#allocation3 + $0xa4]] }
  0x9f   : >> { %v533_v10 = vadd.f32 %v531_v7, %v487_v38  ;;  %v534_v11 = vadd.f32 %v532_v36, %v488_v28  ;;  %v562_v20 = vmax.f32 %v560_v62, 0.0  ;;  %v634_v21 = vstv %s3010_s30  ;;  %s3083_s30 = sld [smem:[#allocation3 + $0xa5]] }
  0xa0   : >> { %v539_v15 = vadd.f32 %v537_v59, %v493_v18  ;;  %v540_v37 = vadd.f32 %v538_v13, %v494_v31  ;;  %v604_v22 = vstv %s2998_s1  ;;  %v638_v23 = vstv %s3012_s4  ;;  %s3073_s1 = sld [smem:[#allocation3 + $0xa]] }
  0xa1   : >> { %v565_v26 = vmul.f32 %v564_v34, %v561_v61  ;;  %v610_v27 = vstv %s3000_s19  ;;  %v616_v39 = vstv %s3004_s10  ;;  %v644_v19 = vstv %s3016_s6  ;;  %s3077_s19 = sld [smem:[#allocation3 + $0x2a]] }
  0xa2   : >> { %v601_v40 = vadd.f32 %v599_v33, %v595_v9  ;;  %v602_v38 = vadd.f32 %v600_v12, %v596_v32  ;;  %v635_v28 = vmul.f32 %v634_v21, %v2772_v43  ;;  %v636_v63 = vmul.f32 %v634_v21, %v2774_v44  ;;  %s3081_s10 = sld [smem:[#allocation3 + $0x4a]] }
  0xa3   : >> { %v566_v18 = vmul.f32 %v564_v34, %v562_v20  ;;  %v571_v31 = vmul.f32 %v570_v42, %v561_v61  ;;  %v639_v41 = vmul.f32 %v638_v23, %v2776_v45  ;;  %v640_v49 = vmul.f32 %v638_v23, %v2778_v46  ;;  %s3087_s4 = sld [smem:[#allocation3 + $0xa6]] }
  0xa4   : >> { %v572_v47 = vmul.f32 %v570_v42, %v562_v20  ;;  %v605_v50 = vadd.f32 %v604_v22, %v601_v40  ;;  %v645_v35 = vmul.f32 %v644_v19, %v2793_v54  ;;  %v646_v53 = vmul.f32 %v644_v19, %v2795_v55  ;;  %s3090_s6 = sld [smem:[#allocation3 + $0xa7]] }
  0xa5   : >> { %v577_v51 = vmul.f32 %v576_v57, %v561_v61  ;;  %v606_v34 = vadd.f32 %v604_v22, %v602_v38  ;;  %v641_v52 = vadd.f32 %v639_v41, %v635_v28  ;;  %v642_v48 = vadd.f32 %v640_v49, %v636_v63 }
  0xa6   : >> { %v578_v3 = vmul.f32 %v576_v57, %v562_v20  ;;  %v583_v2 = vmul.f32 %v582_v14, %v561_v61  ;;  %v584_v7 = vmul.f32 %v582_v14, %v562_v20  ;;  %v622_v42 = vstv %s3023_s8  ;;  %s3093_s8 = sld [smem:[#allocation3 + $0x6a]] }
  0xa7   : >> { %v567_v36 = vadd.f32 %v565_v26, %v521_v56  ;;  %v568_v62 = vadd.f32 %v566_v18, %v522_v60  ;;  %v607_v58 = vmax.f32 %v605_v50, 0.0  ;;  %v628_v59 = vstv %s3027_s11  ;;  %s3095_s11 = sld [smem:[#allocation3 + $0xa8]] }
  0xa8   : >> { %v573_v13 = vadd.f32 %v571_v31, %v527_v16  ;;  %v647_v9 = vadd.f32 %v645_v35, %v641_v52  ;;  %v648_v32 = vadd.f32 %v646_v53, %v642_v48  ;;  %v680_v33 = vstv %s3034_s18  ;;  %s3102_s18 = sld [smem:[#allocation3 + $0xb]] }
  0xa9   : >> { %v574_v12 = vadd.f32 %v572_v47, %v528_v17  ;;  %v579_v57 = vadd.f32 %v577_v51, %v533_v10  ;;  %v608_v61 = vmax.f32 %v606_v34, 0.0  ;;  %v650_v14 = vstv %s3030_s16  ;;  %s3099_s16 = sld [smem:[#allocation3 + $0xa9]] }
  0xaa   : >> { %v580_v56 = vadd.f32 %v578_v3, %v534_v11  ;;  %v585_v60 = vadd.f32 %v583_v2, %v539_v15  ;;  %v586_v20 = vadd.f32 %v584_v7, %v540_v37  ;;  %v656_v21 = vstv %s3039_s20  ;;  %s3108_s20 = sld [smem:[#allocation3 + $0xaa]] }
  0xab   : >> { %v611_v16 = vmul.f32 %v610_v27, %v607_v58  ;;  %v662_v22 = vstv %s3043_s29  ;;  %v681_v23 = vmul.f32 %v680_v33, %v2772_v43  ;;  %v682_v26 = vmul.f32 %v680_v33, %v2774_v44  ;;  %s3112_s29 = sld [smem:[#allocation3 + $0x2b]] }
  0xac   : >> { %v651_v17 = vadd.f32 %v650_v14, %v647_v9  ;;  %v652_v10 = vadd.f32 %v650_v14, %v648_v32  ;;  %v684_v19 = vstv %s3047_s21  ;;  %v690_v40 = vstv %s3051_s25  ;;  %s3116_s21 = sld [smem:[#allocation3 + $0xab]] }
  0xad   : >> { %v612_v11 = vmul.f32 %v610_v27, %v608_v61  ;;  %v617_v15 = vmul.f32 %v616_v39, %v607_v58  ;;  %v685_v37 = vmul.f32 %v684_v19, %v2776_v45  ;;  %v686_v38 = vmul.f32 %v684_v19, %v2778_v46  ;;  %s3120_s25 = sld [smem:[#allocation3 + $0x4b]] }
  0xae   : >> { %v618_v28 = vmul.f32 %v616_v39, %v608_v61  ;;  %v623_v63 = vmul.f32 %v622_v42, %v607_v58  ;;  %v624_v18 = vmul.f32 %v622_v42, %v608_v61  ;;  %v629_v31 = vmul.f32 %v628_v59, %v607_v58 }
  0xaf   : >> { %v630_v41 = vmul.f32 %v628_v59, %v608_v61  ;;  %v653_v49 = vmax.f32 %v651_v17, 0.0  ;;  %v668_v47 = vstv %s3059_s28  ;;  %v691_v50 = vmul.f32 %v690_v40, %v2793_v54  ;;  %s3122_s28 = sld [smem:[#allocation3 + $0x6b]] }
  0xb0   : >> { %v654_v27 = vmax.f32 %v652_v10, 0.0  ;;  %v687_v35 = vadd.f32 %v685_v37, %v681_v23  ;;  %v688_v53 = vadd.f32 %v686_v38, %v682_v26  ;;  %v692_v39 = vmul.f32 %v690_v40, %v2795_v55 }
  0xb1   : >> { %v613_v51 = vadd.f32 %v611_v16, %v567_v36  ;;  %v614_v34 = vadd.f32 %v612_v11, %v568_v62  ;;  %v619_v52 = vadd.f32 %v617_v15, %v573_v13  ;;  %v674_v48 = vstv %s3061_s7  ;;  %s3124_s7 = sld [smem:[#allocation3 + $0xac]] }
  0xb2   : >> { %v620_v3 = vadd.f32 %v618_v28, %v574_v12  ;;  %v625_v2 = vadd.f32 %v623_v63, %v579_v57  ;;  %v626_v7 = vadd.f32 %v624_v18, %v580_v56  ;;  %v631_v42 = vadd.f32 %v629_v31, %v585_v60 }
  0xb3   : >> { %v632_v58 = vadd.f32 %v630_v41, %v586_v20  ;;  %v657_v59 = vmul.f32 %v656_v21, %v653_v49  ;;  %v696_v9 = vstv %s3065_s27  ;;  %v702_v32 = vstv %s3068_s9  ;;  %s3128_s27 = sld [smem:[#allocation3 + $0xad]] }
  0xb4   : >> { %v658_v36 = vmul.f32 %v656_v21, %v654_v27  ;;  %v693_v62 = vadd.f32 %v691_v50, %v687_v35  ;;  %v694_v13 = vadd.f32 %v692_v39, %v688_v53  ;;  %v726_v33 = vstv %s3073_s1  ;;  %s3134_s9 = sld [smem:[#allocation3 + $0xc]] }
  0xb5   : >> { %v727_v12 = vmul.f32 %v726_v33, %v2772_v43  ;;  %v728_v57 = vmul.f32 %v726_v33, %v2774_v44  ;;  %v730_v61 = vstv %s3077_s19  ;;  %v736_v14 = vstv %s3081_s10  ;;  %s3136_s1 = sld [smem:[#allocation3 + $0x2c]] }
  0xb6   : >> { %v697_v56 = vadd.f32 %v696_v9, %v693_v62  ;;  %v698_v60 = vadd.f32 %v696_v9, %v694_v13  ;;  %v731_v20 = vmul.f32 %v730_v61, %v2776_v45  ;;  %v732_v21 = vmul.f32 %v730_v61, %v2778_v46  ;;  %s3140_s19 = sld [smem:[#allocation3 + $0x4c]] }
  0xb7   : >> { %v663_v16 = vmul.f32 %v662_v22, %v653_v49  ;;  %v664_v23 = vmul.f32 %v662_v22, %v654_v27  ;;  %v669_v26 = vmul.f32 %v668_v47, %v653_v49  ;;  %v670_v17 = vmul.f32 %v668_v47, %v654_v27  ;;  %s3147_s10 = sld [smem:[#allocation3 + $0xae]] }
  0xb8   : >> { %v675_v10 = vmul.f32 %v674_v48, %v653_v49  ;;  %v676_v19 = vmul.f32 %v674_v48, %v654_v27  ;;  %v708_v40 = vstv %s3083_s30  ;;  %v714_v11 = vstv %s3087_s4  ;;  %s3151_s30 = sld [smem:[#allocation3 + $0xaf]] }
  0xb9   : >> { %v659_v15 = vadd.f32 %v657_v59, %v613_v51  ;;  %v660_v37 = vadd.f32 %v658_v36, %v614_v34  ;;  %v737_v38 = vmul.f32 %v736_v14, %v2793_v54  ;;  %v738_v28 = vmul.f32 %v736_v14, %v2795_v55  ;;  %s3154_s4 = sld [smem:[#allocation3 + $0x6c]] }
  0xba   : >> { %v699_v22 = vmax.f32 %v697_v56, 0.0  ;;  %v700_v63 = vmax.f32 %v698_v60, 0.0  ;;  %v733_v18 = vadd.f32 %v731_v20, %v727_v12  ;;  %v734_v31 = vadd.f32 %v732_v21, %v728_v57 }
  0xbb   : >> { %v665_v41 = vadd.f32 %v663_v16, %v619_v52  ;;  %v666_v49 = vadd.f32 %v664_v23, %v620_v3  ;;  %v671_v47 = vadd.f32 %v669_v26, %v625_v2  ;;  %v672_v50 = vadd.f32 %v670_v17, %v626_v7 }
  0xbc   : >> { %v677_v27 = vadd.f32 %v675_v10, %v631_v42  ;;  %v678_v35 = vadd.f32 %v676_v19, %v632_v58  ;;  %v720_v53 = vstv %s3090_s6  ;;  %v772_v39 = vstv %s3102_s18  ;;  %s3158_s6 = sld [smem:[#allocation3 + $0xd]] }
  0xbd   : >> { %v742_v51 = vstv %s3093_s8  ;;  %v748_v34 = vstv %s3095_s11  ;;  %v754_v48 = vstv %s3099_s16  ;;  %v760_v59 = vstv %s3108_s20  ;;  %s3163_s8 = sld [smem:[#allocation3 + $0xb0]] }
  0xbe   : >> { %v703_v9 = vmul.f32 %v702_v32, %v699_v22  ;;  %v704_v52 = vmul.f32 %v702_v32, %v700_v63  ;;  %v739_v3 = vadd.f32 %v737_v38, %v733_v18  ;;  %v740_v2 = vadd.f32 %v738_v28, %v734_v31  ;;  %s3167_s11 = sld [smem:[#allocation3 + $0xb1]] }
  0xbf   : >> { %v709_v7 = vmul.f32 %v708_v40, %v699_v22  ;;  %v710_v42 = vmul.f32 %v708_v40, %v700_v63  ;;  %v773_v58 = vmul.f32 %v772_v39, %v2772_v43  ;;  %v776_v36 = vstv %s3112_s29  ;;  %s3171_s16 = sld [smem:[#allocation3 + $0x2d]] }
  0xc0   : >> { %v743_v62 = vadd.f32 %v742_v51, %v739_v3  ;;  %v774_v13 = vmul.f32 %v772_v39, %v2774_v44  ;;  %v777_v33 = vmul.f32 %v776_v36, %v2776_v45  ;;  %v778_v32 = vmul.f32 %v776_v36, %v2778_v46  ;;  %s3175_s18 = sld [smem:[#allocation3 + $0x4d]] }
  0xc1   : >> { %v715_v12 = vmul.f32 %v714_v11, %v699_v22  ;;  %v716_v57 = vmul.f32 %v714_v11, %v700_v63  ;;  %v744_v61 = vadd.f32 %v742_v51, %v740_v2  ;;  %v782_v14 = vstv %s3120_s25  ;;  %s3183_s29 = sld [smem:[#allocation3 + $0xb2]] }
  0xc2   : >> { %v705_v56 = vadd.f32 %v703_v9, %v659_v15  ;;  %v721_v60 = vmul.f32 %v720_v53, %v699_v22  ;;  %v722_v20 = vmul.f32 %v720_v53, %v700_v63  ;;  %v766_v21 = vstv %s3116_s21  ;;  %s3185_s21 = sld [smem:[#allocation3 + $0xb3]] }
  0xc3   : >> { %v706_v16 = vadd.f32 %v704_v52, %v660_v37  ;;  %v711_v23 = vadd.f32 %v709_v7, %v665_v41  ;;  %v712_v26 = vadd.f32 %v710_v42, %v666_v49  ;;  %v745_v17 = vmax.f32 %v743_v62, 0.0  ;;  %s3189_s20 = sld [smem:[#allocation3 + $0x6d]] }
  0xc4   : >> { %v779_v10 = vadd.f32 %v777_v33, %v773_v58  ;;  %v780_v19 = vadd.f32 %v778_v32, %v774_v13  ;;  %v783_v40 = vmul.f32 %v782_v14, %v2793_v54  ;;  %v784_v11 = vmul.f32 %v782_v14, %v2795_v55  ;;  %s3192_s25 = sld [smem:[#allocation3 + $0xb4]] }
  0xc5   : >> { %v717_v15 = vadd.f32 %v715_v12, %v671_v47  ;;  %v718_v37 = vadd.f32 %v716_v57, %v672_v50  ;;  %v746_v38 = vmax.f32 %v744_v61, 0.0  ;;  %v818_v28 = vstv %s3134_s9  ;;  %s3207_s9 = sld [smem:[#allocation3 + $0xb5]] }
  0xc6   : >> { %v723_v22 = vadd.f32 %v721_v60, %v677_v27  ;;  %v724_v63 = vadd.f32 %v722_v20, %v678_v35  ;;  %v788_v18 = vstv %s3122_s28  ;;  %v822_v31 = vstv %s3136_s1  ;;  %s3197_s28 = sld [smem:[#allocation3 + $0xe]] }
  0xc7   : >> { %v749_v41 = vmul.f32 %v748_v34, %v745_v17  ;;  %v794_v49 = vstv %s3124_s7  ;;  %v800_v53 = vstv %s3128_s27  ;;  %v828_v39 = vstv %s3140_s19  ;;  %s3201_s7 = sld [smem:[#allocation3 + $0x2e]] }
  0xc8   : >> { %v785_v51 = vadd.f32 %v783_v40, %v779_v10  ;;  %v786_v47 = vadd.f32 %v784_v11, %v780_v19  ;;  %v819_v50 = vmul.f32 %v818_v28, %v2772_v43  ;;  %v820_v9 = vmul.f32 %v818_v28, %v2774_v44  ;;  %s3205_s27 = sld [smem:[#allocation3 + $0x4e]] }
  0xc9   : >> { %v750_v27 = vmul.f32 %v748_v34, %v746_v38  ;;  %v755_v35 = vmul.f32 %v754_v48, %v745_v17  ;;  %v823_v52 = vmul.f32 %v822_v31, %v2776_v45  ;;  %v824_v3 = vmul.f32 %v822_v31, %v2778_v46  ;;  %s3211_s1 = sld [smem:[#allocation3 + $0xb6]] }
  0xca   : >> { %v756_v2 = vmul.f32 %v754_v48, %v746_v38  ;;  %v789_v7 = vadd.f32 %v788_v18, %v785_v51  ;;  %v829_v42 = vmul.f32 %v828_v39, %v2793_v54  ;;  %v830_v58 = vmul.f32 %v828_v39, %v2795_v55  ;;  %s3214_s19 = sld [smem:[#allocation3 + $0xb7]] }
  0xcb   : >> { %v761_v36 = vmul.f32 %v760_v59, %v745_v17  ;;  %v790_v34 = vadd.f32 %v788_v18, %v786_v47  ;;  %v825_v62 = vadd.f32 %v823_v52, %v819_v50  ;;  %v826_v13 = vadd.f32 %v824_v3, %v820_v9 }
  0xcc   : >> { %v762_v33 = vmul.f32 %v760_v59, %v746_v38  ;;  %v767_v32 = vmul.f32 %v766_v21, %v745_v17  ;;  %v768_v12 = vmul.f32 %v766_v21, %v746_v38  ;;  %v806_v48 = vstv %s3147_s10  ;;  %s3217_s10 = sld [smem:[#allocation3 + $0x6e]] }
  0xcd   : >> { %v751_v57 = vadd.f32 %v749_v41, %v705_v56  ;;  %v752_v61 = vadd.f32 %v750_v27, %v706_v16  ;;  %v791_v14 = vmax.f32 %v789_v7, 0.0  ;;  %v812_v60 = vstv %s3151_s30  ;;  %s3219_s30 = sld [smem:[#allocation3 + $0xb8]] }
  0xce   : >> { %v757_v20 = vadd.f32 %v755_v35, %v711_v23  ;;  %v831_v10 = vadd.f32 %v829_v42, %v825_v62  ;;  %v832_v19 = vadd.f32 %v830_v58, %v826_v13  ;;  %v864_v40 = vstv %s3158_s6  ;;  %s3226_s6 = sld [smem:[#allocation3 + $0xf]] }
  0xcf   : >> { %v758_v11 = vadd.f32 %v756_v2, %v712_v26  ;;  %v763_v59 = vadd.f32 %v761_v36, %v717_v15  ;;  %v792_v17 = vmax.f32 %v790_v34, 0.0  ;;  %v834_v21 = vstv %s3154_s4  ;;  %s3223_s4 = sld [smem:[#allocation3 + $0xb9]] }
  0xd0   : >> { %v764_v56 = vadd.f32 %v762_v33, %v718_v37  ;;  %v769_v16 = vadd.f32 %v767_v32, %v723_v22  ;;  %v770_v38 = vadd.f32 %v768_v12, %v724_v63  ;;  %v840_v28 = vstv %s3163_s8  ;;  %s3232_s8 = sld [smem:[#allocation3 + $0xba]] }
  0xd1   : >> { %v795_v23 = vmul.f32 %v794_v49, %v791_v14  ;;  %v846_v18 = vstv %s3167_s11  ;;  %v865_v31 = vmul.f32 %v864_v40, %v2772_v43  ;;  %v866_v41 = vmul.f32 %v864_v40, %v2774_v44  ;;  %s3236_s11 = sld [smem:[#allocation3 + $0x2f]] }
  0xd2   : >> { %v835_v26 = vadd.f32 %v834_v21, %v831_v10  ;;  %v836_v15 = vadd.f32 %v834_v21, %v832_v19  ;;  %v868_v39 = vstv %s3171_s16  ;;  %v874_v51 = vstv %s3175_s18  ;;  %s3240_s16 = sld [smem:[#allocation3 + $0xbb]] }
  0xd3   : >> { %v796_v37 = vmul.f32 %v794_v49, %v792_v17  ;;  %v801_v22 = vmul.f32 %v800_v53, %v791_v14  ;;  %v869_v63 = vmul.f32 %v868_v39, %v2776_v45  ;;  %v870_v47 = vmul.f32 %v868_v39, %v2778_v46  ;;  %s3244_s18 = sld [smem:[#allocation3 + $0x4f]] }
  0xd4   : >> { %v802_v50 = vmul.f32 %v800_v53, %v792_v17  ;;  %v807_v9 = vmul.f32 %v806_v48, %v791_v14  ;;  %v808_v27 = vmul.f32 %v806_v48, %v792_v17  ;;  %v813_v35 = vmul.f32 %v812_v60, %v791_v14 }
  0xd5   : >> { %v814_v52 = vmul.f32 %v812_v60, %v792_v17  ;;  %v837_v3 = vmax.f32 %v835_v26, 0.0  ;;  %v852_v2 = vstv %s3183_s29  ;;  %v875_v7 = vmul.f32 %v874_v51, %v2793_v54  ;;  %s3246_s29 = sld [smem:[#allocation3 + $0x6f]] }
  0xd6   : >> { %v838_v49 = vmax.f32 %v836_v15, 0.0  ;;  %v871_v42 = vadd.f32 %v869_v63, %v865_v31  ;;  %v872_v58 = vadd.f32 %v870_v47, %v866_v41  ;;  %v876_v53 = vmul.f32 %v874_v51, %v2795_v55 }
  0xd7   : >> { %v797_v36 = vadd.f32 %v795_v23, %v751_v57  ;;  %v798_v34 = vadd.f32 %v796_v37, %v752_v61  ;;  %v803_v62 = vadd.f32 %v801_v22, %v757_v20  ;;  %v858_v13 = vstv %s3185_s21  ;;  %s3248_s21 = sld [smem:[#allocation3 + $0xbc]] }
  0xd8   : >> { %v804_v33 = vadd.f32 %v802_v50, %v758_v11  ;;  %v809_v32 = vadd.f32 %v807_v9, %v763_v59  ;;  %v810_v12 = vadd.f32 %v808_v27, %v764_v56  ;;  %v815_v48 = vadd.f32 %v813_v35, %v769_v16 }
  0xd9   : >> { %v816_v14 = vadd.f32 %v814_v52, %v770_v38  ;;  %v841_v60 = vmul.f32 %v840_v28, %v837_v3  ;;  %v880_v10 = vstv %s3189_s20  ;;  %v886_v19 = vstv %s3192_s25  ;;  %s3252_s20 = sld [smem:[#allocation3 + $0xbd]] }
  0xda   : >> { %v842_v57 = vmul.f32 %v840_v28, %v838_v49  ;;  %v877_v61 = vadd.f32 %v875_v7, %v871_v42  ;;  %v878_v20 = vadd.f32 %v876_v53, %v872_v58  ;;  %v910_v40 = vstv %s3197_s28  ;;  %s3258_s25 = sld [smem:[#allocation3 + $0x10]] }
  0xdb   : >> { %v911_v11 = vmul.f32 %v910_v40, %v2772_v43  ;;  %v912_v59 = vmul.f32 %v910_v40, %v2774_v44  ;;  %v914_v17 = vstv %s3201_s7  ;;  %v920_v21 = vstv %s3205_s27  ;;  %s3260_s28 = sld [smem:[#allocation3 + $0x30]] }
  0xdc   : >> { %v881_v56 = vadd.f32 %v880_v10, %v877_v61  ;;  %v882_v16 = vadd.f32 %v880_v10, %v878_v20  ;;  %v915_v38 = vmul.f32 %v914_v17, %v2776_v45  ;;  %v916_v28 = vmul.f32 %v914_v17, %v2778_v46  ;;  %s3264_s7 = sld [smem:[#allocation3 + $0x50]] }
  0xdd   : >> { %v847_v23 = vmul.f32 %v846_v18, %v837_v3  ;;  %v848_v31 = vmul.f32 %v846_v18, %v838_v49  ;;  %v853_v41 = vmul.f32 %v852_v2, %v837_v3  ;;  %v854_v26 = vmul.f32 %v852_v2, %v838_v49  ;;  %s3271_s27 = sld [smem:[#allocation3 + $0xbe]] }
  0xde   : >> { %v859_v15 = vmul.f32 %v858_v13, %v837_v3  ;;  %v860_v39 = vmul.f32 %v858_v13, %v838_v49  ;;  %v892_v51 = vstv %s3207_s9  ;;  %v898_v37 = vstv %s3211_s1  ;;  %s3275_s9 = sld [smem:[#allocation3 + $0xbf]] }
  0xdf   : >> { %v843_v22 = vadd.f32 %v841_v60, %v797_v36  ;;  %v844_v63 = vadd.f32 %v842_v57, %v798_v34  ;;  %v921_v47 = vmul.f32 %v920_v21, %v2793_v54  ;;  %v922_v50 = vmul.f32 %v920_v21, %v2795_v55  ;;  %s3278_s1 = sld [smem:[#allocation3 + $0x70]] }
  0xe0   : >> { %v883_v18 = vmax.f32 %v881_v56, 0.0  ;;  %v884_v9 = vmax.f32 %v882_v16, 0.0  ;;  %v917_v27 = vadd.f32 %v915_v38, %v911_v11  ;;  %v918_v35 = vadd.f32 %v916_v28, %v912_v59 }
  0xe1   : >> { %v849_v52 = vadd.f32 %v847_v23, %v803_v62  ;;  %v850_v3 = vadd.f32 %v848_v31, %v804_v33  ;;  %v855_v2 = vadd.f32 %v853_v41, %v809_v32  ;;  %v856_v7 = vadd.f32 %v854_v26, %v810_v12 }
  0xe2   : >> { %v861_v49 = vadd.f32 %v859_v15, %v815_v48  ;;  %v862_v42 = vadd.f32 %v860_v39, %v816_v14  ;;  %v904_v58 = vstv %s3214_s19  ;;  %v956_v53 = vstv %s3226_s6  ;;  %s3282_s19 = sld [smem:[#allocation3 + $0x11]] }
  0xe3   : >> { %v926_v36 = vstv %s3217_s10  ;;  %v932_v34 = vstv %s3219_s30  ;;  %v938_v13 = vstv %s3223_s4  ;;  %v944_v60 = vstv %s3232_s8  ;;  %s3287_s10 = sld [smem:[#allocation3 + $0xc0]] }
  0xe4   : >> { %v887_v10 = vmul.f32 %v886_v19, %v883_v18  ;;  %v888_v62 = vmul.f32 %v886_v19, %v884_v9  ;;  %v923_v33 = vadd.f32 %v921_v47, %v917_v27  ;;  %v924_v32 = vadd.f32 %v922_v50, %v918_v35  ;;  %s3291_s30 = sld [smem:[#allocation3 + $0xc1]] }
  0xe5   : >> { %v893_v12 = vmul.f32 %v892_v51, %v883_v18  ;;  %v894_v48 = vmul.f32 %v892_v51, %v884_v9  ;;  %v957_v14 = vmul.f32 %v956_v53, %v2772_v43  ;;  %v960_v57 = vstv %s3236_s11  ;;  %s3295_s4 = sld [smem:[#allocation3 + $0x31]] }
  0xe6   : >> { %v927_v61 = vadd.f32 %v926_v36, %v923_v33  ;;  %v958_v20 = vmul.f32 %v956_v53, %v2774_v44  ;;  %v961_v40 = vmul.f32 %v960_v57, %v2776_v45  ;;  %v962_v19 = vmul.f32 %v960_v57, %v2778_v46  ;;  %s3299_s6 = sld [smem:[#allocation3 + $0x51]] }
  0xe7   : >> { %v899_v11 = vmul.f32 %v898_v37, %v883_v18  ;;  %v900_v59 = vmul.f32 %v898_v37, %v884_v9  ;;  %v928_v17 = vadd.f32 %v926_v36, %v924_v32  ;;  %v966_v21 = vstv %s3244_s18  ;;  %s3307_s11 = sld [smem:[#allocation3 + $0xc2]] }
  0xe8   : >> { %v889_v56 = vadd.f32 %v887_v10, %v843_v22  ;;  %v905_v16 = vmul.f32 %v904_v58, %v883_v18  ;;  %v906_v38 = vmul.f32 %v904_v58, %v884_v9  ;;  %v950_v28 = vstv %s3240_s16  ;;  %s3309_s16 = sld [smem:[#allocation3 + $0xc3]] }
  0xe9   : >> { %v890_v23 = vadd.f32 %v888_v62, %v844_v63  ;;  %v895_v31 = vadd.f32 %v893_v12, %v849_v52  ;;  %v896_v41 = vadd.f32 %v894_v48, %v850_v3  ;;  %v929_v26 = vmax.f32 %v927_v61, 0.0  ;;  %s3313_s8 = sld [smem:[#allocation3 + $0x71]] }
  0xea   : >> { %v963_v15 = vadd.f32 %v961_v40, %v957_v14  ;;  %v964_v39 = vadd.f32 %v962_v19, %v958_v20  ;;  %v967_v51 = vmul.f32 %v966_v21, %v2793_v54  ;;  %v968_v37 = vmul.f32 %v966_v21, %v2795_v55  ;;  %s3316_s18 = sld [smem:[#allocation3 + $0xc4]] }
  0xeb   : >> { %v901_v22 = vadd.f32 %v899_v11, %v855_v2  ;;  %v902_v63 = vadd.f32 %v900_v59, %v856_v7  ;;  %v930_v47 = vmax.f32 %v928_v17, 0.0  ;;  %v1002_v50 = vstv %s3258_s25  ;;  %s3331_s25 = sld [smem:[#allocation3 + $0xc5]] }
  0xec   : >> { %v907_v18 = vadd.f32 %v905_v16, %v861_v49  ;;  %v908_v9 = vadd.f32 %v906_v38, %v862_v42  ;;  %v972_v27 = vstv %s3246_s29  ;;  %v1006_v35 = vstv %s3260_s28  ;;  %s3321_s29 = sld [smem:[#allocation3 + $0x12]] }
  0xed   : >> { %v933_v52 = vmul.f32 %v932_v34, %v929_v26  ;;  %v978_v3 = vstv %s3248_s21  ;;  %v984_v58 = vstv %s3252_s20  ;;  %v1012_v53 = vstv %s3264_s7  ;;  %s3325_s21 = sld [smem:[#allocation3 + $0x32]] }
  0xee   : >> { %v969_v36 = vadd.f32 %v967_v51, %v963_v15  ;;  %v970_v2 = vadd.f32 %v968_v37, %v964_v39  ;;  %v1003_v7 = vmul.f32 %v1002_v50, %v2772_v43  ;;  %v1004_v10 = vmul.f32 %v1002_v50, %v2774_v44  ;;  %s3329_s20 = sld [smem:[#allocation3 + $0x52]] }
  0xef   : >> { %v934_v49 = vmul.f32 %v932_v34, %v930_v47  ;;  %v939_v42 = vmul.f32 %v938_v13, %v929_v26  ;;  %v1007_v62 = vmul.f32 %v1006_v35, %v2776_v45  ;;  %v1008_v33 = vmul.f32 %v1006_v35, %v2778_v46  ;;  %s3335_s28 = sld [smem:[#allocation3 + $0xc6]] }
  0xf0   : >> { %v940_v32 = vmul.f32 %v938_v13, %v930_v47  ;;  %v973_v12 = vadd.f32 %v972_v27, %v969_v36  ;;  %v1013_v48 = vmul.f32 %v1012_v53, %v2793_v54  ;;  %v1014_v14 = vmul.f32 %v1012_v53, %v2795_v55  ;;  %s3338_s7 = sld [smem:[#allocation3 + $0xc7]] }
  0xf1   : >> { %v945_v57 = vmul.f32 %v944_v60, %v929_v26  ;;  %v974_v34 = vadd.f32 %v972_v27, %v970_v2  ;;  %v1009_v61 = vadd.f32 %v1007_v62, %v1003_v7  ;;  %v1010_v20 = vadd.f32 %v1008_v33, %v1004_v10 }
  0xf2   : >> { %v946_v40 = vmul.f32 %v944_v60, %v930_v47  ;;  %v951_v19 = vmul.f32 %v950_v28, %v929_v26  ;;  %v952_v11 = vmul.f32 %v950_v28, %v930_v47  ;;  %v990_v13 = vstv %s3271_s27  ;;  %s3341_s27 = sld [smem:[#allocation3 + $0x72]] }
  0xf3   : >> { %v935_v59 = vadd.f32 %v933_v52, %v889_v56  ;;  %v936_v17 = vadd.f32 %v934_v49, %v890_v23  ;;  %v975_v21 = vmax.f32 %v973_v12, 0.0  ;;  %v996_v16 = vstv %s3275_s9  ;;  %s3343_s9 = sld [smem:[#allocation3 + $0xc8]] }
  0xf4   : >> { %v941_v38 = vadd.f32 %v939_v42, %v895_v31  ;;  %v1015_v15 = vadd.f32 %v1013_v48, %v1009_v61  ;;  %v1016_v39 = vadd.f32 %v1014_v14, %v1010_v20  ;;  %v1048_v51 = vstv %s3282_s19  ;;  %s3350_s19 = sld [smem:[#allocation3 + $0x13]] }
  0xf5   : >> { %v942_v37 = vadd.f32 %v940_v32, %v896_v41  ;;  %v947_v60 = vadd.f32 %v945_v57, %v901_v22  ;;  %v976_v26 = vmax.f32 %v974_v34, 0.0  ;;  %v1018_v28 = vstv %s3278_s1  ;;  %s3347_s1 = sld [smem:[#allocation3 + $0xc9]] }
  0xf6   : >> { %v948_v56 = vadd.f32 %v946_v40, %v902_v63  ;;  %v953_v23 = vadd.f32 %v951_v19, %v907_v18  ;;  %v954_v47 = vadd.f32 %v952_v11, %v908_v9  ;;  %v1024_v50 = vstv %s3287_s10  ;;  %s3356_s10 = sld [smem:[#allocation3 + $0xca]] }
  0xf7   : >> { %v979_v31 = vmul.f32 %v978_v3, %v975_v21  ;;  %v1030_v27 = vstv %s3291_s30  ;;  %v1049_v35 = vmul.f32 %v1048_v51, %v2772_v43  ;;  %v1050_v52 = vmul.f32 %v1048_v51, %v2774_v44  ;;  %s3360_s30 = sld [smem:[#allocation3 + $0x33]] }
  0xf8   : >> { %v1019_v41 = vadd.f32 %v1018_v28, %v1015_v15  ;;  %v1020_v22 = vadd.f32 %v1018_v28, %v1016_v39  ;;  %v1052_v53 = vstv %s3295_s4  ;;  %v1058_v36 = vstv %s3299_s6  ;;  %s3364_s4 = sld [smem:[#allocation3 + $0xcb]] }
  0xf9   : >> { %v980_v63 = vmul.f32 %v978_v3, %v976_v26  ;;  %v985_v18 = vmul.f32 %v984_v58, %v975_v21  ;;  %v1053_v9 = vmul.f32 %v1052_v53, %v2776_v45  ;;  %v1054_v2 = vmul.f32 %v1052_v53, %v2778_v46  ;;  %s3368_s6 = sld [smem:[#allocation3 + $0x53]] }
  0xfa   : >> { %v986_v7 = vmul.f32 %v984_v58, %v976_v26  ;;  %v991_v10 = vmul.f32 %v990_v13, %v975_v21  ;;  %v992_v49 = vmul.f32 %v990_v13, %v976_v26  ;;  %v997_v42 = vmul.f32 %v996_v16, %v975_v21 }
  0xfb   : >> { %v998_v62 = vmul.f32 %v996_v16, %v976_v26  ;;  %v1021_v33 = vmax.f32 %v1019_v41, 0.0  ;;  %v1036_v32 = vstv %s3307_s11  ;;  %v1059_v12 = vmul.f32 %v1058_v36, %v2793_v54  ;;  %s3370_s11 = sld [smem:[#allocation3 + $0x73]] }
  0xfc   : >> { %v1022_v3 = vmax.f32 %v1020_v22, 0.0  ;;  %v1055_v48 = vadd.f32 %v1053_v9, %v1049_v35  ;;  %v1056_v14 = vadd.f32 %v1054_v2, %v1050_v52  ;;  %v1060_v58 = vmul.f32 %v1058_v36, %v2795_v55 }
  0xfd   : >> { %v981_v57 = vadd.f32 %v979_v31, %v935_v59  ;;  %v982_v34 = vadd.f32 %v980_v63, %v936_v17  ;;  %v987_v61 = vadd.f32 %v985_v18, %v941_v38  ;;  %v1042_v20 = vstv %s3309_s16  ;;  %s3372_s16 = sld [smem:[#allocation3 + $0xcc]] }
  0xfe   : >> { %v988_v40 = vadd.f32 %v986_v7, %v942_v37  ;;  %v993_v19 = vadd.f32 %v991_v10, %v947_v60  ;;  %v994_v11 = vadd.f32 %v992_v49, %v948_v56  ;;  %v999_v13 = vadd.f32 %v997_v42, %v953_v23 }
  0xff   : >> { %v1000_v21 = vadd.f32 %v998_v62, %v954_v47  ;;  %v1025_v16 = vmul.f32 %v1024_v50, %v1021_v33  ;;  %v1064_v15 = vstv %s3313_s8  ;;  %v1070_v39 = vstv %s3316_s18  ;;  %s3376_s8 = sld [smem:[#allocation3 + $0xcd]] }
 0x100   : >> { %v1026_v59 = vmul.f32 %v1024_v50, %v1022_v3  ;;  %v1061_v17 = vadd.f32 %v1059_v12, %v1055_v48  ;;  %v1062_v38 = vadd.f32 %v1060_v58, %v1056_v14  ;;  %v1094_v51 = vstv %s3321_s29  ;;  %s3382_s18 = sld [smem:[#allocation3 + $0x14]] }
 0x101   : >> { %v1095_v37 = vmul.f32 %v1094_v51, %v2772_v43  ;;  %v1096_v60 = vmul.f32 %v1094_v51, %v2774_v44  ;;  %v1098_v26 = vstv %s3325_s21  ;;  %v1104_v28 = vstv %s3329_s20  ;;  %s3384_s29 = sld [smem:[#allocation3 + $0x34]] }
 0x102   : >> { %v1065_v56 = vadd.f32 %v1064_v15, %v1061_v17  ;;  %v1066_v23 = vadd.f32 %v1064_v15, %v1062_v38  ;;  %v1099_v47 = vmul.f32 %v1098_v26, %v2776_v45  ;;  %v1100_v50 = vmul.f32 %v1098_v26, %v2778_v46  ;;  %s3388_s21 = sld [smem:[#allocation3 + $0x54]] }
 0x103   : >> { %v1031_v31 = vmul.f32 %v1030_v27, %v1021_v33  ;;  %v1032_v35 = vmul.f32 %v1030_v27, %v1022_v3  ;;  %v1037_v52 = vmul.f32 %v1036_v32, %v1021_v33  ;;  %v1038_v41 = vmul.f32 %v1036_v32, %v1022_v3  ;;  %s3395_s20 = sld [smem:[#allocation3 + $0xce]] }
 0x104   : >> { %v1043_v22 = vmul.f32 %v1042_v20, %v1021_v33  ;;  %v1044_v53 = vmul.f32 %v1042_v20, %v1022_v3  ;;  %v1076_v36 = vstv %s3331_s25  ;;  %v1082_v63 = vstv %s3335_s28  ;;  %s3399_s25 = sld [smem:[#allocation3 + $0xcf]] }
 0x105   : >> { %v1027_v18 = vadd.f32 %v1025_v16, %v981_v57  ;;  %v1028_v9 = vadd.f32 %v1026_v59, %v982_v34  ;;  %v1105_v2 = vmul.f32 %v1104_v28, %v2793_v54  ;;  %v1106_v7 = vmul.f32 %v1104_v28, %v2795_v55  ;;  %s3402_s28 = sld [smem:[#allocation3 + $0x74]] }
 0x106   : >> { %v1067_v27 = vmax.f32 %v1065_v56, 0.0  ;;  %v1068_v10 = vmax.f32 %v1066_v23, 0.0  ;;  %v1101_v49 = vadd.f32 %v1099_v47, %v1095_v37  ;;  %v1102_v42 = vadd.f32 %v1100_v50, %v1096_v60 }
 0x107   : >> { %v1033_v62 = vadd.f32 %v1031_v31, %v987_v61  ;;  %v1034_v33 = vadd.f32 %v1032_v35, %v988_v40  ;;  %v1039_v32 = vadd.f32 %v1037_v52, %v993_v19  ;;  %v1040_v12 = vadd.f32 %v1038_v41, %v994_v11 }
 0x108   : >> { %v1045_v3 = vadd.f32 %v1043_v22, %v999_v13  ;;  %v1046_v48 = vadd.f32 %v1044_v53, %v1000_v21  ;;  %v1088_v14 = vstv %s3338_s7  ;;  %v1140_v58 = vstv %s3350_s19  ;;  %s3406_s7 = sld [smem:[#allocation3 + $0x15]] }
 0x109   : >> { %v1110_v57 = vstv %s3341_s27  ;;  %v1116_v34 = vstv %s3343_s9  ;;  %v1122_v20 = vstv %s3347_s1  ;;  %v1128_v16 = vstv %s3356_s10  ;;  %s3411_s27 = sld [smem:[#allocation3 + $0xd0]] }
 0x10a   : >> { %v1071_v15 = vmul.f32 %v1070_v39, %v1067_v27  ;;  %v1072_v61 = vmul.f32 %v1070_v39, %v1068_v10  ;;  %v1107_v40 = vadd.f32 %v1105_v2, %v1101_v49  ;;  %v1108_v19 = vadd.f32 %v1106_v7, %v1102_v42  ;;  %s3415_s9 = sld [smem:[#allocation3 + $0xd1]] }
 0x10b   : >> { %v1077_v11 = vmul.f32 %v1076_v36, %v1067_v27  ;;  %v1078_v13 = vmul.f32 %v1076_v36, %v1068_v10  ;;  %v1141_v21 = vmul.f32 %v1140_v58, %v2772_v43  ;;  %v1144_v59 = vstv %s3360_s30  ;;  %s3419_s1 = sld [smem:[#allocation3 + $0x35]] }
 0x10c   : >> { %v1111_v17 = vadd.f32 %v1110_v57, %v1107_v40  ;;  %v1142_v38 = vmul.f32 %v1140_v58, %v2774_v44  ;;  %v1145_v51 = vmul.f32 %v1144_v59, %v2776_v45  ;;  %v1146_v39 = vmul.f32 %v1144_v59, %v2778_v46  ;;  %s3423_s19 = sld [smem:[#allocation3 + $0x55]] }
 0x10d   : >> { %v1083_v37 = vmul.f32 %v1082_v63, %v1067_v27  ;;  %v1084_v60 = vmul.f32 %v1082_v63, %v1068_v10  ;;  %v1112_v26 = vadd.f32 %v1110_v57, %v1108_v19  ;;  %v1150_v28 = vstv %s3368_s6  ;;  %s3431_s30 = sld [smem:[#allocation3 + $0xd2]] }
 0x10e   : >> { %v1073_v56 = vadd.f32 %v1071_v15, %v1027_v18  ;;  %v1089_v23 = vmul.f32 %v1088_v14, %v1067_v27  ;;  %v1090_v47 = vmul.f32 %v1088_v14, %v1068_v10  ;;  %v1134_v50 = vstv %s3364_s4  ;;  %s3433_s4 = sld [smem:[#allocation3 + $0xd3]] }
 0x10f   : >> { %v1074_v31 = vadd.f32 %v1072_v61, %v1028_v9  ;;  %v1079_v35 = vadd.f32 %v1077_v11, %v1033_v62  ;;  %v1080_v52 = vadd.f32 %v1078_v13, %v1034_v33  ;;  %v1113_v41 = vmax.f32 %v1111_v17, 0.0  ;;  %s3437_s10 = sld [smem:[#allocation3 + $0x75]] }
 0x110   : >> { %v1147_v22 = vadd.f32 %v1145_v51, %v1141_v21  ;;  %v1148_v53 = vadd.f32 %v1146_v39, %v1142_v38  ;;  %v1151_v36 = vmul.f32 %v1150_v28, %v2793_v54  ;;  %v1152_v63 = vmul.f32 %v1150_v28, %v2795_v55  ;;  %s3440_s6 = sld [smem:[#allocation3 + $0xd4]] }
 0x111   : >> { %v1085_v18 = vadd.f32 %v1083_v37, %v1039_v32  ;;  %v1086_v9 = vadd.f32 %v1084_v60, %v1040_v12  ;;  %v1114_v2 = vmax.f32 %v1112_v26, 0.0  ;;  %v1186_v7 = vstv %s3382_s18  ;;  %s3455_s18 = sld [smem:[#allocation3 + $0xd5]] }
 0x112   : >> { %v1091_v27 = vadd.f32 %v1089_v23, %v1045_v3  ;;  %v1092_v10 = vadd.f32 %v1090_v47, %v1046_v48  ;;  %v1156_v49 = vstv %s3370_s11  ;;  %v1190_v42 = vstv %s3384_s29  ;;  %s3445_s11 = sld [smem:[#allocation3 + $0x16]] }
 0x113   : >> { %v1117_v62 = vmul.f32 %v1116_v34, %v1113_v41  ;;  %v1162_v33 = vstv %s3372_s16  ;;  %v1168_v14 = vstv %s3376_s8  ;;  %v1196_v58 = vstv %s3388_s21  ;;  %s3449_s16 = sld [smem:[#allocation3 + $0x36]] }
 0x114   : >> { %v1153_v57 = vadd.f32 %v1151_v36, %v1147_v22  ;;  %v1154_v32 = vadd.f32 %v1152_v63, %v1148_v53  ;;  %v1187_v12 = vmul.f32 %v1186_v7, %v2772_v43  ;;  %v1188_v15 = vmul.f32 %v1186_v7, %v2774_v44  ;;  %s3453_s8 = sld [smem:[#allocation3 + $0x56]] }
 0x115   : >> { %v1118_v3 = vmul.f32 %v1116_v34, %v1114_v2  ;;  %v1123_v48 = vmul.f32 %v1122_v20, %v1113_v41  ;;  %v1191_v61 = vmul.f32 %v1190_v42, %v2776_v45  ;;  %v1192_v40 = vmul.f32 %v1190_v42, %v2778_v46  ;;  %s3459_s29 = sld [smem:[#allocation3 + $0xd6]] }
 0x116   : >> { %v1124_v19 = vmul.f32 %v1122_v20, %v1114_v2  ;;  %v1157_v11 = vadd.f32 %v1156_v49, %v1153_v57  ;;  %v1197_v13 = vmul.f32 %v1196_v58, %v2793_v54  ;;  %v1198_v21 = vmul.f32 %v1196_v58, %v2795_v55  ;;  %s3462_s21 = sld [smem:[#allocation3 + $0xd7]] }
 0x117   : >> { %v1129_v59 = vmul.f32 %v1128_v16, %v1113_v41  ;;  %v1158_v34 = vadd.f32 %v1156_v49, %v1154_v32  ;;  %v1193_v17 = vadd.f32 %v1191_v61, %v1187_v12  ;;  %v1194_v38 = vadd.f32 %v1192_v40, %v1188_v15 }
 0x118   : >> { %v1130_v51 = vmul.f32 %v1128_v16, %v1114_v2  ;;  %v1135_v39 = vmul.f32 %v1134_v50, %v1113_v41  ;;  %v1136_v37 = vmul.f32 %v1134_v50, %v1114_v2  ;;  %v1174_v20 = vstv %s3395_s20  ;;  %s3465_s20 = sld [smem:[#allocation3 + $0x76]] }
 0x119   : >> { %v1119_v60 = vadd.f32 %v1117_v62, %v1073_v56  ;;  %v1120_v26 = vadd.f32 %v1118_v3, %v1074_v31  ;;  %v1159_v28 = vmax.f32 %v1157_v11, 0.0  ;;  %v1180_v23 = vstv %s3399_s25  ;;  %s3467_s25 = sld [smem:[#allocation3 + $0xd8]] }
 0x11a   : >> { %v1125_v47 = vadd.f32 %v1123_v48, %v1079_v35  ;;  %v1199_v22 = vadd.f32 %v1197_v13, %v1193_v17  ;;  %v1200_v53 = vadd.f32 %v1198_v21, %v1194_v38  ;;  %v1232_v36 = vstv %s3406_s7  ;;  %s3474_s7 = sld [smem:[#allocation3 + $0x17]] }
 0x11b   : >> { %v1126_v63 = vadd.f32 %v1124_v19, %v1080_v52  ;;  %v1131_v16 = vadd.f32 %v1129_v59, %v1085_v18  ;;  %v1160_v41 = vmax.f32 %v1158_v34, 0.0  ;;  %v1202_v50 = vstv %s3402_s28  ;;  %s3471_s28 = sld [smem:[#allocation3 + $0xd9]] }
 0x11c   : >> { %v1132_v56 = vadd.f32 %v1130_v51, %v1086_v9  ;;  %v1137_v31 = vadd.f32 %v1135_v39, %v1091_v27  ;;  %v1138_v2 = vadd.f32 %v1136_v37, %v1092_v10  ;;  %v1208_v7 = vstv %s3411_s27  ;;  %s3480_s27 = sld [smem:[#allocation3 + $0xda]] }
 0x11d   : >> { %v1163_v35 = vmul.f32 %v1162_v33, %v1159_v28  ;;  %v1214_v49 = vstv %s3415_s9  ;;  %v1233_v42 = vmul.f32 %v1232_v36, %v2772_v43  ;;  %v1234_v62 = vmul.f32 %v1232_v36, %v2774_v44  ;;  %s3484_s9 = sld [smem:[#allocation3 + $0x37]] }
 0x11e   : >> { %v1203_v52 = vadd.f32 %v1202_v50, %v1199_v22  ;;  %v1204_v18 = vadd.f32 %v1202_v50, %v1200_v53  ;;  %v1236_v58 = vstv %s3419_s1  ;;  %v1242_v57 = vstv %s3423_s19  ;;  %s3488_s1 = sld [smem:[#allocation3 + $0xdb]] }
 0x11f   : >> { %v1164_v9 = vmul.f32 %v1162_v33, %v1160_v41  ;;  %v1169_v27 = vmul.f32 %v1168_v14, %v1159_v28  ;;  %v1237_v10 = vmul.f32 %v1236_v58, %v2776_v45  ;;  %v1238_v32 = vmul.f32 %v1236_v58, %v2778_v46  ;;  %s3492_s19 = sld [smem:[#allocation3 + $0x57]] }
 0x120   : >> { %v1170_v12 = vmul.f32 %v1168_v14, %v1160_v41  ;;  %v1175_v15 = vmul.f32 %v1174_v20, %v1159_v28  ;;  %v1176_v3 = vmul.f32 %v1174_v20, %v1160_v41  ;;  %v1181_v48 = vmul.f32 %v1180_v23, %v1159_v28 }
 0x121   : >> { %v1182_v61 = vmul.f32 %v1180_v23, %v1160_v41  ;;  %v1205_v40 = vmax.f32 %v1203_v52, 0.0  ;;  %v1220_v19 = vstv %s3431_s30  ;;  %v1243_v11 = vmul.f32 %v1242_v57, %v2793_v54  ;;  %s3494_s30 = sld [smem:[#allocation3 + $0x77]] }
 0x122   : >> { %v1206_v33 = vmax.f32 %v1204_v18, 0.0  ;;  %v1239_v13 = vadd.f32 %v1237_v10, %v1233_v42  ;;  %v1240_v21 = vadd.f32 %v1238_v32, %v1234_v62  ;;  %v1244_v14 = vmul.f32 %v1242_v57, %v2795_v55 }
 0x123   : >> { %v1165_v59 = vadd.f32 %v1163_v35, %v1119_v60  ;;  %v1166_v34 = vadd.f32 %v1164_v9, %v1120_v26  ;;  %v1171_v17 = vadd.f32 %v1169_v27, %v1125_v47  ;;  %v1226_v38 = vstv %s3433_s4  ;;  %s3496_s4 = sld [smem:[#allocation3 + $0xdc]] }
 0x124   : >> { %v1172_v51 = vadd.f32 %v1170_v12, %v1126_v63  ;;  %v1177_v39 = vadd.f32 %v1175_v15, %v1131_v16  ;;  %v1178_v37 = vadd.f32 %v1176_v3, %v1132_v56  ;;  %v1183_v20 = vadd.f32 %v1181_v48, %v1137_v31 }
 0x125   : >> { %v1184_v28 = vadd.f32 %v1182_v61, %v1138_v2  ;;  %v1209_v23 = vmul.f32 %v1208_v7, %v1205_v40  ;;  %v1248_v22 = vstv %s3437_s10  ;;  %v1254_v53 = vstv %s3440_s6  ;;  %s3500_s10 = sld [smem:[#allocation3 + $0xdd]] }
 0x126   : >> { %v1210_v60 = vmul.f32 %v1208_v7, %v1206_v33  ;;  %v1245_v26 = vadd.f32 %v1243_v11, %v1239_v13  ;;  %v1246_v47 = vadd.f32 %v1244_v14, %v1240_v21  ;;  %v1278_v36 = vstv %s3445_s11  ;;  %s3506_s6 = sld [smem:[#allocation3 + $0x18]] }
 0x127   : >> { %v1279_v63 = vmul.f32 %v1278_v36, %v2772_v43  ;;  %v1280_v16 = vmul.f32 %v1278_v36, %v2774_v44  ;;  %v1282_v41 = vstv %s3449_s16  ;;  %v1288_v50 = vstv %s3453_s8  ;;  %s3508_s11 = sld [smem:[#allocation3 + $0x38]] }
 0x128   : >> { %v1249_v56 = vadd.f32 %v1248_v22, %v1245_v26  ;;  %v1250_v31 = vadd.f32 %v1248_v22, %v1246_v47  ;;  %v1283_v2 = vmul.f32 %v1282_v41, %v2776_v45  ;;  %v1284_v7 = vmul.f32 %v1282_v41, %v2778_v46  ;;  %s3512_s16 = sld [smem:[#allocation3 + $0x58]] }
 0x129   : >> { %v1215_v35 = vmul.f32 %v1214_v49, %v1205_v40  ;;  %v1216_v42 = vmul.f32 %v1214_v49, %v1206_v33  ;;  %v1221_v62 = vmul.f32 %v1220_v19, %v1205_v40  ;;  %v1222_v52 = vmul.f32 %v1220_v19, %v1206_v33  ;;  %s3519_s8 = sld [smem:[#allocation3 + $0xde]] }
 0x12a   : >> { %v1227_v18 = vmul.f32 %v1226_v38, %v1205_v40  ;;  %v1228_v58 = vmul.f32 %v1226_v38, %v1206_v33  ;;  %v1260_v57 = vstv %s3455_s18  ;;  %v1266_v9 = vstv %s3459_s29  ;;  %s3523_s18 = sld [smem:[#allocation3 + $0xdf]] }
 0x12b   : >> { %v1211_v27 = vadd.f32 %v1209_v23, %v1165_v59  ;;  %v1212_v10 = vadd.f32 %v1210_v60, %v1166_v34  ;;  %v1289_v32 = vmul.f32 %v1288_v50, %v2793_v54  ;;  %v1290_v12 = vmul.f32 %v1288_v50, %v2795_v55  ;;  %s3526_s29 = sld [smem:[#allocation3 + $0x78]] }
 0x12c   : >> { %v1251_v49 = vmax.f32 %v1249_v56, 0.0  ;;  %v1252_v15 = vmax.f32 %v1250_v31, 0.0  ;;  %v1285_v3 = vadd.f32 %v1283_v2, %v1279_v63  ;;  %v1286_v48 = vadd.f32 %v1284_v7, %v1280_v16 }
 0x12d   : >> { %v1217_v61 = vadd.f32 %v1215_v35, %v1171_v17  ;;  %v1218_v40 = vadd.f32 %v1216_v42, %v1172_v51  ;;  %v1223_v19 = vadd.f32 %v1221_v62, %v1177_v39  ;;  %v1224_v11 = vadd.f32 %v1222_v52, %v1178_v37 }
 0x12e   : >> { %v1229_v33 = vadd.f32 %v1227_v18, %v1183_v20  ;;  %v1230_v13 = vadd.f32 %v1228_v58, %v1184_v28  ;;  %v1272_v21 = vstv %s3462_s21  ;;  %v1324_v14 = vstv %s3474_s7  ;;  %s3530_s21 = sld [smem:[#allocation3 + $0x19]] }
 0x12f   : >> { %v1294_v59 = vstv %s3465_s20  ;;  %v1300_v34 = vstv %s3467_s25  ;;  %v1306_v38 = vstv %s3471_s28  ;;  %v1312_v23 = vstv %s3480_s27  ;;  %s3535_s20 = sld [smem:[#allocation3 + $0xe0]] }
 0x130   : >> { %v1255_v22 = vmul.f32 %v1254_v53, %v1251_v49  ;;  %v1256_v17 = vmul.f32 %v1254_v53, %v1252_v15  ;;  %v1291_v51 = vadd.f32 %v1289_v32, %v1285_v3  ;;  %v1292_v39 = vadd.f32 %v1290_v12, %v1286_v48  ;;  %s3539_s25 = sld [smem:[#allocation3 + $0xe1]] }
 0x131   : >> { %v1261_v37 = vmul.f32 %v1260_v57, %v1251_v49  ;;  %v1262_v20 = vmul.f32 %v1260_v57, %v1252_v15  ;;  %v1325_v28 = vmul.f32 %v1324_v14, %v2772_v43  ;;  %v1328_v60 = vstv %s3484_s9  ;;  %s3543_s28 = sld [smem:[#allocation3 + $0x39]] }
 0x132   : >> { %v1295_v26 = vadd.f32 %v1294_v59, %v1291_v51  ;;  %v1326_v47 = vmul.f32 %v1324_v14, %v2774_v44  ;;  %v1329_v36 = vmul.f32 %v1328_v60, %v2776_v45  ;;  %v1330_v53 = vmul.f32 %v1328_v60, %v2778_v46  ;;  %s3547_s7 = sld [smem:[#allocation3 + $0x59]] }
 0x133   : >> { %v1267_v63 = vmul.f32 %v1266_v9, %v1251_v49  ;;  %v1268_v16 = vmul.f32 %v1266_v9, %v1252_v15  ;;  %v1296_v41 = vadd.f32 %v1294_v59, %v1292_v39  ;;  %v1334_v50 = vstv %s3492_s19  ;;  %s3555_s9 = sld [smem:[#allocation3 + $0xe2]] }
 0x134   : >> { %v1257_v56 = vadd.f32 %v1255_v22, %v1211_v27  ;;  %v1273_v31 = vmul.f32 %v1272_v21, %v1251_v49  ;;  %v1274_v2 = vmul.f32 %v1272_v21, %v1252_v15  ;;  %v1318_v7 = vstv %s3488_s1  ;;  %s3557_s1 = sld [smem:[#allocation3 + $0xe3]] }
 0x135   : >> { %v1258_v35 = vadd.f32 %v1256_v17, %v1212_v10  ;;  %v1263_v42 = vadd.f32 %v1261_v37, %v1217_v61  ;;  %v1264_v62 = vadd.f32 %v1262_v20, %v1218_v40  ;;  %v1297_v52 = vmax.f32 %v1295_v26, 0.0  ;;  %s3561_s27 = sld [smem:[#allocation3 + $0x79]] }
 0x136   : >> { %v1331_v18 = vadd.f32 %v1329_v36, %v1325_v28  ;;  %v1332_v58 = vadd.f32 %v1330_v53, %v1326_v47  ;;  %v1335_v57 = vmul.f32 %v1334_v50, %v2793_v54  ;;  %v1336_v9 = vmul.f32 %v1334_v50, %v2795_v55  ;;  %s3564_s19 = sld [smem:[#allocation3 + $0xe4]] }
 0x137   : >> { %v1269_v27 = vadd.f32 %v1267_v63, %v1223_v19  ;;  %v1270_v10 = vadd.f32 %v1268_v16, %v1224_v11  ;;  %v1298_v32 = vmax.f32 %v1296_v41, 0.0  ;;  %v1370_v12 = vstv %s3506_s6  ;;  %s3579_s6 = sld [smem:[#allocation3 + $0xe5]] }
 0x138   : >> { %v1275_v49 = vadd.f32 %v1273_v31, %v1229_v33  ;;  %v1276_v15 = vadd.f32 %v1274_v2, %v1230_v13  ;;  %v1340_v3 = vstv %s3494_s30  ;;  %v1374_v48 = vstv %s3508_s11  ;;  %s3569_s30 = sld [smem:[#allocation3 + $0x1a]] }
 0x139   : >> { %v1301_v61 = vmul.f32 %v1300_v34, %v1297_v52  ;;  %v1346_v40 = vstv %s3496_s4  ;;  %v1352_v21 = vstv %s3500_s10  ;;  %v1380_v14 = vstv %s3512_s16  ;;  %s3573_s4 = sld [smem:[#allocation3 + $0x3a]] }
 0x13a   : >> { %v1337_v59 = vadd.f32 %v1335_v57, %v1331_v18  ;;  %v1338_v19 = vadd.f32 %v1336_v9, %v1332_v58  ;;  %v1371_v11 = vmul.f32 %v1370_v12, %v2772_v43  ;;  %v1372_v22 = vmul.f32 %v1370_v12, %v2774_v44  ;;  %s3577_s10 = sld [smem:[#allocation3 + $0x5a]] }
 0x13b   : >> { %v1302_v33 = vmul.f32 %v1300_v34, %v1298_v32  ;;  %v1307_v13 = vmul.f32 %v1306_v38, %v1297_v52  ;;  %v1375_v17 = vmul.f32 %v1374_v48, %v2776_v45  ;;  %v1376_v51 = vmul.f32 %v1374_v48, %v2778_v46  ;;  %s3583_s11 = sld [smem:[#allocation3 + $0xe6]] }
 0x13c   : >> { %v1308_v39 = vmul.f32 %v1306_v38, %v1298_v32  ;;  %v1341_v37 = vadd.f32 %v1340_v3, %v1337_v59  ;;  %v1381_v20 = vmul.f32 %v1380_v14, %v2793_v54  ;;  %v1382_v28 = vmul.f32 %v1380_v14, %v2795_v55  ;;  %s3586_s16 = sld [smem:[#allocation3 + $0xe7]] }
 0x13d   : >> { %v1313_v60 = vmul.f32 %v1312_v23, %v1297_v52  ;;  %v1342_v34 = vadd.f32 %v1340_v3, %v1338_v19  ;;  %v1377_v26 = vadd.f32 %v1375_v17, %v1371_v11  ;;  %v1378_v47 = vadd.f32 %v1376_v51, %v1372_v22 }
 0x13e   : >> { %v1314_v36 = vmul.f32 %v1312_v23, %v1298_v32  ;;  %v1319_v53 = vmul.f32 %v1318_v7, %v1297_v52  ;;  %v1320_v63 = vmul.f32 %v1318_v7, %v1298_v32  ;;  %v1358_v38 = vstv %s3519_s8  ;;  %s3589_s8 = sld [smem:[#allocation3 + $0x7a]] }
 0x13f   : >> { %v1303_v16 = vadd.f32 %v1301_v61, %v1257_v56  ;;  %v1304_v41 = vadd.f32 %v1302_v33, %v1258_v35  ;;  %v1343_v50 = vmax.f32 %v1341_v37, 0.0  ;;  %v1364_v31 = vstv %s3523_s18  ;;  %s3591_s18 = sld [smem:[#allocation3 + $0xe8]] }
 0x140   : >> { %v1309_v2 = vadd.f32 %v1307_v13, %v1263_v42  ;;  %v1383_v18 = vadd.f32 %v1381_v20, %v1377_v26  ;;  %v1384_v58 = vadd.f32 %v1382_v28, %v1378_v47  ;;  %v1416_v57 = vstv %s3530_s21  ;;  %s3598_s21 = sld [smem:[#allocation3 + $0x1b]] }
 0x141   : >> { %v1310_v9 = vadd.f32 %v1308_v39, %v1264_v62  ;;  %v1315_v23 = vadd.f32 %v1313_v60, %v1269_v27  ;;  %v1344_v52 = vmax.f32 %v1342_v34, 0.0  ;;  %v1386_v7 = vstv %s3526_s29  ;;  %s3595_s29 = sld [smem:[#allocation3 + $0xe9]] }
 0x142   : >> { %v1316_v56 = vadd.f32 %v1314_v36, %v1270_v10  ;;  %v1321_v35 = vadd.f32 %v1319_v53, %v1275_v49  ;;  %v1322_v32 = vadd.f32 %v1320_v63, %v1276_v15  ;;  %v1392_v12 = vstv %s3535_s20  ;;  %s3604_s20 = sld [smem:[#allocation3 + $0xea]] }
 0x143   : >> { %v1347_v42 = vmul.f32 %v1346_v40, %v1343_v50  ;;  %v1398_v3 = vstv %s3539_s25  ;;  %v1417_v48 = vmul.f32 %v1416_v57, %v2772_v43  ;;  %v1418_v61 = vmul.f32 %v1416_v57, %v2774_v44  ;;  %s3608_s25 = sld [smem:[#allocation3 + $0x3b]] }
 0x144   : >> { %v1387_v62 = vadd.f32 %v1386_v7, %v1383_v18  ;;  %v1388_v27 = vadd.f32 %v1386_v7, %v1384_v58  ;;  %v1420_v14 = vstv %s3543_s28  ;;  %v1426_v59 = vstv %s3547_s7  ;;  %s3612_s28 = sld [smem:[#allocation3 + $0xeb]] }
 0x145   : >> { %v1348_v10 = vmul.f32 %v1346_v40, %v1344_v52  ;;  %v1353_v49 = vmul.f32 %v1352_v21, %v1343_v50  ;;  %v1421_v15 = vmul.f32 %v1420_v14, %v2776_v45  ;;  %v1422_v19 = vmul.f32 %v1420_v14, %v2778_v46  ;;  %s3616_s7 = sld [smem:[#allocation3 + $0x5b]] }
 0x146   : >> { %v1354_v11 = vmul.f32 %v1352_v21, %v1344_v52  ;;  %v1359_v22 = vmul.f32 %v1358_v38, %v1343_v50  ;;  %v1360_v33 = vmul.f32 %v1358_v38, %v1344_v52  ;;  %v1365_v13 = vmul.f32 %v1364_v31, %v1343_v50 }
 0x147   : >> { %v1366_v17 = vmul.f32 %v1364_v31, %v1344_v52  ;;  %v1389_v51 = vmax.f32 %v1387_v62, 0.0  ;;  %v1404_v39 = vstv %s3555_s9  ;;  %v1427_v37 = vmul.f32 %v1426_v59, %v2793_v54  ;;  %s3618_s9 = sld [smem:[#allocation3 + $0x7b]] }
 0x148   : >> { %v1390_v40 = vmax.f32 %v1388_v27, 0.0  ;;  %v1423_v20 = vadd.f32 %v1421_v15, %v1417_v48  ;;  %v1424_v28 = vadd.f32 %v1422_v19, %v1418_v61  ;;  %v1428_v21 = vmul.f32 %v1426_v59, %v2795_v55 }
 0x149   : >> { %v1349_v60 = vadd.f32 %v1347_v42, %v1303_v16  ;;  %v1350_v34 = vadd.f32 %v1348_v10, %v1304_v41  ;;  %v1355_v26 = vadd.f32 %v1353_v49, %v1309_v2  ;;  %v1410_v47 = vstv %s3557_s1  ;;  %s3620_s1 = sld [smem:[#allocation3 + $0xec]] }
 0x14a   : >> { %v1356_v36 = vadd.f32 %v1354_v11, %v1310_v9  ;;  %v1361_v53 = vadd.f32 %v1359_v22, %v1315_v23  ;;  %v1362_v63 = vadd.f32 %v1360_v33, %v1316_v56  ;;  %v1367_v38 = vadd.f32 %v1365_v13, %v1321_v35 }
 0x14b   : >> { %v1368_v50 = vadd.f32 %v1366_v17, %v1322_v32  ;;  %v1393_v31 = vmul.f32 %v1392_v12, %v1389_v51  ;;  %v1432_v18 = vstv %s3561_s27  ;;  %v1438_v58 = vstv %s3564_s19  ;;  %s3624_s27 = sld [smem:[#allocation3 + $0xed]] }
 0x14c   : >> { %v1394_v16 = vmul.f32 %v1392_v12, %v1390_v40  ;;  %v1429_v41 = vadd.f32 %v1427_v37, %v1423_v20  ;;  %v1430_v2 = vadd.f32 %v1428_v21, %v1424_v28  ;;  %v1462_v57 = vstv %s3569_s30  ;;  %s3630_s19 = sld [smem:[#allocation3 + $0x1c]] }
 0x14d   : >> { %v1463_v9 = vmul.f32 %v1462_v57, %v2772_v43  ;;  %v1464_v23 = vmul.f32 %v1462_v57, %v2774_v44  ;;  %v1466_v52 = vstv %s3573_s4  ;;  %v1472_v7 = vstv %s3577_s10  ;;  %s3632_s30 = sld [smem:[#allocation3 + $0x3c]] }
 0x14e   : >> { %v1433_v56 = vadd.f32 %v1432_v18, %v1429_v41  ;;  %v1434_v35 = vadd.f32 %v1432_v18, %v1430_v2  ;;  %v1467_v32 = vmul.f32 %v1466_v52, %v2776_v45  ;;  %v1468_v12 = vmul.f32 %v1466_v52, %v2778_v46  ;;  %s3636_s4 = sld [smem:[#allocation3 + $0x5c]] }
 0x14f   : >> { %v1399_v42 = vmul.f32 %v1398_v3, %v1389_v51  ;;  %v1400_v48 = vmul.f32 %v1398_v3, %v1390_v40  ;;  %v1405_v61 = vmul.f32 %v1404_v39, %v1389_v51  ;;  %v1406_v62 = vmul.f32 %v1404_v39, %v1390_v40  ;;  %s3643_s10 = sld [smem:[#allocation3 + $0xee]] }
 0x150   : >> { %v1411_v27 = vmul.f32 %v1410_v47, %v1389_v51  ;;  %v1412_v14 = vmul.f32 %v1410_v47, %v1390_v40  ;;  %v1444_v59 = vstv %s3579_s6  ;;  %v1450_v10 = vstv %s3583_s11  ;;  %s3647_s6 = sld [smem:[#allocation3 + $0xef]] }
 0x151   : >> { %v1395_v49 = vadd.f32 %v1393_v31, %v1349_v60  ;;  %v1396_v15 = vadd.f32 %v1394_v16, %v1350_v34  ;;  %v1473_v19 = vmul.f32 %v1472_v7, %v2793_v54  ;;  %v1474_v11 = vmul.f32 %v1472_v7, %v2795_v55  ;;  %s3650_s11 = sld [smem:[#allocation3 + $0x7c]] }
 0x152   : >> { %v1435_v3 = vmax.f32 %v1433_v56, 0.0  ;;  %v1436_v22 = vmax.f32 %v1434_v35, 0.0  ;;  %v1469_v33 = vadd.f32 %v1467_v32, %v1463_v9  ;;  %v1470_v13 = vadd.f32 %v1468_v12, %v1464_v23 }
 0x153   : >> { %v1401_v17 = vadd.f32 %v1399_v42, %v1355_v26  ;;  %v1402_v51 = vadd.f32 %v1400_v48, %v1356_v36  ;;  %v1407_v39 = vadd.f32 %v1405_v61, %v1361_v53  ;;  %v1408_v37 = vadd.f32 %v1406_v62, %v1362_v63 }
 0x154   : >> { %v1413_v40 = vadd.f32 %v1411_v27, %v1367_v38  ;;  %v1414_v20 = vadd.f32 %v1412_v14, %v1368_v50  ;;  %v1456_v28 = vstv %s3586_s16  ;;  %v1508_v21 = vstv %s3598_s21  ;;  %s3654_s16 = sld [smem:[#allocation3 + $0x1d]] }
 0x155   : >> { %v1478_v60 = vstv %s3589_s8  ;;  %v1484_v34 = vstv %s3591_s18  ;;  %v1490_v47 = vstv %s3595_s29  ;;  %v1496_v31 = vstv %s3604_s20  ;;  %s3659_s8 = sld [smem:[#allocation3 + $0xf0]] }
 0x156   : >> { %v1439_v18 = vmul.f32 %v1438_v58, %v1435_v3  ;;  %v1440_v26 = vmul.f32 %v1438_v58, %v1436_v22  ;;  %v1475_v36 = vadd.f32 %v1473_v19, %v1469_v33  ;;  %v1476_v53 = vadd.f32 %v1474_v11, %v1470_v13  ;;  %s3663_s18 = sld [smem:[#allocation3 + $0xf1]] }
 0x157   : >> { %v1445_v63 = vmul.f32 %v1444_v59, %v1435_v3  ;;  %v1446_v38 = vmul.f32 %v1444_v59, %v1436_v22  ;;  %v1509_v50 = vmul.f32 %v1508_v21, %v2772_v43  ;;  %v1512_v16 = vstv %s3608_s25  ;;  %s3667_s29 = sld [smem:[#allocation3 + $0x3d]] }
 0x158   : >> { %v1479_v41 = vadd.f32 %v1478_v60, %v1475_v36  ;;  %v1510_v2 = vmul.f32 %v1508_v21, %v2774_v44  ;;  %v1513_v57 = vmul.f32 %v1512_v16, %v2776_v45  ;;  %v1514_v58 = vmul.f32 %v1512_v16, %v2778_v46  ;;  %s3671_s21 = sld [smem:[#allocation3 + $0x5d]] }
 0x159   : >> { %v1451_v9 = vmul.f32 %v1450_v10, %v1435_v3  ;;  %v1452_v23 = vmul.f32 %v1450_v10, %v1436_v22  ;;  %v1480_v52 = vadd.f32 %v1478_v60, %v1476_v53  ;;  %v1518_v7 = vstv %s3616_s7  ;;  %s3679_s25 = sld [smem:[#allocation3 + $0xf2]] }
 0x15a   : >> { %v1441_v56 = vadd.f32 %v1439_v18, %v1395_v49  ;;  %v1457_v35 = vmul.f32 %v1456_v28, %v1435_v3  ;;  %v1458_v32 = vmul.f32 %v1456_v28, %v1436_v22  ;;  %v1502_v12 = vstv %s3612_s28  ;;  %s3681_s28 = sld [smem:[#allocation3 + $0xf3]] }
 0x15b   : >> { %v1442_v42 = vadd.f32 %v1440_v26, %v1396_v15  ;;  %v1447_v48 = vadd.f32 %v1445_v63, %v1401_v17  ;;  %v1448_v61 = vadd.f32 %v1446_v38, %v1402_v51  ;;  %v1481_v62 = vmax.f32 %v1479_v41, 0.0  ;;  %s3685_s20 = sld [smem:[#allocation3 + $0x7d]] }
 0x15c   : >> { %v1515_v27 = vadd.f32 %v1513_v57, %v1509_v50  ;;  %v1516_v14 = vadd.f32 %v1514_v58, %v1510_v2  ;;  %v1519_v59 = vmul.f32 %v1518_v7, %v2793_v54  ;;  %v1520_v10 = vmul.f32 %v1518_v7, %v2795_v55  ;;  %s3688_s7 = sld [smem:[#allocation3 + $0xf4]] }
 0x15d   : >> { %v1453_v49 = vadd.f32 %v1451_v9, %v1407_v39  ;;  %v1454_v15 = vadd.f32 %v1452_v23, %v1408_v37  ;;  %v1482_v19 = vmax.f32 %v1480_v52, 0.0  ;;  %v1554_v11 = vstv %s3630_s19  ;;  %s3705_s19 = sld [smem:[#allocation3 + $0xf5]] }
 0x15e   : >> { %v1459_v3 = vadd.f32 %v1457_v35, %v1413_v40  ;;  %v1460_v22 = vadd.f32 %v1458_v32, %v1414_v20  ;;  %v1524_v33 = vstv %s3618_s9  ;;  %v1558_v13 = vstv %s3632_s30  ;;  %s3693_s9 = sld [smem:[#allocation3 + $0x1e]] }
 0x15f   : >> { %v1485_v17 = vmul.f32 %v1484_v34, %v1481_v62  ;;  %v1530_v51 = vstv %s3620_s1  ;;  %v1536_v28 = vstv %s3624_s27  ;;  %v1564_v21 = vstv %s3636_s4  ;;  %s3697_s1 = sld [smem:[#allocation3 + $0x3e]] }
 0x160   : >> { %v1521_v60 = vadd.f32 %v1519_v59, %v1515_v27  ;;  %v1522_v39 = vadd.f32 %v1520_v10, %v1516_v14  ;;  %v1555_v37 = vmul.f32 %v1554_v11, %v2772_v43  ;;  %v1556_v18 = vmul.f32 %v1554_v11, %v2774_v44  ;;  %s3701_s27 = sld [smem:[#allocation3 + $0x5e]] }
 0x161   : >> { %v1486_v40 = vmul.f32 %v1484_v34, %v1482_v19  ;;  %v1491_v20 = vmul.f32 %v1490_v47, %v1481_v62  ;;  %v1559_v26 = vmul.f32 %v1558_v13, %v2776_v45  ;;  %v1560_v36 = vmul.f32 %v1558_v13, %v2778_v46  ;;  %s3708_s30 = sld [smem:[#allocation3 + $0xf6]] }
 0x162   : >> { %v1492_v53 = vmul.f32 %v1490_v47, %v1482_v19  ;;  %v1525_v63 = vadd.f32 %v1524_v33, %v1521_v60  ;;  %v1565_v38 = vmul.f32 %v1564_v21, %v2793_v54  ;;  %v1566_v50 = vmul.f32 %v1564_v21, %v2795_v55  ;;  %s3711_s4 = sld [smem:[#allocation3 + $0xf7]] }
 0x163   : >> { %v1497_v16 = vmul.f32 %v1496_v31, %v1481_v62  ;;  %v1526_v34 = vadd.f32 %v1524_v33, %v1522_v39  ;;  %v1561_v41 = vadd.f32 %v1559_v26, %v1555_v37  ;;  %v1562_v2 = vadd.f32 %v1560_v36, %v1556_v18 }
 0x164   : >> { %v1498_v57 = vmul.f32 %v1496_v31, %v1482_v19  ;;  %v1503_v58 = vmul.f32 %v1502_v12, %v1481_v62  ;;  %v1504_v9 = vmul.f32 %v1502_v12, %v1482_v19  ;;  %v1542_v47 = vstv %s3643_s10  ;;  %s3713_s10 = sld [smem:[#allocation3 + $0x7e]] }
 0x165   : >> { %v1487_v23 = vadd.f32 %v1485_v17, %v1441_v56  ;;  %v1488_v52 = vadd.f32 %v1486_v40, %v1442_v42  ;;  %v1527_v7 = vmax.f32 %v1525_v63, 0.0  ;;  %v1548_v35 = vstv %s3647_s6  ;;  %s3717_s6 = sld [smem:[#allocation3 + $0xf8]] }
 0x166   : >> { %v1493_v32 = vadd.f32 %v1491_v20, %v1447_v48  ;;  %v1567_v27 = vadd.f32 %v1565_v38, %v1561_v41  ;;  %v1568_v14 = vadd.f32 %v1566_v50, %v1562_v2  ;;  %v1600_v59 = vstv %s3654_s16  ;;  %s3726_s16 = sld [smem:[#allocation3 + $0xf9]] }
 0x167   : >> { %v1494_v10 = vadd.f32 %v1492_v53, %v1448_v61  ;;  %v1499_v31 = vadd.f32 %v1497_v16, %v1453_v49  ;;  %v1528_v62 = vmax.f32 %v1526_v34, 0.0  ;;  %v1570_v12 = vstv %s3650_s11  ;;  %s3720_s11 = sld [smem:[#allocation3 + $0x1f]] }
 0x168   : >> { %v1500_v56 = vadd.f32 %v1498_v57, %v1454_v15  ;;  %v1505_v42 = vadd.f32 %v1503_v58, %v1459_v3  ;;  %v1506_v19 = vadd.f32 %v1504_v9, %v1460_v22  ;;  %v1576_v11 = vstv %s3659_s8  ;;  %s3730_s8 = sld [smem:[#allocation3 + $0x3f]] }
 0x169   : >> { %v1531_v48 = vmul.f32 %v1530_v51, %v1527_v7  ;;  %v1582_v33 = vstv %s3663_s18  ;;  %v1601_v13 = vmul.f32 %v1600_v59, %v2772_v43  ;;  %v1602_v17 = vmul.f32 %v1600_v59, %v2774_v44  ;;  %s3734_s18 = sld [smem:[#allocation3 + $0xfa]] }
 0x16a   : >> { %v1571_v61 = vadd.f32 %v1570_v12, %v1567_v27  ;;  %v1572_v49 = vadd.f32 %v1570_v12, %v1568_v14  ;;  %v1604_v21 = vstv %s3667_s29  ;;  %v1610_v60 = vstv %s3671_s21  ;;  %s3737_s29 = sld [smem:[#allocation3 + $0x5f]] }
 0x16b   : >> { %v1532_v15 = vmul.f32 %v1530_v51, %v1528_v62  ;;  %v1537_v3 = vmul.f32 %v1536_v28, %v1527_v7  ;;  %v1605_v22 = vmul.f32 %v1604_v21, %v2776_v45  ;;  %v1606_v39 = vmul.f32 %v1604_v21, %v2778_v46  ;;  %s3740_s21 = sld [smem:[#allocation3 + $0xfb]] }
 0x16c   : >> { %v1538_v37 = vmul.f32 %v1536_v28, %v1528_v62  ;;  %v1543_v18 = vmul.f32 %v1542_v47, %v1527_v7  ;;  %v1544_v40 = vmul.f32 %v1542_v47, %v1528_v62  ;;  %v1549_v20 = vmul.f32 %v1548_v35, %v1527_v7 }
 0x16d   : >> { %v1550_v26 = vmul.f32 %v1548_v35, %v1528_v62  ;;  %v1573_v36 = vmax.f32 %v1571_v61, 0.0  ;;  %v1588_v53 = vstv %s3679_s25  ;;  %v1611_v63 = vmul.f32 %v1610_v60, %v2793_v54  ;;  %s3744_s25 = sld [smem:[#allocation3 + $0x7f]] }
 0x16e   : >> { %v1574_v51 = vmax.f32 %v1572_v49, 0.0  ;;  %v1607_v38 = vadd.f32 %v1605_v22, %v1601_v13  ;;  %v1608_v50 = vadd.f32 %v1606_v39, %v1602_v17  ;;  %v1612_v16 = vmul.f32 %v1610_v60, %v2795_v55 }
 0x16f   : >> { %v1533_v28 = vadd.f32 %v1531_v48, %v1487_v23  ;;  %v1534_v34 = vadd.f32 %v1532_v15, %v1488_v52  ;;  %v1539_v41 = vadd.f32 %v1537_v3, %v1493_v32  ;;  %v1594_v2 = vstv %s3681_s28  ;;  %s3749_s28 = sld [smem:[#allocation3 + $0xfc]] }
 0x170   : >> { %v1540_v57 = vadd.f32 %v1538_v37, %v1494_v10  ;;  %v1545_v58 = vadd.f32 %v1543_v18, %v1499_v31  ;;  %v1546_v9 = vadd.f32 %v1544_v40, %v1500_v56  ;;  %v1551_v47 = vadd.f32 %v1549_v20, %v1505_v42 }
 0x171   : >> { %v1552_v7 = vadd.f32 %v1550_v26, %v1506_v19  ;;  %v1577_v35 = vmul.f32 %v1576_v11, %v1573_v36  ;;  %v1616_v27 = vstv %s3685_s20  ;;  %v1622_v14 = vstv %s3688_s7  ;;  %s3751_s20 = sld [smem:[#allocation3 + $0xfd]] }
 0x172   : >> { %v1578_v23 = vmul.f32 %v1576_v11, %v1574_v51  ;;  %v1613_v52 = vadd.f32 %v1611_v63, %v1607_v38  ;;  %v1614_v32 = vadd.f32 %v1612_v16, %v1608_v50  ;;  %v1646_v59 = vstv %s3693_s9  ;;  %s3759_s7 = sld [smem:[#allocation3 + $0xfe]] }
 0x173   : >> { %v1647_v10 = vmul.f32 %v1646_v59, %v2772_v43  ;;  %v1648_v31 = vmul.f32 %v1646_v59, %v2774_v44  ;;  %v1650_v62 = vstv %s3697_s1  ;;  %v1656_v12 = vstv %s3701_s27  ;;  %s3763_s9 = sld [smem:[#allocation3 + $0xff]]  ;;  %s2342_s1 = sshll.u32 %s2700_s5, 2 }
 0x174   : >> { %v1617_v56 = vadd.f32 %v1616_v27, %v1613_v52  ;;  %v1618_v42 = vadd.f32 %v1616_v27, %v1614_v32  ;;  %v1651_v19 = vmul.f32 %v1650_v62, %v2776_v45  ;;  %v1652_v11 = vmul.f32 %v1650_v62, %v2778_v46  ;;  %s1869_s27 = scalar_lea.vmem %s2692_s3, %s2342_s1 [#allocation7]  ;;  %s2352_s5 = sshll.u32 (%p150_p11), %s2594_s0, 8 }
 0x175   : >> { %v1583_v48 = vmul.f32 %v1582_v33, %v1573_v36  ;;  %v1584_v13 = vmul.f32 %v1582_v33, %v1574_v51  ;;  %v1589_v17 = vmul.f32 %v1588_v53, %v1573_v36  ;;  %v1590_v61 = vmul.f32 %v1588_v53, %v1574_v51 }
 0x176   : >> { %v1595_v49 = vmul.f32 %v1594_v2, %v1573_v36  ;;  %v1596_v21 = vmul.f32 %v1594_v2, %v1574_v51  ;;  %v1628_v60 = vstv %s3705_s19  ;;  %v1634_v15 = vstv %s3708_s30 }
 0x177   : >> { %v1579_v3 = vadd.f32 %v1577_v35, %v1533_v28  ;;  %v1580_v22 = vadd.f32 %v1578_v23, %v1534_v34  ;;  %v1619_v39 = vmax.f32 %v1617_v56, 0.0  ;;  %v1657_v37 = vmul.f32 %v1656_v12, %v2793_v54 }
 0x178   : >> { %v1620_v33 = vmax.f32 %v1618_v42, 0.0  ;;  %v1653_v18 = vadd.f32 %v1651_v19, %v1647_v10  ;;  %v1654_v40 = vadd.f32 %v1652_v11, %v1648_v31  ;;  %v1658_v20 = vmul.f32 %v1656_v12, %v2795_v55 }
 0x179   : >> { %v1585_v26 = vadd.f32 %v1583_v48, %v1539_v41  ;;  %v1586_v36 = vadd.f32 %v1584_v13, %v1540_v57  ;;  %v1591_v53 = vadd.f32 %v1589_v17, %v1545_v58  ;;  %v1592_v63 = vadd.f32 %v1590_v61, %v1546_v9 }
 0x17a   : >> { %v1597_v51 = vadd.f32 %v1595_v49, %v1551_v47  ;;  %v1598_v38 = vadd.f32 %v1596_v21, %v1552_v7  ;;  %v1640_v50 = vstv %s3711_s4  ;;  %v1692_v16 = vstv %s3720_s11  ;;  %s1990_s4 = scalar_lea.hbm (%p150_p11), %s3846_s2, %s2352_s5 }
 0x17b   : >> { %v1623_v28 = vmul.f32 %v1622_v14, %v1619_v39  ;;  %v1662_v34 = vstv %s3713_s10  ;;  %v1668_v2 = vstv %s3717_s6  ;;  %v1674_v35 = vstv %s3726_s16  ;;  %s1992_s10 = sshll.u32 (%p150_p11), %s2692_s3, 4  ;;  %s1978_s6 = scalar_lea.sflag (%p150_p11), [#allocation6], %s2671_s26  ;;  %s1993_s10 = int_to_ptr.vmem [resolvable:$true] %s1992_s10 }
 0x17c   : >> { %v1624_v27 = vmul.f32 %v1622_v14, %v1620_v33  ;;  %v1629_v23 = vmul.f32 %v1628_v60, %v1619_v39  ;;  %v1659_v41 = vadd.f32 %v1657_v37, %v1653_v18  ;;  %v1660_v57 = vadd.f32 %v1658_v20, %v1654_v40  ;;  %s2474_s11 = scalar_lea.vmem (%p150_p11), %s1993_s10, 256  ;;  %s2554_s16 = smov (%p150_p11), [#allocation7]  }
 0x17d   : >> { %v1630_v58 = vmul.f32 %v1628_v60, %v1620_v33  ;;  %v1693_v9 = vmul.f32 %v1692_v16, %v2772_v43  ;;  %v1694_v47 = vmul.f32 %v1692_v16, %v2774_v44  ;;  %v1696_v7 = vstv %s3730_s8  ;;  %p2475_p12 = scmp.ne.s32.totalorder (%p150_p11), %s1993_s10, %s2474_s11  ;;  %s2478_s22 = sshll.u32 (%p150_p11), %s2554_s16, 4  ;;  %s2479_s22 = int_to_ptr.vmem [resolvable:$false] %s2478_s22 }
 0x17e   : >> { %v1663_v52 = vadd.f32 %v1662_v34, %v1659_v41  ;;  %v1664_v32 = vadd.f32 %v1662_v34, %v1660_v57  ;;  %v1697_v59 = vmul.f32 %v1696_v7, %v2776_v45  ;;  %v1698_v14 = vmul.f32 %v1696_v7, %v2778_v46  ;;  %s2480_s8 = scalar_lea.vmem (%p150_p11), %s2479_s22, 512  ;;  %p2481_p5 = scmp.lt.s32.totalorder (%p150_p11), %s1993_s10, %s2479_s22 }
 0x17f   : >> { %v1635_v10 = vmul.f32 %v1634_v15, %v1619_v39  ;;  %v1636_v31 = vmul.f32 %v1634_v15, %v1620_v33  ;;  %v1641_v62 = vmul.f32 %v1640_v50, %v1619_v39  ;;  %v1702_v12 = vstv %s3737_s29  ;;  %p2476_p1 = pnand (%p150_p11), %p2475_p12, %p3862_p13  ;;  %p2482_p8 = scmp.lt.s32.totalorder (%p150_p11), %s2480_s8, %s2474_s11 }
 0x180   : >> { %v1625_v56 = vadd.f32 %v1623_v28, %v1579_v3  ;;  %v1642_v42 = vmul.f32 %v1640_v50, %v1620_v33  ;;  %v1680_v19 = vstv %s3734_s18  ;;  %v1686_v43 = vstv %s3740_s21 }
 0x181   : >> { %v1626_v44 = vadd.f32 %v1624_v27, %v1580_v22  ;;  %v1631_v11 = vadd.f32 %v1629_v23, %v1585_v26  ;;  %v1665_v45 = vmax.f32 %v1663_v52, 0.0  ;;  %v1666_v48 = vmax.f32 %v1664_v32, 0.0  ;;  %p2477_p3 = pneg (%p150_p11), %p2476_p1  ;;  %p2483_p10 = por (%p150_p11), %p2482_p8, %p2481_p5 }
 0x182   : >> { %v1699_v46 = vadd.f32 %v1697_v59, %v1693_v9  ;;  %v1700_v13 = vadd.f32 %v1698_v14, %v1694_v47  ;;  %v1703_v17 = vmul.f32 %v1702_v12, %v2793_v54  ;;  %v1704_v61 = vmul.f32 %v1702_v12, %v2795_v55 }
 0x183   : >> { %v1632_v49 = vadd.f32 %v1630_v58, %v1586_v36  ;;  %v1637_v21 = vadd.f32 %v1635_v10, %v1591_v53  ;;  %v1638_v60 = vadd.f32 %v1636_v31, %v1592_v63  ;;  %v1643_v15 = vadd.f32 %v1641_v62, %v1597_v51  ;;  %p2484_p2 = pnand (%p150_p11), %p2483_p10, %p2477_p3 }
 0x184   : >> { %v1644_v3 = vadd.f32 %v1642_v42, %v1598_v38  ;;  %v1708_v39 = vstv %s3744_s25  ;;  %v1714_v37 = vstv %s3749_s28  ;;  %v1720_v33 = vstv %s3751_s20 }
 0x185   : >> { %v1669_v22 = vmul.f32 %v1668_v2, %v1665_v45  ;;  %v1670_v18 = vmul.f32 %v1668_v2, %v1666_v48  ;;  %v1675_v40 = vmul.f32 %v1674_v35, %v1665_v45  ;;  %v1676_v20 = vmul.f32 %v1674_v35, %v1666_v48 }
 0x186   : >> { %v1681_v26 = vmul.f32 %v1680_v19, %v1665_v45  ;;  %v1682_v50 = vmul.f32 %v1680_v19, %v1666_v48  ;;  %v1705_v16 = vadd.f32 %v1703_v17, %v1699_v46  ;;  %v1706_v54 = vadd.f32 %v1704_v61, %v1700_v13 }
 0x187   : >> { %v1687_v28 = vmul.f32 %v1686_v43, %v1665_v45  ;;  %v1688_v55 = vmul.f32 %v1686_v43, %v1666_v48  ;;  %v1787_v36 = vsub.f32 0.0, %v2831_v24  ;;  %v1788_v53 = vsub.f32 0.0, %v2833_v25 }
 0x188   : >> { %v1709_v63 = vadd.f32 %v1708_v39, %v1705_v16  ;;  %v1710_v51 = vadd.f32 %v1708_v39, %v1706_v54  ;;  %v1726_v38 = vstv %s3759_s7  ;;  %v1732_v34 = vstv %s3763_s9 }
 0x189   : >> { %v1671_v27 = vadd.f32 %v1669_v22, %v1625_v56  ;;  %v1672_v23 = vadd.f32 %v1670_v18, %v1626_v44  ;;  %v1677_v41 = vadd.f32 %v1675_v40, %v1631_v11  ;;  %v1678_v2 = vadd.f32 %v1676_v20, %v1632_v49 }
 0x18a   : >> { %v1683_v57 = vadd.f32 %v1681_v26, %v1637_v21  ;;  %v1684_v35 = vadd.f32 %v1682_v50, %v1638_v60  ;;  %v1711_v58 = vmax.f32 %v1709_v63, 0.0  ;;  %v1712_v9 = vmax.f32 %v1710_v51, 0.0 }
 0x18b   : >> { %v1689_v47 = vadd.f32 %v1687_v28, %v1643_v15  ;;  %v1690_v7 = vadd.f32 %v1688_v55, %v1644_v3  ;;  %v1792_v52 = vrot.slane %v1787_v36, %v2704_v8  ;;  %v1796_v24 = vrot.slane %v1788_v53, %v2704_v8 }
 0x18c   : >> { %v1715_v32 = vmul.f32 %v1714_v37, %v1711_v58  ;;  %v1716_v25 = vmul.f32 %v1714_v37, %v1712_v9  ;;  %v1721_v59 = vmul.f32 %v1720_v33, %v1711_v58  ;;  %v1722_v14 = vmul.f32 %v1720_v33, %v1712_v9 }
 0x18d   : >> { %v1727_v10 = vmul.f32 %v1726_v38, %v1711_v58  ;;  %v1728_v31 = vmul.f32 %v1726_v38, %v1712_v9  ;;  %v1733_v62 = vmul.f32 %v1732_v34, %v1711_v58  ;;  %v1734_v12 = vmul.f32 %v1732_v34, %v1712_v9 }
 0x18e   : >> { %v1717_v56 = vadd.f32 %v1715_v32, %v1671_v27  ;;  %v1718_v42 = vadd.f32 %v1716_v25, %v1672_v23  ;;  %v1723_v19 = vadd.f32 %v1721_v59, %v1677_v41  ;;  %v1724_v43 = vadd.f32 %v1722_v14, %v1678_v2 }
 0x18f   : >> { %v1729_v44 = vadd.f32 %v1727_v10, %v1683_v57  ;;  %v1730_v11 = vadd.f32 %v1728_v31, %v1684_v35  ;;  %v1735_v45 = vadd.f32 %v1733_v62, %v1689_v47  ;;  %v1736_v48 = vadd.f32 %v1734_v12, %v1690_v7 }
 0x190   : >> { %v1737_v46 = vmax.f32 %v1717_v56, 0.0  ;;  %v1738_v13 = vmax.f32 %v1718_v42, 0.0  ;;  %v1739_v17 = vsub.f32 0.0, %v1723_v19  ;;  %v1740_v8 = vsub.f32 0.0, %v1724_v43 }
 0x191   : >> { %v1755_v61 = vsub.f32 0.0, %v1729_v44  ;;  %v1756_v49 = vsub.f32 0.0, %v1730_v11  ;;  %v1771_v21 = vsub.f32 0.0, %v1735_v45  ;;  %v1772_v60 = vsub.f32 0.0, %v1736_v48 }
 0x192   : >> { %v1741_v15 = vmul.f32 1.442695, %v1739_v17  ;;  %v1743_v3 = vmul.f32 1.442695, %v1740_v8  ;;  %v1797_v39 = vmul.f32 %v1792_v52, %v1737_v46  ;;  %v1798_v22 = vmul.f32 %v1796_v24, %v1738_v13 }
 0x193   : >> { %v1757_v37 = vmul.f32 1.442695, %v1755_v61  ;;  %v1759_v33 = vmul.f32 1.442695, %v1756_v49  ;;  %v1773_v18 = vmul.f32 1.442695, %v1771_v21 }
 0x194   : >> { %2410 = vpow2.f32 %v1741_v15  ;;  %v1775_v40 = vmul.f32 1.442695, %v1772_v60  ;;  %v1799_v20 = vmul.f32 1.442695, %v1797_v39  ;;  %v1801_v26 = vmul.f32 1.442695, %v1798_v22 }
 0x195   : >> { %2412 = vpow2.f32 %v1743_v3  ;;  %v2553_v15 = vmov 1966171168  }
 0x196   : >> { %2414 = vpow2.f32 %v1757_v37  ;;  %v1854_v3 = vunpack.c.l.s4 %v2553_v15 }
 0x197   : >> { %2416 = vpow2.f32 %v1759_v33 }
 0x198   : >> { %2418 = vpow2.f32 %v1773_v18 }
 0x199   : >> { %2420 = vpow2.f32 %v1775_v40 }
 0x19a   : >> { %2422 = vpow2.f32 %v1799_v20 }
 0x19b   : >> { %2424 = vpow2.f32 %v1801_v26 }
 0x1a1   : >> { %v2411_v50 = vpop.eup %2410 }
 0x1a2   : >> { %v2413_v16 = vpop.eup %2412  ;;  %v1745_v54 = vadd.f32 1.0, %v2411_v50 }
 0x1a3   : >> { %v2415_v28 = vpop.eup %2414  ;;  %v1746_v55 = vadd.f32 1.0, %v2413_v16 }
 0x1a4   : >> { %v2417_v36 = vpop.eup %2416  ;;  %2426 = vrcp.f32 %v1745_v54  ;;  %v1761_v53 = vadd.f32 1.0, %v2415_v28 }
 0x1a5   : >> { %v2419_v63 = vpop.eup %2418  ;;  %2428 = vrcp.f32 %v1746_v55  ;;  %v1762_v51 = vadd.f32 1.0, %v2417_v36 }
 0x1a6   : >> { %v2421_v38 = vpop.eup %2420  ;;  %2430 = vrcp.f32 %v1761_v53  ;;  %v1777_v34 = vadd.f32 1.0, %v2419_v63 }
 0x1a7   : >> { %v2423_v27 = vpop.eup %2422  ;;  %2432 = vrcp.f32 %v1762_v51  ;;  %v1778_v23 = vadd.f32 1.0, %v2421_v38 }
 0x1a8   : >> { %v2425_v41 = vpop.eup %2424  ;;  %2434 = vrcp.f32 %v1777_v34  ;;  %v1803_v2 = vsub.f32 1.0, %v2423_v27 }
 0x1a9   : >> { %2436 = vrcp.f32 %v1778_v23  ;;  %v1804_v57 = vsub.f32 1.0, %v2425_v41 }
 0x1aa   : >> { %v1805_v35 = vmul.f32 %v2687_v4, %v1803_v2 }
 0x1ab   : >> { %v1806_v58 = vmul.f32 %v2687_v4, %v1804_v57 }
 0x1ac   : >> { %v1807_v9 = vsub.f32 1.0, %v1805_v35 }
 0x1ad   : >> { %v1808_v47 = vsub.f32 1.0, %v1806_v58 }
 0x1ae   : >> { %v1810_v7 = vrot.slane %v1807_v9, 7 }
 0x1af   : >> { %v1811_v52 = vrot.slane %v1808_v47, 7 }
 0x1b0   : >> { %v1812_v24 = vsel %vm1809_vm1, %v1810_v7, 1.0 }
 0x1b1   : >> { %v2427_v32 = vpop.eup %2426  ;;  %v1813_v25 = vsel %vm1809_vm1, %v1811_v52, 1.0  ;;  %v1814_v59 = vmul.f32 %v1812_v24, %v1807_v9 }
 0x1b2   : >> { %v2429_v14 = vpop.eup %2428  ;;  %v1815_v10 = vmul.f32 %v1813_v25, %v1808_v47  ;;  %v1749_v44 = vmul.f32 %v2427_v32, %v1745_v54  ;;  %v1855_v54 = vunpack.c.0.s8 %v1854_v3 }
 0x1b3   : >> { %v2431_v31 = vpop.eup %2430  ;;  %v1817_v62 = vrot.slane %v1814_v59, 6  ;;  %v1750_v45 = vmul.f32 %v2429_v14, %v1746_v55 }
 0x1b4   : >> { %v2433_v12 = vpop.eup %2432  ;;  %v1818_v56 = vrot.slane %v1815_v10, 6  ;;  %v1765_v48 = vmul.f32 %v2431_v31, %v1761_v53  ;;  %v1751_v21 = vsub.f32 2.0, %v1749_v44  ;;  %v3790_v2 = vsub.s32 %v1855_v54, %v2683_v1 }
 0x1b5   : >> { %v2435_v42 = vpop.eup %2434  ;;  %v1819_v19 = vsel %vm1816_vm2, %v1817_v62, 1.0  ;;  %v1766_v17 = vmul.f32 %v2433_v12, %v1762_v51  ;;  %v1752_v39 = vsub.f32 2.0, %v1750_v45 }
 0x1b6   : >> { %v2437_v43 = vpop.eup %2436  ;;  %v1820_v11 = vsel %vm1816_vm2, %v1818_v56, 1.0  ;;  %v1781_v46 = vmul.f32 %v2435_v42, %v1777_v34  ;;  %v1821_v13 = vmul.f32 %v1819_v19, %v1814_v59  ;;  %v1767_v37 = vsub.f32 2.0, %v1765_v48 }
 0x1b7   : >> { %v1782_v8 = vmul.f32 %v2437_v43, %v1778_v23  ;;  %v1822_v61 = vmul.f32 %v1820_v11, %v1815_v10  ;;  %v1768_v18 = vsub.f32 2.0, %v1766_v17  ;;  %v1753_v28 = vmul.f32 %v2427_v32, %v1751_v21 }
 0x1b8   : >> { %v1824_v49 = vrot.slane %v1821_v13, 4  ;;  %v1783_v33 = vsub.f32 2.0, %v1781_v46  ;;  %v1769_v55 = vmul.f32 %v2431_v31, %v1767_v37  ;;  %v1754_v63 = vmul.f32 %v2429_v14, %v1752_v39 }
 0x1b9   : >> { %v1825_v60 = vrot.slane %v1822_v61, 4  ;;  %v1784_v40 = vsub.f32 2.0, %v1782_v8  ;;  %v1770_v51 = vmul.f32 %v2433_v12, %v1768_v18 }
 0x1ba   : >> { %v1826_v22 = vsel %vm1823_vm3, %v1824_v49, 1.0  ;;  %v1785_v36 = vmul.f32 %v2435_v42, %v1783_v33 }
 0x1bb   : >> { %v1827_v20 = vsel %vm1823_vm3, %v1825_v60, 1.0  ;;  %v1828_v26 = vmul.f32 %v1826_v22, %v1821_v13  ;;  %v1786_v38 = vmul.f32 %v2437_v43, %v1784_v40 }
 0x1bc   : >> { %v1829_v50 = vmul.f32 %v1827_v20, %v1822_v61 }
 0x1bd   : >> { %v1830_v16 = vrot.slane %v1828_v26, 7 }
 0x1be   : >> { %v1831_v53 = vrot.slane %v1829_v50, 7 }
 0x1bf   : >> { %v1832_v34 = vsel %vm1809_vm1, %v1830_v16, 1.0 }
 0x1c0   : >> { %v1833_v27 = vsel %vm1809_vm1, %v1831_v53, 1.0  ;;  %v1834_v23 = vmul.f32 %v1832_v34, %v1805_v35 }
 0x1c1   : >> { %v1835_v41 = vmul.f32 %v1833_v27, %v1806_v58 }
 0x1c2   : >> { %v1836_v57 = vmul.f32 %v1834_v23, %v1753_v28  ;;  %v1875_v9 = vmul.f32 %v1834_v23, %v1769_v55  ;;  %v1909_v47 = vmul.f32 %v1834_v23, %v1785_v36  ;;  %v1943_v7 = vmul.f32 %v1834_v23, %v2748_v29 }
 0x1c3   : >> { %v1837_v52 = vmul.f32 %v1835_v41, %v1754_v63  ;;  %v1876_v24 = vmul.f32 %v1835_v41, %v1770_v51  ;;  %v1910_v32 = vmul.f32 %v1835_v41, %v1786_v38  ;;  %v1944_v25 = vmul.f32 %v1835_v41, %v2750_v30 }
 0x1c4   : >> { %v1838_v59 = vrot.slane %v1836_v57, 4  ;;  %v1877_v14 = vrot.slane %v1875_v9, 4  ;;  %v1911_v10 = vrot.slane %v1909_v47, 4  ;;  %v1945_v31 = vrot.slane %v1943_v7, 4 }
 0x1c5   : >> { %v1844_v62 = vrot.slane %v1837_v52, 4  ;;  %v1883_v35 = vrot.slane %v1876_v24, 4  ;;  %v1917_v58 = vrot.slane %v1910_v32, 4  ;;  %v1951_v12 = vrot.slane %v1944_v25, 4 }
 0x1c6   : >> { %v1839_v56 = vadd.f32 %v1838_v59, %v1836_v57  ;;  %v1878_v42 = vadd.f32 %v1877_v14, %v1875_v9  ;;  %v1912_v19 = vadd.f32 %v1911_v10, %v1909_v47  ;;  %v1946_v43 = vadd.f32 %v1945_v31, %v1943_v7 }
 0x1c7   : >> { %v1845_v44 = vadd.f32 %v1844_v62, %v1837_v52  ;;  %v1884_v11 = vadd.f32 %v1883_v35, %v1876_v24  ;;  %v1918_v29 = vadd.f32 %v1917_v58, %v1910_v32  ;;  %v1952_v45 = vadd.f32 %v1951_v12, %v1944_v25 }
 0x1c8   : >> { %v1840_v48 = vrot.slane %v1839_v56, 2  ;;  %v1879_v46 = vrot.slane %v1878_v42, 2  ;;  %v1913_v13 = vrot.slane %v1912_v19, 2  ;;  %v1947_v30 = vrot.slane %v1946_v43, 2 }
 0x1c9   : >> { %v1846_v17 = vrot.slane %v1845_v44, 2  ;;  %v1885_v8 = vrot.slane %v1884_v11, 2  ;;  %v1919_v61 = vrot.slane %v1918_v29, 2  ;;  %v1953_v49 = vrot.slane %v1952_v45, 2 }
 0x1ca   : >> { %v1841_v21 = vadd.f32 %v1840_v48, %v1839_v56  ;;  %v1880_v60 = vadd.f32 %v1879_v46, %v1878_v42  ;;  %v1914_v15 = vadd.f32 %v1913_v13, %v1912_v19  ;;  %v1948_v3 = vadd.f32 %v1947_v30, %v1946_v43 }
 0x1cb   : >> { %v1847_v39 = vadd.f32 %v1846_v17, %v1845_v44  ;;  %v1886_v37 = vadd.f32 %v1885_v8, %v1884_v11  ;;  %v1920_v33 = vadd.f32 %v1919_v61, %v1918_v29  ;;  %v1954_v22 = vadd.f32 %v1953_v49, %v1952_v45 }
 0x1cc   : >> { %v1842_v18 = vrot.slane %v1841_v21, 1  ;;  %v1881_v40 = vrot.slane %v1880_v60, 1  ;;  %v1915_v20 = vrot.slane %v1914_v15, 1  ;;  %v1949_v26 = vrot.slane %v1948_v3, 1 }
 0x1cd   : >> { %v1848_v50 = vrot.slane %v1847_v39, 1  ;;  %v1887_v16 = vrot.slane %v1886_v37, 1  ;;  %v1921_v54 = vrot.slane %v1920_v33, 1  ;;  %v1955_v28 = vrot.slane %v1954_v22, 1 }
 0x1ce   : >> { %v1843_v55 = vadd.f32 %v1842_v18, %v1841_v21  ;;  %v1882_v36 = vadd.f32 %v1881_v40, %v1880_v60  ;;  %v1916_v53 = vadd.f32 %v1915_v20, %v1914_v15  ;;  %v1950_v63 = vadd.f32 %v1949_v26, %v1948_v3 }
 0x1cf   : >> { %v1849_v51 = vadd.f32 %v1848_v50, %v1847_v39  ;;  %v1888_v38 = vadd.f32 %v1887_v16, %v1886_v37  ;;  %v1922_v34 = vadd.f32 %v1921_v54, %v1920_v33  ;;  %v1956_v27 = vadd.f32 %v1955_v28, %v1954_v22 }
 0x1d1   : >> { %v1852_v23 = vcombine.low %v1843_v55, %v1849_v51  ;;  %v1891_v41 = vcombine.low %v1882_v36, %v1888_v38  ;;  %v1925_v57 = vcombine.low %v1916_v53, %v1922_v34  ;;  %v1959_v9 = vcombine.low %v1950_v63, %v1956_v27 }
 0x1d3   : >> { %v1859_v47 = vrot.slane %v1852_v23, %v3790_v2  ;;  %v1898_v7 = vrot.slane %v1891_v41, %v3790_v2  ;;  %v1932_v52 = vrot.slane %v1925_v57, %v3790_v2  ;;  %v1966_v24 = vrot.slane %v1959_v9, %v3790_v2 }
 0x1d4   : > { %152 = sbr.rel (!%p150_p11) target bundleno = 76 (0x4c), region = 81 }
 0x1d5   : >> { %v1866_v32 = vrot.slane %v1859_v47, %v3790_v2  ;;  %v1905_v25 = vrot.slane %v1898_v7, %v3790_v2  ;;  %v1939_v59 = vrot.slane %v1932_v52, %v3790_v2  ;;  %v1973_v14 = vrot.slane %v1966_v24, %v3790_v2 }
 0x1d7   : >> { %1874 = vst.msk [vmem:[%s1869_s27] ss:$4 sm:$0x3] %vm1872_vm4, %v1866_v32  ;;  %2343 = vst.msk [vmem:[%s1869_s27 + $0x1] ss:$4 sm:$0x3] %vm1872_vm4, %v1905_v25 }
 0x1d8   : >> { %2344 = vst.msk [vmem:[%s1869_s27 + $0x2] ss:$4 sm:$0x3] %vm1872_vm4, %v1939_v59  ;;  %2345 = vst.msk [vmem:[%s1869_s27 + $0x3] ss:$4 sm:$0x3] %vm1872_vm4, %v1973_v14 }
 0x1d9   : > { %2487 = shalt.err (!%p2484_p2)
}
 0x1da   : > { %s2488_s0 = scalar_lea.hbm %s1990_s4, 256  ;;  %s2492_s18 = scalar_lea.hbm %s3846_s2, 512 }
 0x1db   : > { %p2489_p4 = scmp.ne.s32.totalorder %s1990_s4, %s2488_s0  ;;  %p2493_p0 = scmp.lt.s32.totalorder %s1990_s4, %s3846_s2 }
 0x1dc   : > { %p2494_p6 = scmp.lt.s32.totalorder %s2492_s18, %s2488_s0 }
 0x1dd   : > { %p2490_p9 = pnand %p2489_p4, %p3862_p13 }
 0x1de   : > { %p2495_p11 = por %p2494_p6, %p2493_p0 }
 0x1df   : > { %p2491_p7 = pneg %p2490_p9 }
 0x1e1   : > { %p2496_p12 = pnand %p2495_p11, %p2491_p7 }
 0x1e3   : > { %2499 = shalt.err (!%p2496_p12)
}
 0x1e4   : > { %2355 = dma.vmem_to_hbm [thread:$0]  (%p3862_p13), %s1993_s10, 256, %s1990_s4, %s1978_s6  }
 0x1e5 PF: > { %s2004_s25 = sand.u32 1, %s2532_s12   ;;  %p3863_p1 = scmp.ne.s32.totalorder %s3854_s24, 0 }
 0x1e6   : > { %p3864_p3 = scmp.ge.s32.totalorder %s2544_s15, 2  ;;  %s2005_s28 = scalar_lea.sflag [#allocation6], %s2004_s25 }
 0x1e8   : > { %p2362_p5 = pnand %p3864_p3, %p3863_p1 }
 0x1ea   : > { %p2363_p8 = pneg %p2362_p5 }
 0x1ec   : > { %2527 = dma.done.wait (%p2363_p8), %s2005_s28, 256  }
 0x1ed   : > { %2529 = vsyncadd (%p2363_p8), %s2005_s28, 4294967040  ;;  %s3865_s20 = sld [smem:[#allocation11_spill]]  ;;  %p19_p10 = scmp.ge.s32.totalorder %s2598_s17, 4  }
 0x1ee   : > { %s3866_s12 = smov %s2536_s13  ;;  %s3867_s13 = smov %s2540_s14 }
 0x1ef   : > { %s3869_s15 = smov %s2598_s17  ;;  %21 = sbr.rel (!%p19_p10) target bundleno = 11 (0xb), region = 92 }
 0x1f3   : > { %s3868_s14 = smov %s3865_s20 }
 0x1f4   :  { %2010 = vsyncpa [#allocation5], 1 }
 0x1f5   :  { %2012 = vsyncpa [#allocation5 + $0x1], 1 }
 0x1f6   :  { %2013 = vsyncpa [#allocation6], 1 }
 0x1f7   :  { %2015 = vsyncpa [#allocation6 + $0x1], 1 }

</bundles_post_ra>
